<compile_context>
chip_gen: v7x
topology: tpu7x:2x2x1
jax: 0.10.0
libtpu: 0.0.40
codegen_flags: <defaults>
</compile_context>

<pallas_src>
import jax
import jax.numpy as jnp
from jax.experimental import pallas as pl
from jax.experimental.pallas import tpu as pltpu


_FAST_PATH_ELEMS = 128 * 1024   # below this, plain XLA beats pallas dispatch


def _round_up(x, m):
    return ((x + m - 1) // m) * m


def _tpu_num_cores_and_gen():
    """Returns (tensorcores_per_chip, is_v7x). Conservative default (1, False)."""
    try:
        kind = jax.devices()[0].device_kind.lower()
    except Exception:
        return 1, False
    is_v7x = ("7x" in kind) or ("v7" in kind)
    return (2 if is_v7x else 1), is_v7x


def _make_sse_kernel(valid_rows, block_rows, blocks_per_core, lanes,
                     needs_row_mask):
    def kernel(x_ref, y_ref, o_ref, acc_ref):
        c = pl.program_id(0)          # parallel (per-TensorCore) axis
        r = pl.program_id(1)          # arbitrary reduction axis over row-blocks

        @pl.when(r == 0)
        def _():
            acc_ref[...] = jnp.zeros_like(acc_ref)

        # Cast per-tile (inputs may be bf16 etc.); all accumulation in f32.
        d = x_ref[...].astype(jnp.float32) - y_ref[...].astype(jnp.float32)
        d2 = d * d

        if needs_row_mask:
            # Zero contributions from rows past the true array extent (the
            # boundary block's out-of-bounds region holds garbage).
            row_start = (c * blocks_per_core + r) * block_rows
            row_ids = row_start + jax.lax.broadcasted_iota(
                jnp.int32, (block_rows, lanes), 0)
            d2 = jnp.where(row_ids < valid_rows, d2, 0.0)

        # Fold (block_rows, lanes) -> (8, lanes): pure VPU adds over 8-row
        # slabs (no cross-lane/XLU work in the hot loop), tiny VMEM footprint.
        acc_ref[...] += jnp.sum(d2.reshape(block_rows // 8, 8, lanes), axis=0)

        @pl.when(r == pl.num_programs(1) - 1)
        def _():
            # Single cross-lane/sublane reduce per core; scalar store to SMEM.
            o_ref[0, 0] = jnp.sum(acc_ref[...])

    return kernel


def _sum_squared_error(x, y):
    """sum((x - y)^2) over all elements via a lane-dense Pallas TPU kernel."""
    n = int(x.size)
    if n == 0:
        return jnp.zeros((), jnp.float32)

    x_flat = x.reshape(-1)
    y_flat = y.reshape(-1)

    # Fast path: pallas_call fixed dispatch + pipeline setup dominates for
    # tiny inputs (the nominal pendulum loss is batch*seq*state = 48 elements).
    if n < _FAST_PATH_ELEMS:
        d = x_flat.astype(jnp.float32) - y_flat.astype(jnp.float32)
        return jnp.sum(d * d)

    n_cores, is_v7x = _tpu_num_cores_and_gen()

    # Lane-dense width that divides n so the reshape below is a free view
    # (no full-array jnp.pad copy on the hot path).
    if n % 512 == 0:
        lanes = 512
    elif n % 256 == 0:
        lanes = 256
    elif n % 128 == 0:
        lanes = 128
    else:
        # Fallback for awkward sizes: zero-pad the final row (zero pads on
        # BOTH inputs contribute exactly 0).  This copies the arrays once.
        lanes = 512
        padded_n = _round_up(n, lanes)
        x_flat = jnp.pad(x_flat, (0, padded_n - n))
        y_flat = jnp.pad(y_flat, (0, padded_n - n))
        n = padded_n

    rows = n // lanes
    x2d = x_flat.reshape(rows, lanes)
    y2d = y_flat.reshape(rows, lanes)

    # Block sizing: ~1 MiB f32 per input block on v5e/v6e (85% roofline knee);
    # ~2 MiB blocks + 3-deep buffering on v7x (2x HBM BW vs fixed step cost).
    target_block_elems = (1024 * 512) if is_v7x else (512 * 512)
    buffer_count = 3 if is_v7x else 2
    block_rows = min(target_block_elems // lanes, _round_up(rows, 8))

    real_blocks = pl.cdiv(rows, block_rows)

    # Split the reduction across both TensorCores only on 2-TC chips (v7x) and
    # only when it needs no extra (fully out-of-bounds) grid blocks.
    n_par = n_cores
    if n_par > 1 and (real_blocks < 2 or real_blocks % n_par != 0):
        n_par = 1
    blocks_per_core = real_blocks // n_par

    needs_row_mask = (rows % block_rows) != 0

    def row_map(c, r):
        return (c * blocks_per_core + r, 0)

    kernel = _make_sse_kernel(rows, block_rows, blocks_per_core, lanes,
                              needs_row_mask)

    itemsize = x2d.dtype.itemsize
    block_bytes = block_rows * lanes * itemsize
    vmem_limit = min(
        2 * buffer_count * block_bytes      # pipelined input buffers
        + block_rows * lanes * 4            # headroom for f32 temporaries
        + 8 * lanes * 4                     # accumulator
        + (4 << 20),                        # slack
        60 << 20,
    )

    in_spec_kwargs = {}
    if buffer_count != 2:
        in_spec_kwargs["pipeline_mode"] = pl.Buffered(buffer_count)
    in_spec = pl.BlockSpec((block_rows, lanes), row_map, **in_spec_kwargs)

    partials = pl.pallas_call(
        kernel,
        out_shape=jax.ShapeDtypeStruct((n_par, 1), jnp.float32),
        grid=(n_par, blocks_per_core),
        in_specs=[in_spec, in_spec],
        out_specs=pl.BlockSpec((1, 1), lambda c, r: (c, 0),
                               memory_space=pltpu.MemorySpace.SMEM),
        scratch_shapes=[pltpu.VMEM((8, lanes), jnp.float32)],
        compiler_params=pltpu.CompilerParams(
            dimension_semantics=("parallel", "arbitrary"),
            vmem_limit_bytes=int(vmem_limit),
        ),
        cost_estimate=pl.CostEstimate(
            flops=3 * n,
            transcendentals=0,
            bytes_accessed=2 * n * itemsize + n_par * 4,
        ),
    )(x2d, y2d)

    # Tiny glue: add the (at most 2) per-core partial sums.
    return jnp.sum(partials)


def pendulum_mse_loss(logits, targets):
    """JAX/Pallas equivalent of PendulumMSELoss.forward.

    logits: dict with key 'mean'; targets: same shape as logits['mean'].
    Returns scalar float32: sum of squared differences over all elements.
    """
    mean = logits["mean"]
    assert mean.shape == targets.shape, "logits['mean'] and targets must match"
    return _sum_squared_error(mean, targets)


if __name__ == "__main__":
    key = jax.random.PRNGKey(0)
    k1, k2, k3, k4, k5, k6 = jax.random.split(key, 6)

    # 1) Nominal Pendulum shapes: batch=2, seq=8, state_dim=3 (cos, sin, dtheta)
    #    -> tiny-input fast path.
    batch, seq, state_dim = 2, 8, 3
    mean = jax.random.normal(k1, (batch, seq, state_dim), dtype=jnp.float32)
    targets = jax.random.normal(k2, (batch, seq, state_dim), dtype=jnp.float32)
    loss = jax.block_until_ready(pendulum_mse_loss({"mean": mean}, targets))
    ref = jnp.sum((mean - targets) ** 2)
    assert jnp.allclose(loss, ref, rtol=1e-5, atol=1e-5), (loss, ref)

    # 2) Pallas path: multi-block grid (1200 rows -> 3 x 512-row blocks) with
    #    in-kernel tail-row masking and VMEM accumulation (init/finalize).
    mean2 = jax.random.normal(k3, (100, 2048, 3), dtype=jnp.float32)
    targets2 = jax.random.normal(k4, (100, 2048, 3), dtype=jnp.float32)
    loss2 = jax.block_until_ready(pendulum_mse_loss({"mean": mean2}, targets2))
    ref2 = jnp.sum((mean2 - targets2) ** 2)
    assert jnp.allclose(loss2, ref2, rtol=1e-4, atol=1e-2), (loss2, ref2)

    # 3) Awkward element count (not a multiple of 128): exercises the padded
    #    fallback + partial-block masking.
    mean3 = jax.random.normal(k5, (33, 999, 5), dtype=jnp.float32)
    targets3 = jax.random.normal(k6, (33, 999, 5), dtype=jnp.float32)
    loss3 = jax.block_until_ready(pendulum_mse_loss({"mean": mean3}, targets3))
    ref3 = jnp.sum((mean3 - targets3) ** 2)
    assert jnp.allclose(loss3, ref3, rtol=1e-4, atol=1e-2), (loss3, ref3)

    print("KERNEL_OK")
</pallas_src>

<mosaic_0001>
module attributes {stable_mosaic.version = 11 : i64} {
  func.func @kernel(%arg0: i32, %arg1: i32, %arg2: memref<512x512xf32, #tpu.memory_space<vmem>>, %arg3: memref<512x512xf32, #tpu.memory_space<vmem>>, %arg4: memref<1x1xf32, #tpu.memory_space<smem>>, %arg5: memref<8x512xf32, #tpu.memory_space<vmem>>) attributes {dimension_semantics = [#tpu.dimension_semantics<parallel>, #tpu.dimension_semantics<arbitrary>], iteration_bounds = array<i64: 1, 3>, scalar_prefetch = 0 : i64, scratch_operands = 1 : i64, tpu.core_type = #tpu.core_type<tc>, window_params = [{transform_indices = @transform_0, window_bounds = array<i64: 512, 512>}, {transform_indices = @transform_1, window_bounds = array<i64: 512, 512>}, {transform_indices = @transform_2, window_bounds = array<i64: 1, 1>}]} {
    %c0_i32 = arith.constant 0 : i32
    %0 = arith.cmpi eq, %arg1, %c0_i32 : i32
    %1 = arith.extui %0 : i1 to i32
    %c0_i32_0 = arith.constant 0 : i32
    %2 = arith.cmpi ne, %1, %c0_i32_0 : i32
    scf.if %2 {
      %cst_10 = arith.constant 0.000000e+00 : f32
      %25 = vector.broadcast %cst_10 : f32 to vector<8x512xf32>
      %c0_11 = arith.constant 0 : index
      %c0_12 = arith.constant 0 : index
      %26 = vector.load %arg5[%c0_11, %c0_12] : memref<8x512xf32, #tpu.memory_space<vmem>>, vector<8x512xf32>
      tpu.vector_store %arg5[%c0_11, %c0_12], %25 {strides = array<i32>} : memref<8x512xf32, #tpu.memory_space<vmem>>, vector<8x512xf32>,
    } else {
    }
    %c0 = arith.constant 0 : index
    %c0_1 = arith.constant 0 : index
    %3 = vector.load %arg2[%c0, %c0_1] : memref<512x512xf32, #tpu.memory_space<vmem>>, vector<512x512xf32>
    %c0_2 = arith.constant 0 : index
    %c0_3 = arith.constant 0 : index
    %4 = vector.load %arg3[%c0_2, %c0_3] : memref<512x512xf32, #tpu.memory_space<vmem>>, vector<512x512xf32>
    %5 = arith.subf %3, %4 : vector<512x512xf32>
    %6 = arith.mulf %5, %5 : vector<512x512xf32>
    %c3_i32 = arith.constant 3 : i32
    %7 = arith.muli %arg0, %c3_i32 : i32
    %8 = arith.addi %7, %arg1 : i32
    %c512_i32 = arith.constant 512 : i32
    %9 = arith.muli %8, %c512_i32 : i32
    %10 = tpu.iota {dimensions = array<i32: 0>} : vector<512x512xi32>
    %11 = vector.broadcast %9 : i32 to vector<512x512xi32>
    %12 = arith.addi %11, %10 : vector<512x512xi32>
    %c1200_i32 = arith.constant 1200 : i32
    %13 = vector.broadcast %c1200_i32 : i32 to vector<512x512xi32>
    %14 = arith.cmpi slt, %12, %13 : vector<512x512xi32>
    %cst = arith.constant 0.000000e+00 : f32
    %15 = vector.broadcast %cst : f32 to vector<512x512xf32>
    %16 = arith.select %14, %6, %15 : vector<512x512xi1>, vector<512x512xf32>
    %c0_4 = arith.constant 0 : index
    %c0_5 = arith.constant 0 : index
    %17 = vector.load %arg5[%c0_4, %c0_5] : memref<8x512xf32, #tpu.memory_space<vmem>>, vector<8x512xf32>
    %18 = vector.shape_cast %16 : vector<512x512xf32> to vector<64x8x512xf32>
    %cst_6 = arith.constant dense<0.000000e+00> : vector<8x512xf32>
    %19 = vector.multi_reduction <add>, %18, %cst_6 [0] : vector<64x8x512xf32> to vector<8x512xf32>
    %20 = arith.addf %17, %19 : vector<8x512xf32>
    %c0_7 = arith.constant 0 : index
    %c0_8 = arith.constant 0 : index
    %21 = vector.load %arg5[%c0_7, %c0_8] : memref<8x512xf32, #tpu.memory_space<vmem>>, vector<8x512xf32>
    tpu.vector_store %arg5[%c0_7, %c0_8], %20 {strides = array<i32>} : memref<8x512xf32, #tpu.memory_space<vmem>>, vector<8x512xf32>,
    %c2_i32 = arith.constant 2 : i32
    %22 = arith.cmpi eq, %arg1, %c2_i32 : i32
    %23 = arith.extui %22 : i1 to i32
    %c0_i32_9 = arith.constant 0 : i32
    %24 = arith.cmpi ne, %23, %c0_i32_9 : i32
    scf.if %24 {
      %c0_10 = arith.constant 0 : index
      %c0_11 = arith.constant 0 : index
      %25 = vector.load %arg5[%c0_10, %c0_11] : memref<8x512xf32, #tpu.memory_space<vmem>>, vector<8x512xf32>
      %26 = vector.shape_cast %25 : vector<8x512xf32> to vector<1x8x512xf32>
      %cst_12 = arith.constant dense<0.000000e+00> : vector<1xf32>
      %27 = vector.multi_reduction <add>, %26, %cst_12 [1, 2] : vector<1x8x512xf32> to vector<1xf32>
      %28 = vector.shape_cast %27 : vector<1xf32> to vector<1x1x1xf32>
      %29 = vector.extract %28[0, 0, 0] : f32 from vector<1x1x1xf32>
      %c0_13 = arith.constant 0 : index
      %c0_14 = arith.constant 0 : index
      %30 = memref.load %arg4[%c0_13, %c0_14] : memref<1x1xf32, #tpu.memory_space<smem>>
      memref.store %29, %arg4[%c0_13, %c0_14] : memref<1x1xf32, #tpu.memory_space<smem>>
    } else {
    }
    return
  }
  func.func @transform_0(%arg0: i32, %arg1: i32) -> (i32, i32) {
    %c3_i32 = arith.constant 3 : i32
    %0 = arith.muli %arg0, %c3_i32 : i32
    %1 = arith.addi %0, %arg1 : i32
    %c0_i32 = arith.constant 0 : i32
    %c0_i32_0 = arith.constant 0 : i32
    return %1, %c0_i32 : i32, i32
  }
  func.func @transform_1(%arg0: i32, %arg1: i32) -> (i32, i32) {
    %c3_i32 = arith.constant 3 : i32
    %0 = arith.muli %arg0, %c3_i32 : i32
    %1 = arith.addi %0, %arg1 : i32
    %c0_i32 = arith.constant 0 : i32
    %c0_i32_0 = arith.constant 0 : i32
    return %1, %c0_i32 : i32, i32
  }
  func.func @transform_2(%arg0: i32, %arg1: i32) -> (i32, i32) {
    %c0_i32 = arith.constant 0 : i32
    %c0_i32_0 = arith.constant 0 : i32
    return %arg0, %c0_i32 : i32, i32
  }
}

</mosaic_0001>

<bundles_post_ra>
// kernel: tpu_custom_call.1
= control target key start
LH: loop header
LB: loop body
LE: loop exit
PB: predicated region body
PF: predicated region fallthrough
CT: control target
= control target key end

     0   :  { %7 = vsyncpa [#allocation4], 0  ;;  %s5693_s0 = inlined_call_operand.hbm [shape: f32[1200,512], index: 0, kind: input, shape index: {}]   ;;  %s5694_s1 = inlined_call_operand.hbm [shape: f32[1200,512], index: 1, kind: input, shape index: {}]   ;;  %s5695_s2 = inlined_call_operand.hbm [shape: f32[1,1], index: 2, kind: output, shape index: {}]  }
   0x1   :  { %9 = vsyncpa [#allocation4 + $0x1], 0 }
   0x2   :  { %10 = vsyncpa [#allocation7], 0 }
   0x3   :  { %12 = vsyncpa [#allocation7 + $0x1], 0 }
   0x4   :  { %13 = vsyncpa [#allocation5], 0  ;;  %s2370_s9 = smov 0   ;;  %s2372_s10 = smov 0  }
   0x5   :  { %s2374_s11 = smov 0   ;;  %s2376_s12 = smov 0  }
   0x6   :  { %s2378_s13 = smov 0   ;;  %s2380_s14 = smov 0  }
   0x7 LB: > { %s2118_s15 = sadd.s32 4294967295, %s2345_s14   ;;  %s28_s16 = sadd.s32 1, %s2341_s13  ;;  %s2345_s14 = sphi %s2380_s14, %s19_s14   ;;  %s2341_s13 = sphi %s2378_s13, %s6681_s13   ;;  %s2337_s12 = sphi %s2376_s12, %s6680_s12   ;;  %s2333_s11 = sphi %s2374_s11, %s6679_s11   ;;  %s2329_s10 = sphi %s2372_s10, %s6678_s10   ;;  %s2325_s9 = sphi %s2370_s9, %s6677_s9  }
   0x8   : > { %p29_p0 = scmp.ge.s32.totalorder %s28_s16, 3  ;;  %s42_s17 = sadd.s32 1, %s2333_s11 }
   0x9   : > { %p49_p1 = scmp.ne.s32.totalorder %s2333_s11, %s2329_s10  ;;  %p50_p2 = scmp.eq.s32.totalorder %s2345_s14, 0 }
   0xa   : > { %s6683_s16 = smov (%p29_p0, %s28_s16), 0  ;;  %p55_p4 = scmp.ne.s32.totalorder %s2329_s10, %s2325_s9 }
   0xb   : > { %p2406_p3 = por %p50_p2, %p49_p1  ;;  %s39_s19 = ssub.s32 %s2341_s13, %s6683_s16 }
   0xc   : > { %p56_p5 = scmp.eq.s32.totalorder %s2118_s15, 0  ;;  %p40_p6 = scmp.eq.s32.totalorder %s39_s19, 0 }
   0xd   : > { %p2120_p8 = scmp.ge.s32.totalorder %s2345_s14, 3 }
   0xe   : > { %p2415_p7 = por %p56_p5, %p55_p4 }
   0xf   : > { %s2420_s21 = scalar_select %p40_p6, %s2333_s11, %s42_s17  }
  0x10   : > { %131 = sbr.rel (%p2120_p8) target bundleno = 93 (0x5d), region = 16 }
  0x17   : > { %134 = sbr.rel (!%p2406_p3) target bundleno = 58 (0x3a), region = 20  ;;  %s135_s22 = sand.u32 (%p2406_p3), 1, %s2333_s11  }
  0x18   : > { %s2122_s23 = sshll.u32 (%p2406_p3), %s2341_s13, 6  ;;  %s2121_s24 = sshll.u32 (%p2406_p3), %s135_s22, 11 }
  0x19   : > { %s143_s25 = ssub.s32 (%p2406_p3), 150, %s2122_s23  ;;  %s2430_s28 = scalar_lea.sflag (%p2406_p3), [#allocation4], %s135_s22 }
  0x1a   : > { %p144_p9 = scmp.lt.s32.totalorder (%p2406_p3), %s143_s25, 64  ;;  %s139_s29 = scalar_lea.vmem (%p2406_p3), [#allocation3], %s2121_s24 }
  0x1e   : > { %s6685_s25 = smov (!%p144_p9, %s143_s25), 64 }
  0x1f   : > { %s2427_s26 = sshll.u32 %s6685_s25, 9 }
  0x20   : > { %s149_s27 = ssub.s32 32768, %s2427_s26 }
  0x21   : > { %150 = vsyncadd %s2430_s28, %s149_s27  ;;  %p2125_p10 = scmp.ne.s32.totalorder %s2427_s26, 0  ;;  %s2151_s30 = sshll.u32 %s2341_s13, 15 }
  0x22   : > { %s2438_s5 = scalar_lea.hbm %s5693_s0, %s2151_s30  ;;  %s156_s6 = sshll.u32 %s139_s29, 4  ;;  %s2440_s6 = int_to_ptr.vmem [resolvable:$true] %s156_s6 }
  0x23   : > { %s2219_s7 = scalar_lea.hbm %s2438_s5, %s2427_s26  ;;  %s2223_s17 = scalar_lea.hbm %s5693_s0, 76800 }
  0x24   : > { %p2220_p11 = scmp.ne.s32.totalorder %s2438_s5, %s2219_s7  ;;  %p2224_p0 = scmp.lt.u32.totalorder %s2438_s5, %s5693_s0 }
  0x25   : > { %p2225_p1 = scmp.lt.u32.totalorder %s2223_s17, %s2219_s7  ;;  %p2227_p4 = scmp.lt.u32.totalorder %s2219_s7, %s2438_s5 }
  0x26   : > { %p2221_p12 = pnand %p2220_p11, %p2125_p10 }
  0x27   : > { %p2226_p2 = por %p2225_p1, %p2224_p0 }
  0x28   : > { %p2222_p13 = pneg %p2221_p12 }
  0x29   : > { %p2228_p5 = por %p2227_p4, %p2226_p2 }
  0x2b   : > { %p2229_p6 = pnand %p2228_p5, %p2222_p13 }
  0x2d   : > { %2232 = shalt.err (!%p2229_p6)
}
  0x2e   : > { %s2233_s23 = scalar_lea.vmem %s2440_s6, %s2427_s26  ;;  %s2347_s24 = smov [#allocation3]  }
  0x2f   : > { %p2234_p8 = scmp.ne.s32.totalorder %s2440_s6, %s2233_s23  ;;  %s2237_s25 = sshll.u32 %s2347_s24, 4  ;;  %s2238_s25 = int_to_ptr.vmem [resolvable:$false] %s2237_s25 }
  0x30   : > { %s2239_s27 = scalar_lea.vmem %s2238_s25, 65536  ;;  %p2240_p12 = scmp.lt.s32.totalorder %s2440_s6, %s2238_s25 }
  0x31   : > { %p2235_p9 = pnand %p2234_p8, %p2125_p10  ;;  %p2241_p0 = scmp.lt.s32.totalorder %s2239_s27, %s2233_s23 }
  0x33   : > { %p2236_p11 = pneg %p2235_p9  ;;  %p2242_p1 = por %p2241_p0, %p2240_p12 }
  0x35   : > { %p2243_p2 = pnand %p2242_p1, %p2236_p11 }
  0x37   : > { %2246 = shalt.err (!%p2243_p2)
}
  0x38   : > { %s2348_s29 = smov 512   ;;  %s2349_s30 = smov 32  }
  0x39   : > { %162 = dma.hbm_to_vmem [thread:$0]  (%p2125_p10), %s2438_s5, %s2427_s26, %s2440_s6, %s2430_s28, %s2348_s29, %s2348_s29, %s2349_s30  }
  0x3a PF: > { %165 = sbr.rel (!%p2406_p3) target bundleno = 93 (0x5d), region = 24  ;;  %s166_s3 = sand.u32 (%p2406_p3), 1, %s2333_s11  }
  0x3b   : > { %s2131_s4 = sshll.u32 (%p2406_p3), %s2341_s13, 6  ;;  %s2130_s7 = sshll.u32 (%p2406_p3), %s166_s3, 11 }
  0x3c   : > { %s174_s8 = ssub.s32 (%p2406_p3), 150, %s2131_s4  ;;  %s2474_s19 = scalar_lea.sflag (%p2406_p3), [#allocation7], %s166_s3 }
  0x3d   : > { %p175_p13 = scmp.lt.s32.totalorder (%p2406_p3), %s174_s8, 64  ;;  %s170_s26 = scalar_lea.vmem (%p2406_p3), [#allocation6], %s2130_s7 }
  0x41   : > { %s6687_s8 = smov (!%p175_p13, %s174_s8), 64 }
  0x42   : > { %s2471_s9 = sshll.u32 %s6687_s8, 9 }
  0x43   : > { %s180_s17 = ssub.s32 32768, %s2471_s9 }
  0x44   : > { %181 = vsyncadd %s2474_s19, %s180_s17  ;;  %p2134_p3 = scmp.ne.s32.totalorder %s2471_s9, 0  ;;  %s2154_s18 = sshll.u32 %s2341_s13, 15 }
  0x45   : > { %s2482_s6 = scalar_lea.hbm %s5694_s1, %s2154_s18  ;;  %s187_s22 = sshll.u32 %s170_s26, 4  ;;  %s2484_s22 = int_to_ptr.vmem [resolvable:$true] %s187_s22 }
  0x46   : > { %s2247_s23 = scalar_lea.hbm %s2482_s6, %s2471_s9  ;;  %s2251_s27 = scalar_lea.hbm %s5694_s1, 76800 }
  0x47   : > { %p2248_p10 = scmp.ne.s32.totalorder %s2482_s6, %s2247_s23  ;;  %p2252_p6 = scmp.lt.u32.totalorder %s2482_s6, %s5694_s1 }
  0x48   : > { %p2253_p8 = scmp.lt.u32.totalorder %s2251_s27, %s2247_s23  ;;  %p2255_p11 = scmp.lt.u32.totalorder %s2247_s23, %s2482_s6 }
  0x49   : > { %p2249_p4 = pnand %p2248_p10, %p2134_p3 }
  0x4a   : > { %p2254_p9 = por %p2253_p8, %p2252_p6 }
  0x4b   : > { %p2250_p5 = pneg %p2249_p4 }
  0x4c   : > { %p2256_p12 = por %p2255_p11, %p2254_p9 }
  0x4e   : > { %p2257_p0 = pnand %p2256_p12, %p2250_p5 }
  0x50   : > { %2260 = shalt.err (!%p2257_p0)
}
  0x51   : > { %s2261_s3 = scalar_lea.vmem %s2484_s22, %s2471_s9  ;;  %s2350_s4 = smov [#allocation6]  }
  0x52   : > { %p2262_p1 = scmp.ne.s32.totalorder %s2484_s22, %s2261_s3  ;;  %s2265_s7 = sshll.u32 %s2350_s4, 4  ;;  %s2266_s7 = int_to_ptr.vmem [resolvable:$false] %s2265_s7 }
  0x53   : > { %s2267_s8 = scalar_lea.vmem %s2266_s7, 65536  ;;  %p2268_p10 = scmp.lt.s32.totalorder %s2484_s22, %s2266_s7 }
  0x54   : > { %p2263_p2 = pnand %p2262_p1, %p2134_p3  ;;  %p2269_p4 = scmp.lt.s32.totalorder %s2267_s8, %s2261_s3 }
  0x56   : > { %p2264_p13 = pneg %p2263_p2  ;;  %p2270_p6 = por %p2269_p4, %p2268_p10 }
  0x58   : > { %p2271_p8 = pnand %p2270_p6, %p2264_p13 }
  0x5a   : > { %2274 = shalt.err (!%p2271_p8)
}
  0x5b   : > { %s2351_s17 = smov 512   ;;  %s2352_s26 = smov 32  }
  0x5c   : > { %193 = dma.hbm_to_vmem [thread:$0]  (%p2134_p3), %s2482_s6, %s2471_s9, %s2484_s22, %s2474_s19, %s2351_s17, %s2351_s17, %s2352_s26  }
  0x5d PF: > { %p2139_p5 = scmp.ge.s32.totalorder %s2345_s14, 1  ;;  %p195_p9 = scmp.lt.s32.totalorder %s2345_s14, 4 }
  0x5f   : > { %p196_p11 = pnand %p2139_p5, %p195_p9 }
  0x61   : > { %199 = sbr.rel (%p196_p11) target bundleno = 812 (0x32c), region = 28 }
  0x68   : > { %s201_s18 = sand.u32 1, %s2329_s10  }
  0x69   : > { %s2140_s28 = sshll.u32 %s201_s18, 11  ;;  %s202_s5 = scalar_lea.sflag [#allocation4], %s201_s18 }
  0x6a   : > { %s2514_s23 = scalar_lea.vmem [#allocation3], %s2140_s28 }
  0x6b   : > { %2312 = dma.done.wait (%p2415_p7), %s202_s5, 32768  }
  0x6c   : > { %2314 = vsyncadd (%p2415_p7), %s202_s5, 4294934528  ;;  %s211_s9 = scalar_lea.sflag [#allocation7], %s201_s18  ;;  %s2520_s19 = scalar_lea.vmem [#allocation6], %s2140_s28 }
  0x6d   : > { %2316 = dma.done.wait (%p2415_p7), %s211_s9, 32768  }
  0x6e   : > { %2318 = vsyncadd (%p2415_p7), %s211_s9, 4294934528  ;;  %p2142_p3 = scmp.ne.s32.totalorder %s2337_s12, 0 }
  0x6f   : > { %v2353_v0 = vmov (!%p2142_p3), 0.0  }
  0x70   : > { %254 = sbr.rel (%p2142_p3) target bundleno = 119 (0x77), region = 40  ;;  %255 = vst [vmem:[#allocation2] sm:$0xff] (!%p2142_p3), %v2353_v0  ;;  %256 = vst [vmem:[#allocation2 + $0x8] sm:$0xff] (!%p2142_p3), %v2353_v0 }
  0x71   : > { %257 = vst [vmem:[#allocation2 + $0x10] sm:$0xff] (!%p2142_p3), %v2353_v0  ;;  %258 = vst [vmem:[#allocation2 + $0x18] sm:$0xff] (!%p2142_p3), %v2353_v0 }
  0x77 PF: > { %v1286_v1 = vlaneseq  ;;  %s2143_s6 = sshll.u32 %s2337_s12, 9  ;;  %p2144_p7 = scmp.ne.s32.totalorder %s2337_s12, 2 }
  0x78   : > { %v2531_v4 = vstv %s2143_s6 }
  0x79   : > { %v2527_v2 = vshrl.u32 %v1286_v1, 7  ;;  %5762 = vst [vmem:[#allocation13_spill] sm:$0xff] %v2531_v4 }
  0x7b   : > { %5761 = vst [vmem:[#allocation12_spill] sm:$0xff] %v2527_v2  ;;  %v1288_v3 = vadd.s32 8, %v2527_v2  ;;  %v1289_v5 = vadd.s32 16, %v2527_v2  ;;  %v1290_v6 = vadd.s32 24, %v2527_v2  ;;  %v1291_v7 = vadd.s32 32, %v2527_v2 }
  0x7c   : > { %v1292_v8 = vadd.s32 40, %v2527_v2  ;;  %v1293_v9 = vadd.s32 48, %v2527_v2  ;;  %v1294_v10 = vadd.s32 56, %v2527_v2  ;;  %v1295_v11 = vadd.s32 64, %v2527_v2 }
  0x7d   : > { %v1296_v12 = vadd.s32 72, %v2527_v2  ;;  %v2543_v13 = vadd.s32 %v2531_v4, %v2527_v2  ;;  %v2546_v14 = vadd.s32 %v2531_v4, %v1288_v3  ;;  %v2549_v15 = vadd.s32 %v2531_v4, %v1289_v5  ;;  %v259_v5 = vld [vmem:[%s2514_s23] sm:$0xff] }
  0x7e   : > { %v2552_v16 = vadd.s32 %v2531_v4, %v1290_v6  ;;  %v2555_v17 = vadd.s32 %v2531_v4, %v1291_v7  ;;  %v2558_v18 = vadd.s32 %v2531_v4, %v1292_v8  ;;  %v1297_v19 = vadd.s32 80, %v2527_v2  ;;  %v260_v6 = vld [vmem:[%s2514_s23 + $0x8] sm:$0xff] }
  0x7f   : > { %5763 = vst [vmem:[#allocation14_spill] sm:$0xff] %v2543_v13  ;;  %5764 = vst [vmem:[#allocation15_spill] sm:$0xff] %v2546_v14  ;;  %v2562_v20 = vadd.s32 %v2531_v4, %v1293_v9  ;;  %v2565_v21 = vadd.s32 %v2531_v4, %v1294_v10  ;;  %v2568_v22 = vadd.s32 %v2531_v4, %v1295_v11  ;;  %v1298_v23 = vadd.s32 88, %v2527_v2  ;;  %v261_v11 = vld [vmem:[%s2514_s23 + $0x10] sm:$0xff]  ;;  %v560_v14 = vld [vmem:[%s2520_s19 + $0x168] sm:$0xff] }
  0x80   : > { %5765 = vst [vmem:[#allocation16_spill] sm:$0xff] %v2549_v15  ;;  %5766 = vst [vmem:[#allocation17_spill] sm:$0xff] %v2552_v16  ;;  %v1299_v24 = vadd.s32 96, %v2527_v2  ;;  %v1300_v25 = vadd.s32 104, %v2527_v2  ;;  %v2574_v26 = vadd.s32 %v2531_v4, %v1296_v12  ;;  %v1301_v27 = vadd.s32 112, %v2527_v2  ;;  %v262_v12 = vld [vmem:[%s2514_s23 + $0x18] sm:$0xff] }
  0x81   : > { %5767 = vst [vmem:[#allocation18_spill] sm:$0xff] %v2555_v17  ;;  %5768 = vst [vmem:[#allocation19_spill] sm:$0xff] %v2558_v18  ;;  %v1302_v28 = vadd.s32 120, %v2527_v2  ;;  %v1303_v29 = vadd.s32 128, %v2527_v2  ;;  %v1304_v30 = vadd.s32 136, %v2527_v2  ;;  %v1305_v31 = vadd.s32 144, %v2527_v2 }
  0x82   : > { %5769 = vst [vmem:[#allocation20_spill] sm:$0xff] %v2562_v20  ;;  %5770 = vst [vmem:[#allocation21_spill] sm:$0xff] %v2565_v21  ;;  %v1306_v32 = vadd.s32 152, %v2527_v2  ;;  %v1307_v33 = vadd.s32 160, %v2527_v2  ;;  %v1308_v34 = vadd.s32 168, %v2527_v2  ;;  %v1309_v35 = vadd.s32 176, %v2527_v2 }
  0x83   : > { %5771 = vst [vmem:[#allocation22_spill] sm:$0xff] %v2568_v22  ;;  %5772 = vst [vmem:[#allocation23_spill] sm:$0xff] %v2574_v26  ;;  %v1310_v36 = vadd.s32 184, %v2527_v2  ;;  %v1311_v37 = vadd.s32 192, %v2527_v2  ;;  %v2588_v38 = vadd.s32 %v2531_v4, %v1297_v19  ;;  %v1312_v39 = vadd.s32 200, %v2527_v2  ;;  %v263_v19 = vld [vmem:[%s2514_s23 + $0x20] sm:$0xff] }
  0x84   : > { %v2592_v40 = vadd.s32 %v2531_v4, %v1298_v23  ;;  %v2595_v41 = vadd.s32 %v2531_v4, %v1299_v24  ;;  %v2598_v42 = vadd.s32 %v2531_v4, %v1300_v25  ;;  %v2601_v43 = vadd.s32 %v2531_v4, %v1301_v27  ;;  %v515_v23 = vld [vmem:[%s2520_s19] sm:$0xff]  ;;  %v538_v26 = vld [vmem:[%s2520_s19 + $0xb8] sm:$0xff]  ;;  %v540_v21 = vld [vmem:[%s2520_s19 + $0xc8] sm:$0xff] }
  0x85   : > { %5773 = vst [vmem:[#allocation24_spill] sm:$0xff] %v2588_v38  ;;  %v2604_v44 = vadd.s32 %v2531_v4, %v1302_v28  ;;  %v2607_v45 = vadd.s32 %v2531_v4, %v1303_v29  ;;  %v2610_v46 = vadd.s32 %v2531_v4, %v1304_v30  ;;  %v2613_v47 = vadd.s32 %v2531_v4, %v1305_v31  ;;  %v264_v29 = vld [vmem:[%s2514_s23 + $0x28] sm:$0xff]  ;;  %v265_v30 = vld [vmem:[%s2514_s23 + $0x30] sm:$0xff]  ;;  %v266_v31 = vld [vmem:[%s2514_s23 + $0x38] sm:$0xff] }
  0x86   : > { %5774 = vst [vmem:[#allocation25_spill] sm:$0xff] %v2592_v40  ;;  %5775 = vst [vmem:[#allocation26_spill] sm:$0xff] %v2595_v41  ;;  %v2616_v48 = vadd.s32 %v2531_v4, %v1306_v32  ;;  %v2619_v49 = vadd.s32 %v2531_v4, %v1307_v33  ;;  %v2622_v50 = vadd.s32 %v2531_v4, %v1308_v34  ;;  %v1313_v51 = vadd.s32 208, %v2527_v2  ;;  %v516_v32 = vld [vmem:[%s2520_s19 + $0x8] sm:$0xff]  ;;  %v535_v41 = vld [vmem:[%s2520_s19 + $0xa0] sm:$0xff] }
  0x87   : > { %5776 = vst [vmem:[#allocation27_spill] sm:$0xff] %v2598_v42  ;;  %5777 = vst [vmem:[#allocation28_spill] sm:$0xff] %v2601_v43  ;;  %v2626_v52 = vadd.s32 %v2531_v4, %v1309_v35  ;;  %v2629_v53 = vadd.s32 %v2531_v4, %v1310_v36  ;;  %v2632_v54 = vadd.s32 %v2531_v4, %v1311_v37  ;;  %v1314_v55 = vadd.s32 216, %v2527_v2  ;;  %v267_v37 = vld [vmem:[%s2514_s23 + $0x40] sm:$0xff]  ;;  %v534_v43 = vld [vmem:[%s2520_s19 + $0x98] sm:$0xff] }
  0x88   : > { %5778 = vst [vmem:[#allocation29_spill] sm:$0xff] %v2604_v44  ;;  %5779 = vst [vmem:[#allocation30_spill] sm:$0xff] %v2607_v45  ;;  %v1315_v56 = vadd.s32 224, %v2527_v2  ;;  %v1316_v57 = vadd.s32 232, %v2527_v2  ;;  %v2638_v58 = vadd.s32 %v2531_v4, %v1312_v39  ;;  %v1317_v59 = vadd.s32 240, %v2527_v2  ;;  %v268_v39 = vld [vmem:[%s2514_s23 + $0x48] sm:$0xff] }
  0x89   : > { %5780 = vst [vmem:[#allocation31_spill] sm:$0xff] %v2610_v46  ;;  %5781 = vst [vmem:[#allocation32_spill] sm:$0xff] %v2613_v47  ;;  %v1318_v60 = vadd.s32 248, %v2527_v2  ;;  %v1319_v61 = vadd.s32 256, %v2527_v2  ;;  %v1320_v62 = vadd.s32 264, %v2527_v2  ;;  %v1321_v63 = vadd.s32 272, %v2527_v2 }
  0x8a   : > { %5782 = vst [vmem:[#allocation33_spill] sm:$0xff] %v2616_v48  ;;  %5783 = vst [vmem:[#allocation34_spill] sm:$0xff] %v2619_v49  ;;  %v1322_v0 = vadd.s32 280, %v2527_v2  ;;  %v1323_v1 = vadd.s32 288, %v2527_v2  ;;  %v1324_v3 = vadd.s32 296, %v2527_v2  ;;  %v1325_v7 = vadd.s32 304, %v2527_v2 }
  0x8b   : > { %5784 = vst [vmem:[#allocation35_spill] sm:$0xff] %v2622_v50  ;;  %5785 = vst [vmem:[#allocation36_spill] sm:$0xff] %v2626_v52  ;;  %v1326_v8 = vadd.s32 312, %v2527_v2  ;;  %v1327_v9 = vadd.s32 320, %v2527_v2  ;;  %v2654_v10 = vadd.s32 %v2531_v4, %v1313_v51  ;;  %v1328_v24 = vadd.s32 328, %v2527_v2  ;;  %v269_v51 = vld [vmem:[%s2514_s23 + $0x50] sm:$0xff] }
  0x8c   : > { %5786 = vst [vmem:[#allocation37_spill] sm:$0xff] %v2629_v53  ;;  %5787 = vst [vmem:[#allocation38_spill] sm:$0xff] %v2632_v54  ;;  %v2662_v25 = vadd.s32 %v2531_v4, %v1314_v55  ;;  %v2665_v27 = vadd.s32 %v2531_v4, %v1315_v56  ;;  %v2668_v28 = vadd.s32 %v2531_v4, %v1316_v57  ;;  %v517_v55 = vld [vmem:[%s2520_s19 + $0x10] sm:$0xff]  ;;  %v518_v56 = vld [vmem:[%s2520_s19 + $0x18] sm:$0xff]  ;;  %v2741_v52 = vadd.s32 352, %v2527_v2 }
  0x8d   : > { %5788 = vst [vmem:[#allocation39_spill] sm:$0xff] %v2638_v58  ;;  %5789 = vst [vmem:[#allocation40_spill] sm:$0xff] %v2654_v10  ;;  %v2675_v33 = vadd.s32 %v2531_v4, %v1317_v59  ;;  %v2678_v34 = vadd.s32 %v2531_v4, %v1318_v60  ;;  %v2681_v35 = vadd.s32 %v2531_v4, %v1319_v61  ;;  %v519_v57 = vld [vmem:[%s2520_s19 + $0x20] sm:$0xff]  ;;  %v526_v10 = vld [vmem:[%s2520_s19 + $0x58] sm:$0xff] }
  0x8e   : > { %5790 = vst [vmem:[#allocation41_spill] sm:$0xff] %v2662_v25  ;;  %5791 = vst [vmem:[#allocation42_spill] sm:$0xff] %v2665_v27  ;;  %v2684_v36 = vadd.s32 %v2531_v4, %v1320_v62  ;;  %v2693_v59 = vadd.s32 %v2531_v4, %v1321_v63  ;;  %v2696_v60 = vadd.s32 %v2531_v4, %v1322_v0  ;;  %v522_v63 = vld [vmem:[%s2520_s19 + $0x38] sm:$0xff]  ;;  %v523_v27 = vld [vmem:[%s2520_s19 + $0x40] sm:$0xff] }
  0x8f   : > { %5792 = vst [vmem:[#allocation43_spill] sm:$0xff] %v2668_v28  ;;  %5793 = vst [vmem:[#allocation44_spill] sm:$0xff] %v2675_v33  ;;  %v2699_v61 = vadd.s32 %v2531_v4, %v1323_v1  ;;  %v2702_v62 = vadd.s32 %v2531_v4, %v1324_v3  ;;  %v520_v33 = vld [vmem:[%s2520_s19 + $0x28] sm:$0xff]  ;;  %v521_v28 = vld [vmem:[%s2520_s19 + $0x30] sm:$0xff]  ;;  %v2711_v0 = vadd.s32 %v2531_v4, %v1325_v7  ;;  %v2726_v7 = vadd.s32 336, %v2527_v2 }
  0x90   : > { %5794 = vst [vmem:[#allocation45_spill] sm:$0xff] %v2678_v34  ;;  %5795 = vst [vmem:[#allocation46_spill] sm:$0xff] %v2681_v35  ;;  %v271_v35 = vld [vmem:[%s2514_s23 + $0x60] sm:$0xff]  ;;  %v272_v34 = vld [vmem:[%s2514_s23 + $0x68] sm:$0xff]  ;;  %v2714_v1 = vadd.s32 %v2531_v4, %v1326_v8  ;;  %v2717_v3 = vadd.s32 %v2531_v4, %v1327_v9  ;;  %v2729_v8 = vadd.s32 344, %v2527_v2  ;;  %v2732_v9 = vadd.s32 %v2531_v4, %v1328_v24 }
  0x91   : > { %5796 = vst [vmem:[#allocation47_spill] sm:$0xff] %v2684_v36  ;;  %5797 = vst [vmem:[#allocation48_spill] sm:$0xff] %v2693_v59  ;;  %v270_v36 = vld [vmem:[%s2514_s23 + $0x58] sm:$0xff]  ;;  %v771_v59 = vsub.f32 %v259_v5, %v515_v23  ;;  %v524_v25 = vld [vmem:[%s2520_s19 + $0x48] sm:$0xff]  ;;  %v772_v23 = vsub.f32 %v260_v6, %v516_v32  ;;  %v773_v32 = vsub.f32 %v261_v11, %v517_v55 }
  0x92   : > { %5798 = vst [vmem:[#allocation49_spill] sm:$0xff] %v2696_v60  ;;  %5799 = vst [vmem:[#allocation50_spill] sm:$0xff] %v2699_v61  ;;  %v274_v61 = vld [vmem:[%s2514_s23 + $0x78] sm:$0xff]  ;;  %v275_v60 = vld [vmem:[%s2514_s23 + $0x80] sm:$0xff]  ;;  %v774_v54 = vsub.f32 %v262_v12, %v518_v56  ;;  %v775_v53 = vsub.f32 %v263_v19, %v519_v57  ;;  %v2749_v46 = vsub.f32 %v264_v29, %v520_v33  ;;  %v2756_v19 = vadd.s32 360, %v2527_v2 }
  0x93   : > { %5800 = vst [vmem:[#allocation51_spill] sm:$0xff] %v2702_v62  ;;  %5801 = vst [vmem:[#allocation52_spill] sm:$0xff] %v2711_v0  ;;  %v273_v62 = vld [vmem:[%s2514_s23 + $0x70] sm:$0xff]  ;;  %v278_v0 = vld [vmem:[%s2514_s23 + $0x98] sm:$0xff]  ;;  %v2751_v11 = vsub.f32 %v265_v30, %v521_v28  ;;  %v2753_v12 = vsub.f32 %v266_v31, %v522_v63  ;;  %v2764_v29 = vsub.f32 %v267_v37, %v523_v27 }
  0x94   : > { %5802 = vst [vmem:[#allocation53_spill] sm:$0xff] %v2714_v1  ;;  %5803 = vst [vmem:[#allocation54_spill] sm:$0xff] %v2717_v3  ;;  %v525_v5 = vld [vmem:[%s2520_s19 + $0x50] sm:$0xff]  ;;  %v276_v3 = vld [vmem:[%s2514_s23 + $0x88] sm:$0xff]  ;;  %v2766_v28 = vsub.f32 %v268_v39, %v524_v25  ;;  %v2770_v31 = vmul.f32 %v771_v59, %v771_v59  ;;  %v2778_v27 = vsub.f32 %v270_v36, %v526_v10 }
  0x95   : > { %5804 = vst [vmem:[#allocation55_spill] sm:$0xff] %v2726_v7  ;;  %5805 = vst [vmem:[#allocation56_spill] sm:$0xff] %v2729_v8  ;;  %v277_v1 = vld [vmem:[%s2514_s23 + $0x90] sm:$0xff]  ;;  %v527_v58 = vld [vmem:[%s2520_s19 + $0x60] sm:$0xff]  ;;  %v2768_v30 = vsub.f32 %v269_v51, %v525_v5  ;;  %v2784_v39 = vmul.f32 %v772_v23, %v772_v23 }
  0x96   : > { %5806 = vst [vmem:[#allocation57_spill] sm:$0xff] %v2732_v9  ;;  %v528_v6 = vld [vmem:[%s2520_s19 + $0x68] sm:$0xff]  ;;  %5807 = vst [vmem:[#allocation58_spill] sm:$0xff] %v2741_v52  ;;  %v279_v24 = vld [vmem:[%s2514_s23 + $0xa0] sm:$0xff]  ;;  %v2780_v25 = vsub.f32 %v271_v35, %v527_v58  ;;  %v2798_v35 = vmul.f32 %v773_v32, %v773_v32 }
  0x97   : > { %v280_v9 = vld [vmem:[%s2514_s23 + $0xa8] sm:$0xff]  ;;  %v281_v50 = vld [vmem:[%s2514_s23 + $0xb0] sm:$0xff]  ;;  %v530_v48 = vld [vmem:[%s2520_s19 + $0x78] sm:$0xff]  ;;  %5808 = vst [vmem:[#allocation59_spill] sm:$0xff] %v2756_v19  ;;  %v2782_v37 = vsub.f32 %v272_v34, %v528_v6 }
  0x98   : > { %v529_v49 = vld [vmem:[%s2520_s19 + $0x70] sm:$0xff]  ;;  %v531_v47 = vld [vmem:[%s2520_s19 + $0x80] sm:$0xff]  ;;  %v282_v55 = vld [vmem:[%s2514_s23 + $0xb8] sm:$0xff]  ;;  %5809 = vst [vmem:[#allocation60_spill] sm:$0xff] %v2770_v31  ;;  %v2794_v58 = vsub.f32 %v274_v61, %v530_v48 }
  0x99   : > { %v283_v56 = vld [vmem:[%s2514_s23 + $0xc0] sm:$0xff]  ;;  %v284_v57 = vld [vmem:[%s2514_s23 + $0xc8] sm:$0xff]  ;;  %v533_v44 = vld [vmem:[%s2520_s19 + $0x90] sm:$0xff]  ;;  %5810 = vst [vmem:[#allocation61_spill] sm:$0xff] %v2784_v39  ;;  %v2792_v10 = vsub.f32 %v273_v62, %v529_v49  ;;  %v2796_v34 = vsub.f32 %v275_v60, %v531_v47  ;;  %v2810_v47 = vsub.f32 %v278_v0, %v534_v43  ;;  %v2812_v60 = vmul.f32 %v774_v54, %v774_v54 }
  0x9a   : > { %v532_v45 = vld [vmem:[%s2520_s19 + $0x88] sm:$0xff]  ;;  %v285_v33 = vld [vmem:[%s2514_s23 + $0xd0] sm:$0xff]  ;;  %v286_v63 = vld [vmem:[%s2514_s23 + $0xd8] sm:$0xff]  ;;  %5811 = vst [vmem:[#allocation62_spill] sm:$0xff] %v2798_v35  ;;  %v2808_v48 = vsub.f32 %v277_v1, %v533_v44  ;;  %v2826_v54 = vmul.f32 %v775_v53, %v775_v53 }
  0x9b   : > { %v287_v42 = vld [vmem:[%s2514_s23 + $0xe0] sm:$0xff]  ;;  %v536_v40 = vld [vmem:[%s2520_s19 + $0xa8] sm:$0xff]  ;;  %v537_v38 = vld [vmem:[%s2520_s19 + $0xb0] sm:$0xff]  ;;  %v2806_v49 = vsub.f32 %v276_v3, %v532_v45  ;;  %5812 = vst [vmem:[#allocation63_spill] sm:$0xff] %v2812_v60  ;;  %v2820_v45 = vsub.f32 %v279_v24, %v535_v41  ;;  %v2834_v41 = vsub.f32 %v282_v55, %v538_v26 }
  0x9c   : > { %v288_v51 = vld [vmem:[%s2514_s23 + $0xe8] sm:$0xff]  ;;  %v289_v59 = vld [vmem:[%s2514_s23 + $0xf0] sm:$0xff]  ;;  %v290_v5 = vld [vmem:[%s2514_s23 + $0xf8] sm:$0xff]  ;;  %v2822_v44 = vsub.f32 %v280_v9, %v536_v40  ;;  %v2824_v43 = vsub.f32 %v281_v50, %v537_v38  ;;  %5813 = vst [vmem:[#allocation64_spill] sm:$0xff] %v2826_v54  ;;  %v2838_v38 = vsub.f32 %v284_v57, %v540_v21  ;;  %v2842_v50 = vmul.f32 %v2749_v46, %v2749_v46 }
  0x9d   : > { %v539_v22 = vld [vmem:[%s2520_s19 + $0xc0] sm:$0xff]  ;;  %v292_v23 = vld [vmem:[%s2514_s23 + $0x108] sm:$0xff]  ;;  %v293_v6 = vld [vmem:[%s2514_s23 + $0x110] sm:$0xff]  ;;  %v2858_v46 = vmul.f32 %v2751_v11, %v2751_v11 }
  0x9e   : > { %v291_v36 = vld [vmem:[%s2514_s23 + $0x100] sm:$0xff]  ;;  %v541_v39 = vld [vmem:[%s2520_s19 + $0xd0] sm:$0xff]  ;;  %v542_v31 = vld [vmem:[%s2520_s19 + $0xd8] sm:$0xff]  ;;  %v2836_v40 = vsub.f32 %v283_v56, %v539_v22  ;;  %5814 = vst [vmem:[#allocation65_spill] sm:$0xff] %v2842_v50 }
  0x9f   : > { %v543_v20 = vld [vmem:[%s2520_s19 + $0xe0] sm:$0xff]  ;;  %v294_v61 = vld [vmem:[%s2514_s23 + $0x118] sm:$0xff]  ;;  %v296_v32 = vld [vmem:[%s2514_s23 + $0x128] sm:$0xff]  ;;  %v2850_v55 = vsub.f32 %v285_v33, %v541_v39  ;;  %v2852_v22 = vsub.f32 %v286_v63, %v542_v31  ;;  %5815 = vst [vmem:[#allocation66_spill] sm:$0xff] %v2858_v46 }
  0xa0   : > { %v295_v62 = vld [vmem:[%s2514_s23 + $0x120] sm:$0xff]  ;;  %v544_v35 = vld [vmem:[%s2520_s19 + $0xe8] sm:$0xff]  ;;  %v545_v18 = vld [vmem:[%s2520_s19 + $0xf0] sm:$0xff]  ;;  %v2854_v21 = vsub.f32 %v287_v42, %v543_v20  ;;  %v2874_v42 = vmul.f32 %v2753_v12, %v2753_v12  ;;  %v2890_v12 = vmul.f32 %v2764_v29, %v2764_v29  ;;  %v2906_v29 = vmul.f32 %v2766_v28, %v2766_v28 }
  0xa1   : > { %v546_v17 = vld [vmem:[%s2520_s19 + $0xf8] sm:$0xff]  ;;  %v297_v0 = vld [vmem:[%s2514_s23 + $0x130] sm:$0xff]  ;;  %v299_v3 = vld [vmem:[%s2514_s23 + $0x140] sm:$0xff]  ;;  %v2866_v39 = vsub.f32 %v288_v51, %v544_v35  ;;  %v2868_v31 = vsub.f32 %v289_v59, %v545_v18  ;;  %v2922_v28 = vmul.f32 %v2768_v30, %v2768_v30  ;;  %v2938_v30 = vmul.f32 %v2778_v27, %v2778_v27 }
  0xa2   : > { %v298_v1 = vld [vmem:[%s2514_s23 + $0x138] sm:$0xff]  ;;  %v547_v60 = vld [vmem:[%s2520_s19 + $0x100] sm:$0xff]  ;;  %v548_v19 = vld [vmem:[%s2520_s19 + $0x108] sm:$0xff]  ;;  %v2870_v20 = vsub.f32 %v290_v5, %v546_v17  ;;  %5816 = vst [vmem:[#allocation67_spill] sm:$0xff] %v2874_v42  ;;  %v2954_v27 = vmul.f32 %v2780_v25, %v2780_v25  ;;  %v2970_v25 = vmul.f32 %v2782_v37, %v2782_v37  ;;  %v2986_v37 = vmul.f32 %v2792_v10, %v2792_v10 }
  0xa3   : > { %v549_v52 = vld [vmem:[%s2520_s19 + $0x110] sm:$0xff]  ;;  %v300_v53 = vld [vmem:[%s2514_s23 + $0x148] sm:$0xff]  ;;  %v302_v24 = vld [vmem:[%s2514_s23 + $0x158] sm:$0xff]  ;;  %v2882_v35 = vsub.f32 %v291_v36, %v547_v60  ;;  %v2884_v18 = vsub.f32 %v292_v23, %v548_v19  ;;  %5818 = vst [vmem:[#allocation69_spill] sm:$0xff] %v2890_v12  ;;  %v3002_v10 = vmul.f32 %v2794_v58, %v2794_v58  ;;  %v3018_v58 = vmul.f32 %v2796_v34, %v2796_v34 }
  0xa4   : > { %v301_v9 = vld [vmem:[%s2514_s23 + $0x150] sm:$0xff]  ;;  %v550_v54 = vld [vmem:[%s2520_s19 + $0x118] sm:$0xff]  ;;  %v551_v8 = vld [vmem:[%s2520_s19 + $0x120] sm:$0xff]  ;;  %v2886_v17 = vsub.f32 %v293_v6, %v549_v52  ;;  %5821 = vst [vmem:[#allocation72_spill] sm:$0xff] %v2906_v29  ;;  %v3034_v34 = vmul.f32 %v2806_v49, %v2806_v49  ;;  %v3050_v49 = vmul.f32 %v2808_v48, %v2808_v48  ;;  %v3066_v48 = vmul.f32 %v2810_v47, %v2810_v47 }
  0xa5   : > { %v552_v26 = vld [vmem:[%s2520_s19 + $0x128] sm:$0xff]  ;;  %v303_v56 = vld [vmem:[%s2514_s23 + $0x160] sm:$0xff]  ;;  %v305_v50 = vld [vmem:[%s2514_s23 + $0x170] sm:$0xff]  ;;  %v2898_v60 = vsub.f32 %v294_v61, %v550_v54  ;;  %v2900_v19 = vsub.f32 %v295_v62, %v551_v8  ;;  %5824 = vst [vmem:[#allocation75_spill] sm:$0xff] %v2922_v28  ;;  %v3082_v47 = vmul.f32 %v2820_v45, %v2820_v45  ;;  %v3098_v45 = vmul.f32 %v2822_v44, %v2822_v44 }
  0xa6   : > { %v304_v57 = vld [vmem:[%s2514_s23 + $0x168] sm:$0xff]  ;;  %v553_v4 = vld [vmem:[%s2520_s19 + $0x130] sm:$0xff]  ;;  %v554_v7 = vld [vmem:[%s2520_s19 + $0x138] sm:$0xff]  ;;  %5817 = vst [vmem:[#allocation68_spill] sm:$0xff] %v2886_v17  ;;  %v2902_v52 = vsub.f32 %v296_v32, %v552_v26  ;;  %v3114_v44 = vmul.f32 %v2824_v43, %v2824_v43  ;;  %v3130_v43 = vmul.f32 %v2834_v41, %v2834_v41  ;;  %v3146_v41 = vmul.f32 %v2836_v40, %v2836_v40 }
  0xa7   : > { %v555_v33 = vld [vmem:[%s2520_s19 + $0x140] sm:$0xff]  ;;  %v306_v11 = vld [vmem:[%s2514_s23 + $0x178] sm:$0xff]  ;;  %v308_v46 = vld [vmem:[%s2514_s23 + $0x188] sm:$0xff]  ;;  %5819 = vst [vmem:[#allocation70_spill] sm:$0xff] %v2900_v19  ;;  %v2914_v54 = vsub.f32 %v297_v0, %v553_v4  ;;  %v2916_v8 = vsub.f32 %v298_v1, %v554_v7  ;;  %v3162_v40 = vmul.f32 %v2838_v38, %v2838_v38  ;;  %v3178_v38 = vmul.f32 %v2850_v55, %v2850_v55 }
  0xa8   : > { %v307_v63 = vld [vmem:[%s2514_s23 + $0x180] sm:$0xff]  ;;  %v556_v16 = vld [vmem:[%s2520_s19 + $0x148] sm:$0xff]  ;;  %v557_v15 = vld [vmem:[%s2520_s19 + $0x150] sm:$0xff]  ;;  %5820 = vst [vmem:[#allocation71_spill] sm:$0xff] %v2902_v52  ;;  %v2918_v62 = vsub.f32 %v299_v3, %v555_v33  ;;  %v3194_v55 = vmul.f32 %v2852_v22, %v2852_v22  ;;  %v3210_v22 = vmul.f32 %v2854_v21, %v2854_v21  ;;  %v3226_v21 = vmul.f32 %v2866_v39, %v2866_v39 }
  0xa9   : > { %v558_v51 = vld [vmem:[%s2520_s19 + $0x158] sm:$0xff]  ;;  %v309_v59 = vld [vmem:[%s2514_s23 + $0x190] sm:$0xff]  ;;  %v311_v42 = vld [vmem:[%s2514_s23 + $0x1a0] sm:$0xff]  ;;  %5822 = vst [vmem:[#allocation73_spill] sm:$0xff] %v2916_v8  ;;  %v2930_v0 = vsub.f32 %v300_v53, %v556_v16  ;;  %v2932_v7 = vsub.f32 %v301_v9, %v557_v15  ;;  %v2948_v15 = vsub.f32 %v304_v57, %v560_v14  ;;  %v3242_v39 = vmul.f32 %v2868_v31, %v2868_v31 }
  0xaa   : > { %v310_v5 = vld [vmem:[%s2514_s23 + $0x198] sm:$0xff]  ;;  %v559_v2 = vld [vmem:[%s2520_s19 + $0x160] sm:$0xff]  ;;  %v561_v36 = vld [vmem:[%s2520_s19 + $0x170] sm:$0xff]  ;;  %5823 = vst [vmem:[#allocation74_spill] sm:$0xff] %v2918_v62  ;;  %v2934_v1 = vsub.f32 %v302_v24, %v558_v51  ;;  %v3258_v31 = vmul.f32 %v2870_v20, %v2870_v20  ;;  %v3274_v20 = vmul.f32 %v2882_v35, %v2882_v35  ;;  %v3290_v35 = vmul.f32 %v2884_v18, %v2884_v18 }
  0xab   : > { %v312_v23 = vld [vmem:[%s2514_s23 + $0x1a8] sm:$0xff]  ;;  %v313_v6 = vld [vmem:[%s2514_s23 + $0x1b0] sm:$0xff]  ;;  %v314_v12 = vld [vmem:[%s2514_s23 + $0x1b8] sm:$0xff]  ;;  %5825 = vst [vmem:[#allocation76_spill] sm:$0xff] %v2932_v7  ;;  %v2946_v53 = vsub.f32 %v303_v56, %v559_v2  ;;  %v2950_v9 = vsub.f32 %v305_v50, %v561_v36 }
  0xac   : > { %v562_v13 = vld [vmem:[%s2520_s19 + $0x178] sm:$0xff]  ;;  %v563_v17 = vld [vmem:[%s2520_s19 + $0x180] sm:$0xff]  ;;  %v564_v61 = vld [vmem:[%s2520_s19 + $0x188] sm:$0xff]  ;;  %5826 = vst [vmem:[#allocation77_spill] sm:$0xff] %v2934_v1 }
  0xad   : > { %v315_v32 = vld [vmem:[%s2514_s23 + $0x1c0] sm:$0xff]  ;;  %v316_v26 = vld [vmem:[%s2514_s23 + $0x1c8] sm:$0xff]  ;;  %v317_v29 = vld [vmem:[%s2514_s23 + $0x1d0] sm:$0xff]  ;;  %5827 = vst [vmem:[#allocation78_spill] sm:$0xff] %v2938_v30  ;;  %v2962_v56 = vsub.f32 %v306_v11, %v562_v13  ;;  %v2964_v14 = vsub.f32 %v307_v63, %v563_v17  ;;  %v2966_v50 = vsub.f32 %v308_v46, %v564_v61 }
  0xae   : > { %v565_v52 = vld [vmem:[%s2520_s19 + $0x190] sm:$0xff]  ;;  %v566_v19 = vld [vmem:[%s2520_s19 + $0x198] sm:$0xff]  ;;  %v567_v4 = vld [vmem:[%s2520_s19 + $0x1a0] sm:$0xff]  ;;  %5828 = vst [vmem:[#allocation79_spill] sm:$0xff] %v2948_v15 }
  0xaf   : > { %v318_v3 = vld [vmem:[%s2514_s23 + $0x1d8] sm:$0xff]  ;;  %v319_v33 = vld [vmem:[%s2514_s23 + $0x1e0] sm:$0xff]  ;;  %v320_v28 = vld [vmem:[%s2514_s23 + $0x1e8] sm:$0xff]  ;;  %5829 = vst [vmem:[#allocation80_spill] sm:$0xff] %v2950_v9  ;;  %v2978_v11 = vsub.f32 %v309_v59, %v565_v52  ;;  %v2980_v63 = vsub.f32 %v310_v5, %v566_v19  ;;  %v2982_v46 = vsub.f32 %v311_v42, %v567_v4 }
  0xb0   : > { %v568_v62 = vld [vmem:[%s2520_s19 + $0x1a8] sm:$0xff]  ;;  %v569_v8 = vld [vmem:[%s2520_s19 + $0x1b0] sm:$0xff]  ;;  %v570_v16 = vld [vmem:[%s2520_s19 + $0x1b8] sm:$0xff]  ;;  %5830 = vst [vmem:[#allocation81_spill] sm:$0xff] %v2954_v27 }
  0xb1   : > { %v321_v24 = vld [vmem:[%s2514_s23 + $0x1f0] sm:$0xff]  ;;  %v322_v51 = vld [vmem:[%s2514_s23 + $0x1f8] sm:$0xff]  ;;  %v323_v30 = vld [vmem:[%s2514_s23 + $0x200] sm:$0xff]  ;;  %5831 = vst [vmem:[#allocation82_spill] sm:$0xff] %v2964_v14  ;;  %v2994_v52 = vsub.f32 %v312_v23, %v568_v62  ;;  %v2996_v5 = vsub.f32 %v313_v6, %v569_v8  ;;  %v2998_v42 = vsub.f32 %v314_v12, %v570_v16 }
  0xb2   : > { %v571_v1 = vld [vmem:[%s2520_s19 + $0x1c0] sm:$0xff]  ;;  %v572_v7 = vld [vmem:[%s2520_s19 + $0x1c8] sm:$0xff]  ;;  %v573_v2 = vld [vmem:[%s2520_s19 + $0x1d0] sm:$0xff]  ;;  %5832 = vst [vmem:[#allocation83_spill] sm:$0xff] %v2966_v50 }
  0xb3   : > { %5833 = vst [vmem:[#allocation84_spill] sm:$0xff] %v2970_v25  ;;  %v324_v57 = vld [vmem:[%s2514_s23 + $0x208] sm:$0xff]  ;;  %v325_v36 = vld [vmem:[%s2514_s23 + $0x210] sm:$0xff]  ;;  %v326_v27 = vld [vmem:[%s2514_s23 + $0x218] sm:$0xff]  ;;  %v3010_v62 = vsub.f32 %v315_v32, %v571_v1  ;;  %v3012_v6 = vsub.f32 %v316_v26, %v572_v7  ;;  %v3014_v12 = vsub.f32 %v317_v29, %v573_v2 }
  0xb4   : > { %v574_v9 = vld [vmem:[%s2520_s19 + $0x1d8] sm:$0xff]  ;;  %v575_v15 = vld [vmem:[%s2520_s19 + $0x1e0] sm:$0xff]  ;;  %v576_v13 = vld [vmem:[%s2520_s19 + $0x1e8] sm:$0xff]  ;;  %5834 = vst [vmem:[#allocation85_spill] sm:$0xff] %v2980_v63 }
  0xb5   : > { %5835 = vst [vmem:[#allocation86_spill] sm:$0xff] %v2982_v46  ;;  %5836 = vst [vmem:[#allocation87_spill] sm:$0xff] %v2986_v37  ;;  %v327_v17 = vld [vmem:[%s2514_s23 + $0x220] sm:$0xff]  ;;  %v328_v61 = vld [vmem:[%s2514_s23 + $0x228] sm:$0xff]  ;;  %v3026_v1 = vsub.f32 %v318_v3, %v574_v9  ;;  %v3028_v26 = vsub.f32 %v319_v33, %v575_v15  ;;  %v3030_v29 = vsub.f32 %v320_v28, %v576_v13 }
  0xb6   : > { %v329_v25 = vld [vmem:[%s2514_s23 + $0x230] sm:$0xff]  ;;  %v578_v14 = vld [vmem:[%s2520_s19 + $0x1f8] sm:$0xff]  ;;  %v579_v59 = vld [vmem:[%s2520_s19 + $0x200] sm:$0xff]  ;;  %5837 = vst [vmem:[#allocation88_spill] sm:$0xff] %v2996_v5 }
  0xb7   : > { %v577_v50 = vld [vmem:[%s2520_s19 + $0x1f0] sm:$0xff]  ;;  %5838 = vst [vmem:[#allocation89_spill] sm:$0xff] %v2998_v42  ;;  %5839 = vst [vmem:[#allocation90_spill] sm:$0xff] %v3002_v10  ;;  %v330_v19 = vld [vmem:[%s2514_s23 + $0x238] sm:$0xff]  ;;  %v3044_v33 = vsub.f32 %v322_v51, %v578_v14  ;;  %v3046_v28 = vsub.f32 %v323_v30, %v579_v59 }
  0xb8   : > { %v331_v4 = vld [vmem:[%s2514_s23 + $0x240] sm:$0xff]  ;;  %v332_v37 = vld [vmem:[%s2514_s23 + $0x248] sm:$0xff]  ;;  %v581_v63 = vld [vmem:[%s2520_s19 + $0x210] sm:$0xff]  ;;  %5840 = vst [vmem:[#allocation91_spill] sm:$0xff] %v3012_v6  ;;  %v3042_v9 = vsub.f32 %v321_v24, %v577_v50 }
  0xb9   : > { %v580_v46 = vld [vmem:[%s2520_s19 + $0x208] sm:$0xff]  ;;  %v582_v23 = vld [vmem:[%s2520_s19 + $0x218] sm:$0xff]  ;;  %5841 = vst [vmem:[#allocation92_spill] sm:$0xff] %v3014_v12  ;;  %5842 = vst [vmem:[#allocation93_spill] sm:$0xff] %v3018_v58  ;;  %v3060_v51 = vsub.f32 %v325_v36, %v581_v63 }
  0xba   : > { %v333_v8 = vld [vmem:[%s2514_s23 + $0x250] sm:$0xff]  ;;  %v334_v16 = vld [vmem:[%s2514_s23 + $0x258] sm:$0xff]  ;;  %v335_v10 = vld [vmem:[%s2514_s23 + $0x260] sm:$0xff]  ;;  %5843 = vst [vmem:[#allocation94_spill] sm:$0xff] %v3028_v26  ;;  %v3058_v50 = vsub.f32 %v324_v57, %v580_v46  ;;  %v3062_v30 = vsub.f32 %v326_v27, %v582_v23 }
  0xbb   : > { %v583_v42 = vld [vmem:[%s2520_s19 + $0x220] sm:$0xff]  ;;  %v584_v5 = vld [vmem:[%s2520_s19 + $0x228] sm:$0xff]  ;;  %v585_v32 = vld [vmem:[%s2520_s19 + $0x230] sm:$0xff]  ;;  %5844 = vst [vmem:[#allocation95_spill] sm:$0xff] %v3030_v29 }
  0xbc   : > { %5845 = vst [vmem:[#allocation96_spill] sm:$0xff] %v3034_v34  ;;  %v336_v7 = vld [vmem:[%s2514_s23 + $0x268] sm:$0xff]  ;;  %v337_v2 = vld [vmem:[%s2514_s23 + $0x270] sm:$0xff]  ;;  %v338_v58 = vld [vmem:[%s2514_s23 + $0x278] sm:$0xff]  ;;  %v3074_v46 = vsub.f32 %v327_v17, %v583_v42  ;;  %v3076_v36 = vsub.f32 %v328_v61, %v584_v5  ;;  %v3078_v27 = vsub.f32 %v329_v25, %v585_v32 }
  0xbd   : > { %v586_v12 = vld [vmem:[%s2520_s19 + $0x238] sm:$0xff]  ;;  %v587_v6 = vld [vmem:[%s2520_s19 + $0x240] sm:$0xff]  ;;  %v588_v3 = vld [vmem:[%s2520_s19 + $0x248] sm:$0xff]  ;;  %5846 = vst [vmem:[#allocation97_spill] sm:$0xff] %v3044_v33 }
  0xbe   : > { %5847 = vst [vmem:[#allocation98_spill] sm:$0xff] %v3046_v28  ;;  %5848 = vst [vmem:[#allocation99_spill] sm:$0xff] %v3050_v49  ;;  %v339_v15 = vld [vmem:[%s2514_s23 + $0x280] sm:$0xff]  ;;  %v340_v13 = vld [vmem:[%s2514_s23 + $0x288] sm:$0xff]  ;;  %v3090_v42 = vsub.f32 %v330_v19, %v586_v12  ;;  %v3092_v61 = vsub.f32 %v331_v4, %v587_v6  ;;  %v3094_v25 = vsub.f32 %v332_v37, %v588_v3 }
  0xbf   : > { %v341_v34 = vld [vmem:[%s2514_s23 + $0x290] sm:$0xff]  ;;  %v590_v26 = vld [vmem:[%s2520_s19 + $0x258] sm:$0xff]  ;;  %v591_v24 = vld [vmem:[%s2520_s19 + $0x260] sm:$0xff]  ;;  %5849 = vst [vmem:[#allocation100_spill] sm:$0xff] %v3060_v51 }
  0xc0   : > { %v589_v29 = vld [vmem:[%s2520_s19 + $0x250] sm:$0xff]  ;;  %5850 = vst [vmem:[#allocation101_spill] sm:$0xff] %v3062_v30  ;;  %5851 = vst [vmem:[#allocation102_spill] sm:$0xff] %v3066_v48  ;;  %v342_v14 = vld [vmem:[%s2514_s23 + $0x298] sm:$0xff]  ;;  %v3108_v4 = vsub.f32 %v334_v16, %v590_v26  ;;  %v3110_v37 = vsub.f32 %v335_v10, %v591_v24 }
  0xc1   : > { %v343_v59 = vld [vmem:[%s2514_s23 + $0x2a0] sm:$0xff]  ;;  %v344_v49 = vld [vmem:[%s2514_s23 + $0x2a8] sm:$0xff]  ;;  %v593_v33 = vld [vmem:[%s2520_s19 + $0x270] sm:$0xff]  ;;  %5852 = vst [vmem:[#allocation103_spill] sm:$0xff] %v3076_v36  ;;  %v3106_v12 = vsub.f32 %v333_v8, %v589_v29 }
  0xc2   : > { %v592_v28 = vld [vmem:[%s2520_s19 + $0x268] sm:$0xff]  ;;  %v594_v57 = vld [vmem:[%s2520_s19 + $0x278] sm:$0xff]  ;;  %5853 = vst [vmem:[#allocation104_spill] sm:$0xff] %v3078_v27  ;;  %5854 = vst [vmem:[#allocation105_spill] sm:$0xff] %v3082_v47  ;;  %v3124_v16 = vsub.f32 %v337_v2, %v593_v33 }
  0xc3   : > { %v345_v63 = vld [vmem:[%s2514_s23 + $0x2b0] sm:$0xff]  ;;  %v346_v23 = vld [vmem:[%s2514_s23 + $0x2b8] sm:$0xff]  ;;  %v347_v48 = vld [vmem:[%s2514_s23 + $0x2c0] sm:$0xff]  ;;  %5855 = vst [vmem:[#allocation106_spill] sm:$0xff] %v3092_v61  ;;  %v3122_v29 = vsub.f32 %v336_v7, %v592_v28  ;;  %v3126_v10 = vsub.f32 %v338_v58, %v594_v57 }
  0xc4   : > { %v595_v30 = vld [vmem:[%s2520_s19 + $0x280] sm:$0xff]  ;;  %v596_v51 = vld [vmem:[%s2520_s19 + $0x288] sm:$0xff]  ;;  %v597_v17 = vld [vmem:[%s2520_s19 + $0x290] sm:$0xff]  ;;  %5856 = vst [vmem:[#allocation107_spill] sm:$0xff] %v3094_v25 }
  0xc5   : > { %5857 = vst [vmem:[#allocation108_spill] sm:$0xff] %v3098_v45  ;;  %v348_v5 = vld [vmem:[%s2514_s23 + $0x2c8] sm:$0xff]  ;;  %v349_v32 = vld [vmem:[%s2514_s23 + $0x2d0] sm:$0xff]  ;;  %v350_v47 = vld [vmem:[%s2514_s23 + $0x2d8] sm:$0xff]  ;;  %v3138_v28 = vsub.f32 %v339_v15, %v595_v30  ;;  %v3140_v2 = vsub.f32 %v340_v13, %v596_v51  ;;  %v3142_v58 = vsub.f32 %v341_v34, %v597_v17 }
  0xc6   : > { %v598_v27 = vld [vmem:[%s2520_s19 + $0x298] sm:$0xff]  ;;  %v599_v36 = vld [vmem:[%s2520_s19 + $0x2a0] sm:$0xff]  ;;  %v600_v19 = vld [vmem:[%s2520_s19 + $0x2a8] sm:$0xff]  ;;  %5858 = vst [vmem:[#allocation109_spill] sm:$0xff] %v3108_v4 }
  0xc7   : > { %5859 = vst [vmem:[#allocation110_spill] sm:$0xff] %v3110_v37  ;;  %5860 = vst [vmem:[#allocation111_spill] sm:$0xff] %v3114_v44  ;;  %v351_v6 = vld [vmem:[%s2514_s23 + $0x2e0] sm:$0xff]  ;;  %v352_v3 = vld [vmem:[%s2514_s23 + $0x2e8] sm:$0xff]  ;;  %v3154_v30 = vsub.f32 %v342_v14, %v598_v27  ;;  %v3156_v13 = vsub.f32 %v343_v59, %v599_v36  ;;  %v3158_v34 = vsub.f32 %v344_v49, %v600_v19 }
  0xc8   : > { %v353_v45 = vld [vmem:[%s2514_s23 + $0x2f0] sm:$0xff]  ;;  %v602_v61 = vld [vmem:[%s2520_s19 + $0x2b8] sm:$0xff]  ;;  %v603_v8 = vld [vmem:[%s2520_s19 + $0x2c0] sm:$0xff]  ;;  %5861 = vst [vmem:[#allocation112_spill] sm:$0xff] %v3124_v16 }
  0xc9   : > { %v601_v25 = vld [vmem:[%s2520_s19 + $0x2b0] sm:$0xff]  ;;  %5862 = vst [vmem:[#allocation113_spill] sm:$0xff] %v3126_v10  ;;  %5863 = vst [vmem:[#allocation114_spill] sm:$0xff] %v3130_v43  ;;  %v354_v26 = vld [vmem:[%s2514_s23 + $0x2f8] sm:$0xff]  ;;  %v3172_v59 = vsub.f32 %v346_v23, %v602_v61  ;;  %v3174_v49 = vsub.f32 %v347_v48, %v603_v8 }
  0xca   : > { %v355_v24 = vld [vmem:[%s2514_s23 + $0x300] sm:$0xff]  ;;  %v356_v44 = vld [vmem:[%s2514_s23 + $0x308] sm:$0xff]  ;;  %v605_v4 = vld [vmem:[%s2520_s19 + $0x2d0] sm:$0xff]  ;;  %5864 = vst [vmem:[#allocation115_spill] sm:$0xff] %v3140_v2  ;;  %v3170_v27 = vsub.f32 %v345_v63, %v601_v25 }
  0xcb   : > { %v604_v37 = vld [vmem:[%s2520_s19 + $0x2c8] sm:$0xff]  ;;  %v606_v7 = vld [vmem:[%s2520_s19 + $0x2d8] sm:$0xff]  ;;  %5865 = vst [vmem:[#allocation116_spill] sm:$0xff] %v3142_v58  ;;  %5866 = vst [vmem:[#allocation117_spill] sm:$0xff] %v3146_v41  ;;  %v3188_v23 = vsub.f32 %v349_v32, %v605_v4 }
  0xcc   : > { %v357_v33 = vld [vmem:[%s2514_s23 + $0x310] sm:$0xff]  ;;  %v358_v57 = vld [vmem:[%s2514_s23 + $0x318] sm:$0xff]  ;;  %v359_v43 = vld [vmem:[%s2514_s23 + $0x320] sm:$0xff]  ;;  %5867 = vst [vmem:[#allocation118_spill] sm:$0xff] %v3156_v13  ;;  %v3186_v25 = vsub.f32 %v348_v5, %v604_v37  ;;  %v3190_v48 = vsub.f32 %v350_v47, %v606_v7 }
  0xcd   : > { %v607_v10 = vld [vmem:[%s2520_s19 + $0x2e0] sm:$0xff]  ;;  %v608_v16 = vld [vmem:[%s2520_s19 + $0x2e8] sm:$0xff]  ;;  %v609_v15 = vld [vmem:[%s2520_s19 + $0x2f0] sm:$0xff]  ;;  %5868 = vst [vmem:[#allocation119_spill] sm:$0xff] %v3158_v34 }
  0xce   : > { %5869 = vst [vmem:[#allocation120_spill] sm:$0xff] %v3162_v40  ;;  %v360_v51 = vld [vmem:[%s2514_s23 + $0x328] sm:$0xff]  ;;  %v361_v17 = vld [vmem:[%s2514_s23 + $0x330] sm:$0xff]  ;;  %v362_v41 = vld [vmem:[%s2514_s23 + $0x338] sm:$0xff]  ;;  %v3202_v37 = vsub.f32 %v351_v6, %v607_v10  ;;  %v3204_v32 = vsub.f32 %v352_v3, %v608_v16  ;;  %v3206_v47 = vsub.f32 %v353_v45, %v609_v15 }
  0xcf   : > { %v610_v58 = vld [vmem:[%s2520_s19 + $0x2f8] sm:$0xff]  ;;  %v611_v2 = vld [vmem:[%s2520_s19 + $0x300] sm:$0xff]  ;;  %v612_v14 = vld [vmem:[%s2520_s19 + $0x308] sm:$0xff]  ;;  %5870 = vst [vmem:[#allocation121_spill] sm:$0xff] %v3172_v59 }
  0xd0   : > { %5871 = vst [vmem:[#allocation122_spill] sm:$0xff] %v3174_v49  ;;  %5872 = vst [vmem:[#allocation123_spill] sm:$0xff] %v3178_v38  ;;  %v363_v36 = vld [vmem:[%s2514_s23 + $0x340] sm:$0xff]  ;;  %v364_v19 = vld [vmem:[%s2514_s23 + $0x348] sm:$0xff]  ;;  %v3218_v10 = vsub.f32 %v354_v26, %v610_v58  ;;  %v3220_v3 = vsub.f32 %v355_v24, %v611_v2  ;;  %v3222_v45 = vsub.f32 %v356_v44, %v612_v14 }
  0xd1   : > { %v365_v40 = vld [vmem:[%s2514_s23 + $0x350] sm:$0xff]  ;;  %v614_v13 = vld [vmem:[%s2520_s19 + $0x318] sm:$0xff]  ;;  %v615_v63 = vld [vmem:[%s2520_s19 + $0x320] sm:$0xff]  ;;  %5873 = vst [vmem:[#allocation124_spill] sm:$0xff] %v3188_v23 }
  0xd2   : > { %v613_v34 = vld [vmem:[%s2520_s19 + $0x310] sm:$0xff]  ;;  %5874 = vst [vmem:[#allocation125_spill] sm:$0xff] %v3190_v48  ;;  %5875 = vst [vmem:[#allocation126_spill] sm:$0xff] %v3194_v55  ;;  %v366_v61 = vld [vmem:[%s2514_s23 + $0x358] sm:$0xff]  ;;  %v3236_v24 = vsub.f32 %v358_v57, %v614_v13  ;;  %v3238_v44 = vsub.f32 %v359_v43, %v615_v63 }
  0xd3   : > { %v367_v8 = vld [vmem:[%s2514_s23 + $0x360] sm:$0xff]  ;;  %v368_v38 = vld [vmem:[%s2514_s23 + $0x368] sm:$0xff]  ;;  %v617_v59 = vld [vmem:[%s2520_s19 + $0x330] sm:$0xff]  ;;  %5876 = vst [vmem:[#allocation127_spill] sm:$0xff] %v3204_v32  ;;  %v3234_v58 = vsub.f32 %v357_v33, %v613_v34 }
  0xd4   : > { %v616_v49 = vld [vmem:[%s2520_s19 + $0x328] sm:$0xff]  ;;  %v618_v5 = vld [vmem:[%s2520_s19 + $0x338] sm:$0xff]  ;;  %5877 = vst [vmem:[#allocation128_spill] sm:$0xff] %v3206_v47  ;;  %5878 = vst [vmem:[#allocation129_spill] sm:$0xff] %v3210_v22  ;;  %v3252_v57 = vsub.f32 %v361_v17, %v617_v59 }
  0xd5   : > { %v369_v4 = vld [vmem:[%s2514_s23 + $0x370] sm:$0xff]  ;;  %v370_v7 = vld [vmem:[%s2514_s23 + $0x378] sm:$0xff]  ;;  %v371_v55 = vld [vmem:[%s2514_s23 + $0x380] sm:$0xff]  ;;  %5879 = vst [vmem:[#allocation130_spill] sm:$0xff] %v3220_v3  ;;  %v3250_v34 = vsub.f32 %v360_v51, %v616_v49  ;;  %v3254_v43 = vsub.f32 %v362_v41, %v618_v5 }
  0xd6   : > { %v619_v48 = vld [vmem:[%s2520_s19 + $0x340] sm:$0xff]  ;;  %v620_v23 = vld [vmem:[%s2520_s19 + $0x348] sm:$0xff]  ;;  %v621_v6 = vld [vmem:[%s2520_s19 + $0x350] sm:$0xff]  ;;  %5880 = vst [vmem:[#allocation131_spill] sm:$0xff] %v3222_v45 }
  0xd7   : > { %5881 = vst [vmem:[#allocation132_spill] sm:$0xff] %v3226_v21  ;;  %v372_v16 = vld [vmem:[%s2514_s23 + $0x388] sm:$0xff]  ;;  %v373_v15 = vld [vmem:[%s2514_s23 + $0x390] sm:$0xff]  ;;  %v374_v22 = vld [vmem:[%s2514_s23 + $0x398] sm:$0xff]  ;;  %v3266_v49 = vsub.f32 %v363_v36, %v619_v48  ;;  %v3268_v17 = vsub.f32 %v364_v19, %v620_v23  ;;  %v3270_v41 = vsub.f32 %v365_v40, %v621_v6 }
  0xd8   : > { %v622_v47 = vld [vmem:[%s2520_s19 + $0x358] sm:$0xff]  ;;  %v623_v32 = vld [vmem:[%s2520_s19 + $0x360] sm:$0xff]  ;;  %v624_v26 = vld [vmem:[%s2520_s19 + $0x368] sm:$0xff]  ;;  %5882 = vst [vmem:[#allocation133_spill] sm:$0xff] %v3236_v24 }
  0xd9   : > { %5883 = vst [vmem:[#allocation134_spill] sm:$0xff] %v3238_v44  ;;  %5884 = vst [vmem:[#allocation135_spill] sm:$0xff] %v3242_v39  ;;  %v375_v2 = vld [vmem:[%s2514_s23 + $0x3a0] sm:$0xff]  ;;  %v376_v14 = vld [vmem:[%s2514_s23 + $0x3a8] sm:$0xff]  ;;  %v3282_v48 = vsub.f32 %v366_v61, %v622_v47  ;;  %v3284_v19 = vsub.f32 %v367_v8, %v623_v32  ;;  %v3286_v40 = vsub.f32 %v368_v38, %v624_v26 }
  0xda   : > { %v377_v21 = vld [vmem:[%s2514_s23 + $0x3b0] sm:$0xff]  ;;  %v626_v3 = vld [vmem:[%s2520_s19 + $0x378] sm:$0xff]  ;;  %v627_v33 = vld [vmem:[%s2520_s19 + $0x380] sm:$0xff]  ;;  %5885 = vst [vmem:[#allocation136_spill] sm:$0xff] %v3252_v57 }
  0xdb   : > { %v625_v45 = vld [vmem:[%s2520_s19 + $0x370] sm:$0xff]  ;;  %5886 = vst [vmem:[#allocation137_spill] sm:$0xff] %v3254_v43  ;;  %5887 = vst [vmem:[#allocation138_spill] sm:$0xff] %v3258_v31  ;;  %v378_v13 = vld [vmem:[%s2514_s23 + $0x3b8] sm:$0xff]  ;;  %v3300_v8 = vsub.f32 %v370_v7, %v626_v3  ;;  %v3302_v38 = vsub.f32 %v371_v55, %v627_v33  ;;  %v3322_v3 = vmul.f32 %v2898_v60, %v2898_v60 }
  0xdc   : > { %v379_v63 = vld [vmem:[%s2514_s23 + $0x3c0] sm:$0xff]  ;;  %v380_v39 = vld [vmem:[%s2514_s23 + $0x3c8] sm:$0xff]  ;;  %v629_v24 = vld [vmem:[%s2520_s19 + $0x390] sm:$0xff]  ;;  %5888 = vst [vmem:[#allocation139_spill] sm:$0xff] %v3268_v17  ;;  %v3298_v47 = vsub.f32 %v369_v4, %v625_v45 }
  0xdd   : > { %v628_v44 = vld [vmem:[%s2520_s19 + $0x388] sm:$0xff]  ;;  %v630_v51 = vld [vmem:[%s2520_s19 + $0x398] sm:$0xff]  ;;  %5889 = vst [vmem:[#allocation140_spill] sm:$0xff] %v3270_v41  ;;  %5890 = vst [vmem:[#allocation141_spill] sm:$0xff] %v3274_v20  ;;  %v3316_v7 = vsub.f32 %v373_v15, %v629_v24 }
  0xde   : > { %v381_v59 = vld [vmem:[%s2514_s23 + $0x3d0] sm:$0xff]  ;;  %v382_v5 = vld [vmem:[%s2514_s23 + $0x3d8] sm:$0xff]  ;;  %v383_v31 = vld [vmem:[%s2514_s23 + $0x3e0] sm:$0xff]  ;;  %5891 = vst [vmem:[#allocation142_spill] sm:$0xff] %v3282_v48  ;;  %v3314_v45 = vsub.f32 %v372_v16, %v628_v44  ;;  %v3318_v55 = vsub.f32 %v374_v22, %v630_v51 }
  0xdf   : > { %v631_v43 = vld [vmem:[%s2520_s19 + $0x3a0] sm:$0xff]  ;;  %v632_v57 = vld [vmem:[%s2520_s19 + $0x3a8] sm:$0xff]  ;;  %v633_v36 = vld [vmem:[%s2520_s19 + $0x3b0] sm:$0xff]  ;;  %5892 = vst [vmem:[#allocation143_spill] sm:$0xff] %v3284_v19 }
  0xe0   : > { %5893 = vst [vmem:[#allocation144_spill] sm:$0xff] %v3286_v40  ;;  %5894 = vst [vmem:[#allocation145_spill] sm:$0xff] %v3290_v35  ;;  %v384_v23 = vld [vmem:[%s2514_s23 + $0x3e8] sm:$0xff]  ;;  %v385_v6 = vld [vmem:[%s2514_s23 + $0x3f0] sm:$0xff]  ;;  %v3330_v44 = vsub.f32 %v375_v2, %v631_v43  ;;  %v3332_v15 = vsub.f32 %v376_v14, %v632_v57  ;;  %v3334_v22 = vsub.f32 %v377_v21, %v633_v36 }
  0xe1   : > { %v386_v20 = vld [vmem:[%s2514_s23 + $0x3f8] sm:$0xff]  ;;  %v635_v17 = vld [vmem:[%s2520_s19 + $0x3c0] sm:$0xff]  ;;  %v636_v61 = vld [vmem:[%s2520_s19 + $0x3c8] sm:$0xff]  ;;  %5895 = vst [vmem:[#allocation146_spill] sm:$0xff] %v3300_v8 }
  0xe2   : > { %v634_v41 = vld [vmem:[%s2520_s19 + $0x3b8] sm:$0xff]  ;;  %5896 = vst [vmem:[#allocation147_spill] sm:$0xff] %v3302_v38  ;;  %v5897_v32 = vld [vmem:[#allocation68_spill] sm:$0xff]  ;;  %v388_v35 = vld [vmem:[%s2514_s23 + $0x408] sm:$0xff]  ;;  %v3348_v14 = vsub.f32 %v379_v63, %v635_v17  ;;  %v3350_v21 = vsub.f32 %v380_v39, %v636_v61  ;;  %v3370_v17 = vmul.f32 %v2914_v54, %v2914_v54 }
  0xe3   : > { %v3306_v18 = vmul.f32 %v5897_v32, %v5897_v32  ;;  %v387_v26 = vld [vmem:[%s2514_s23 + $0x400] sm:$0xff]  ;;  %v389_v40 = vld [vmem:[%s2514_s23 + $0x410] sm:$0xff]  ;;  %v638_v48 = vld [vmem:[%s2520_s19 + $0x3d8] sm:$0xff]  ;;  %5899 = vst [vmem:[#allocation148_spill] sm:$0xff] %v3314_v45  ;;  %v3346_v43 = vsub.f32 %v378_v13, %v634_v41 }
  0xe4   : > { %v637_v19 = vld [vmem:[%s2520_s19 + $0x3d0] sm:$0xff]  ;;  %v639_v4 = vld [vmem:[%s2520_s19 + $0x3e0] sm:$0xff]  ;;  %5900 = vst [vmem:[#allocation149_spill] sm:$0xff] %v3316_v7  ;;  %5901 = vst [vmem:[#allocation150_spill] sm:$0xff] %v3318_v55  ;;  %v3364_v63 = vsub.f32 %v382_v5, %v638_v48 }
  0xe5   : > { %5898 = vst [vmem:[#allocation68_spill] sm:$0xff] %v3306_v18  ;;  %5902 = vst [vmem:[#allocation151_spill] sm:$0xff] %v3322_v3  ;;  %v390_v33 = vld [vmem:[%s2514_s23 + $0x418] sm:$0xff]  ;;  %v391_v32 = vld [vmem:[%s2514_s23 + $0x420] sm:$0xff]  ;;  %v3362_v41 = vsub.f32 %v381_v59, %v637_v19  ;;  %v3366_v39 = vsub.f32 %v383_v31, %v639_v4 }
  0xe6   : > { %v392_v18 = vld [vmem:[%s2514_s23 + $0x428] sm:$0xff]  ;;  %v641_v8 = vld [vmem:[%s2520_s19 + $0x3f0] sm:$0xff]  ;;  %v642_v16 = vld [vmem:[%s2520_s19 + $0x3f8] sm:$0xff]  ;;  %5903 = vst [vmem:[#allocation152_spill] sm:$0xff] %v3330_v44 }
  0xe7   : > { %v640_v38 = vld [vmem:[%s2520_s19 + $0x3e8] sm:$0xff]  ;;  %5904 = vst [vmem:[#allocation153_spill] sm:$0xff] %v3332_v15  ;;  %5905 = vst [vmem:[#allocation154_spill] sm:$0xff] %v3334_v22  ;;  %v5906_v24 = vld [vmem:[#allocation70_spill] sm:$0xff]  ;;  %v3380_v5 = vsub.f32 %v385_v6, %v641_v8  ;;  %v3382_v31 = vsub.f32 %v386_v20, %v642_v16 }
  0xe8   : > { %v3338_v60 = vmul.f32 %v5906_v24, %v5906_v24  ;;  %v393_v51 = vld [vmem:[%s2514_s23 + $0x430] sm:$0xff]  ;;  %v394_v3 = vld [vmem:[%s2514_s23 + $0x438] sm:$0xff]  ;;  %v395_v55 = vld [vmem:[%s2514_s23 + $0x440] sm:$0xff]  ;;  %5908 = vst [vmem:[#allocation155_spill] sm:$0xff] %v3348_v14  ;;  %v3378_v19 = vsub.f32 %v384_v23, %v640_v38 }
  0xe9   : > { %v643_v7 = vld [vmem:[%s2520_s19 + $0x400] sm:$0xff]  ;;  %v644_v45 = vld [vmem:[%s2520_s19 + $0x408] sm:$0xff]  ;;  %v645_v2 = vld [vmem:[%s2520_s19 + $0x410] sm:$0xff]  ;;  %5909 = vst [vmem:[#allocation156_spill] sm:$0xff] %v3350_v21 }
  0xea   : > { %5907 = vst [vmem:[#allocation70_spill] sm:$0xff] %v3338_v60  ;;  %v5910_v57 = vld [vmem:[#allocation71_spill] sm:$0xff]  ;;  %v396_v24 = vld [vmem:[%s2514_s23 + $0x448] sm:$0xff]  ;;  %v397_v60 = vld [vmem:[%s2514_s23 + $0x450] sm:$0xff]  ;;  %v3394_v38 = vsub.f32 %v387_v26, %v643_v7  ;;  %v3396_v6 = vsub.f32 %v388_v35, %v644_v45  ;;  %v3398_v20 = vsub.f32 %v389_v40, %v645_v2  ;;  %v3418_v45 = vmul.f32 %v2930_v0, %v2930_v0 }
  0xeb   : > { %v3354_v36 = vmul.f32 %v5910_v57, %v5910_v57  ;;  %v398_v22 = vld [vmem:[%s2514_s23 + $0x458] sm:$0xff]  ;;  %v647_v44 = vld [vmem:[%s2520_s19 + $0x420] sm:$0xff]  ;;  %v648_v13 = vld [vmem:[%s2520_s19 + $0x428] sm:$0xff]  ;;  %5912 = vst [vmem:[#allocation157_spill] sm:$0xff] %v3362_v41 }
  0xec   : > { %v646_v15 = vld [vmem:[%s2520_s19 + $0x418] sm:$0xff]  ;;  %5913 = vst [vmem:[#allocation158_spill] sm:$0xff] %v3364_v63  ;;  %5914 = vst [vmem:[#allocation159_spill] sm:$0xff] %v3366_v39  ;;  %v399_v61 = vld [vmem:[%s2514_s23 + $0x460] sm:$0xff]  ;;  %v3412_v35 = vsub.f32 %v391_v32, %v647_v44  ;;  %v3414_v40 = vsub.f32 %v392_v18, %v648_v13 }
  0xed   : > { %5911 = vst [vmem:[#allocation71_spill] sm:$0xff] %v3354_v36  ;;  %5915 = vst [vmem:[#allocation160_spill] sm:$0xff] %v3370_v17  ;;  %v400_v57 = vld [vmem:[%s2514_s23 + $0x468] sm:$0xff]  ;;  %v401_v36 = vld [vmem:[%s2514_s23 + $0x470] sm:$0xff]  ;;  %v3410_v7 = vsub.f32 %v390_v33, %v646_v15 }
  0xee   : > { %v649_v21 = vld [vmem:[%s2520_s19 + $0x430] sm:$0xff]  ;;  %v650_v14 = vld [vmem:[%s2520_s19 + $0x438] sm:$0xff]  ;;  %v651_v59 = vld [vmem:[%s2520_s19 + $0x440] sm:$0xff]  ;;  %5916 = vst [vmem:[#allocation161_spill] sm:$0xff] %v3378_v19 }
  0xef   : > { %5917 = vst [vmem:[#allocation162_spill] sm:$0xff] %v3380_v5  ;;  %5918 = vst [vmem:[#allocation163_spill] sm:$0xff] %v3382_v31  ;;  %v5919_v48 = vld [vmem:[#allocation73_spill] sm:$0xff]  ;;  %v402_v4 = vld [vmem:[%s2514_s23 + $0x478] sm:$0xff]  ;;  %v3426_v15 = vsub.f32 %v393_v51, %v649_v21  ;;  %v3428_v32 = vsub.f32 %v394_v3, %v650_v14  ;;  %v3430_v18 = vsub.f32 %v395_v55, %v651_v59 }
  0xf0   : > { %v3386_v54 = vmul.f32 %v5919_v48, %v5919_v48  ;;  %v403_v17 = vld [vmem:[%s2514_s23 + $0x480] sm:$0xff]  ;;  %v404_v39 = vld [vmem:[%s2514_s23 + $0x488] sm:$0xff]  ;;  %v653_v41 = vld [vmem:[%s2520_s19 + $0x450] sm:$0xff]  ;;  %5921 = vst [vmem:[#allocation164_spill] sm:$0xff] %v3396_v6 }
  0xf1   : > { %v652_v63 = vld [vmem:[%s2520_s19 + $0x448] sm:$0xff]  ;;  %v654_v23 = vld [vmem:[%s2520_s19 + $0x458] sm:$0xff]  ;;  %5922 = vst [vmem:[#allocation165_spill] sm:$0xff] %v3398_v20  ;;  %v5923_v8 = vld [vmem:[#allocation74_spill] sm:$0xff]  ;;  %v3444_v3 = vsub.f32 %v397_v60, %v653_v41  ;;  %v3466_v41 = vmul.f32 %v2946_v53, %v2946_v53 }
  0xf2   : > { %5920 = vst [vmem:[#allocation73_spill] sm:$0xff] %v3386_v54  ;;  %v3402_v16 = vmul.f32 %v5923_v8, %v5923_v8  ;;  %v405_v48 = vld [vmem:[%s2514_s23 + $0x490] sm:$0xff]  ;;  %v406_v54 = vld [vmem:[%s2514_s23 + $0x498] sm:$0xff]  ;;  %v407_v31 = vld [vmem:[%s2514_s23 + $0x4a0] sm:$0xff]  ;;  %v3442_v21 = vsub.f32 %v396_v24, %v652_v63  ;;  %v3446_v55 = vsub.f32 %v398_v22, %v654_v23 }
  0xf3   : > { %v655_v5 = vld [vmem:[%s2520_s19 + $0x460] sm:$0xff]  ;;  %v656_v19 = vld [vmem:[%s2520_s19 + $0x468] sm:$0xff]  ;;  %v657_v26 = vld [vmem:[%s2520_s19 + $0x470] sm:$0xff]  ;;  %5925 = vst [vmem:[#allocation166_spill] sm:$0xff] %v3410_v7 }
  0xf4   : > { %5924 = vst [vmem:[#allocation74_spill] sm:$0xff] %v3402_v16  ;;  %5926 = vst [vmem:[#allocation167_spill] sm:$0xff] %v3412_v35  ;;  %v408_v2 = vld [vmem:[%s2514_s23 + $0x4a8] sm:$0xff]  ;;  %v409_v8 = vld [vmem:[%s2514_s23 + $0x4b0] sm:$0xff]  ;;  %v3458_v63 = vsub.f32 %v399_v61, %v655_v5  ;;  %v3460_v60 = vsub.f32 %v400_v57, %v656_v19  ;;  %v3462_v22 = vsub.f32 %v401_v36, %v657_v26 }
  0xf5   : > { %5927 = vst [vmem:[#allocation168_spill] sm:$0xff] %v3414_v40  ;;  %5928 = vst [vmem:[#allocation169_spill] sm:$0xff] %v3418_v45  ;;  %v410_v16 = vld [vmem:[%s2514_s23 + $0x4b8] sm:$0xff]  ;;  %v659_v6 = vld [vmem:[%s2520_s19 + $0x480] sm:$0xff] }
  0xf6   : > { %v658_v20 = vld [vmem:[%s2520_s19 + $0x478] sm:$0xff]  ;;  %v660_v33 = vld [vmem:[%s2520_s19 + $0x488] sm:$0xff]  ;;  %5929 = vst [vmem:[#allocation170_spill] sm:$0xff] %v3426_v15  ;;  %5930 = vst [vmem:[#allocation171_spill] sm:$0xff] %v3428_v32  ;;  %v3476_v57 = vsub.f32 %v403_v17, %v659_v6 }
  0xf7   : > { %5931 = vst [vmem:[#allocation172_spill] sm:$0xff] %v3430_v18  ;;  %v5932_v44 = vld [vmem:[#allocation76_spill] sm:$0xff]  ;;  %v412_v45 = vld [vmem:[%s2514_s23 + $0x4c8] sm:$0xff]  ;;  %v413_v40 = vld [vmem:[%s2514_s23 + $0x4d0] sm:$0xff]  ;;  %v3474_v5 = vsub.f32 %v402_v4, %v658_v20  ;;  %v3478_v36 = vsub.f32 %v404_v39, %v660_v33 }
  0xf8   : > { %v3434_v0 = vmul.f32 %v5932_v44, %v5932_v44  ;;  %v411_v13 = vld [vmem:[%s2514_s23 + $0x4c0] sm:$0xff]  ;;  %v661_v35 = vld [vmem:[%s2520_s19 + $0x490] sm:$0xff]  ;;  %v662_v7 = vld [vmem:[%s2520_s19 + $0x498] sm:$0xff]  ;;  %5934 = vst [vmem:[#allocation173_spill] sm:$0xff] %v3444_v3 }
  0xf9   : > { %v663_v51 = vld [vmem:[%s2520_s19 + $0x4a0] sm:$0xff]  ;;  %5935 = vst [vmem:[#allocation174_spill] sm:$0xff] %v3446_v55  ;;  %v5936_v14 = vld [vmem:[#allocation77_spill] sm:$0xff]  ;;  %v414_v44 = vld [vmem:[%s2514_s23 + $0x4d8] sm:$0xff]  ;;  %v3490_v20 = vsub.f32 %v405_v48, %v661_v35  ;;  %v3492_v17 = vsub.f32 %v406_v54, %v662_v7  ;;  %v3514_v7 = vmul.f32 %v2962_v56, %v2962_v56 }
  0xfa   : > { %5933 = vst [vmem:[#allocation76_spill] sm:$0xff] %v3434_v0  ;;  %v3450_v59 = vmul.f32 %v5936_v14, %v5936_v14  ;;  %v415_v0 = vld [vmem:[%s2514_s23 + $0x4e0] sm:$0xff]  ;;  %v416_v18 = vld [vmem:[%s2514_s23 + $0x4e8] sm:$0xff]  ;;  %v665_v15 = vld [vmem:[%s2520_s19 + $0x4b0] sm:$0xff]  ;;  %v3494_v39 = vsub.f32 %v407_v31, %v663_v51 }
  0xfb   : > { %v664_v32 = vld [vmem:[%s2520_s19 + $0x4a8] sm:$0xff]  ;;  %v666_v24 = vld [vmem:[%s2520_s19 + $0x4b8] sm:$0xff]  ;;  %5938 = vst [vmem:[#allocation175_spill] sm:$0xff] %v3458_v63  ;;  %5939 = vst [vmem:[#allocation176_spill] sm:$0xff] %v3460_v60  ;;  %v3508_v54 = vsub.f32 %v409_v8, %v665_v15 }
  0xfc   : > { %5937 = vst [vmem:[#allocation77_spill] sm:$0xff] %v3450_v59  ;;  %5940 = vst [vmem:[#allocation177_spill] sm:$0xff] %v3462_v22  ;;  %v417_v23 = vld [vmem:[%s2514_s23 + $0x4f0] sm:$0xff]  ;;  %v418_v14 = vld [vmem:[%s2514_s23 + $0x4f8] sm:$0xff]  ;;  %v3506_v35 = vsub.f32 %v408_v2, %v664_v32  ;;  %v3510_v31 = vsub.f32 %v410_v16, %v666_v24 }
  0xfd   : > { %5941 = vst [vmem:[#allocation178_spill] sm:$0xff] %v3466_v41  ;;  %v419_v59 = vld [vmem:[%s2514_s23 + $0x500] sm:$0xff]  ;;  %v668_v3 = vld [vmem:[%s2520_s19 + $0x4c8] sm:$0xff]  ;;  %v669_v61 = vld [vmem:[%s2520_s19 + $0x4d0] sm:$0xff] }
  0xfe   : > { %v667_v55 = vld [vmem:[%s2520_s19 + $0x4c0] sm:$0xff]  ;;  %5942 = vst [vmem:[#allocation179_spill] sm:$0xff] %v3474_v5  ;;  %5943 = vst [vmem:[#allocation180_spill] sm:$0xff] %v3476_v57  ;;  %v5945_v19 = vld [vmem:[#allocation79_spill] sm:$0xff]  ;;  %v3524_v8 = vsub.f32 %v412_v45, %v668_v3  ;;  %v3526_v16 = vsub.f32 %v413_v40, %v669_v61 }
  0xff   : > { %5944 = vst [vmem:[#allocation181_spill] sm:$0xff] %v3478_v36  ;;  %v3482_v53 = vmul.f32 %v5945_v19, %v5945_v19  ;;  %v420_v26 = vld [vmem:[%s2514_s23 + $0x508] sm:$0xff]  ;;  %v421_v41 = vld [vmem:[%s2514_s23 + $0x510] sm:$0xff]  ;;  %v422_v22 = vld [vmem:[%s2514_s23 + $0x518] sm:$0xff]  ;;  %v3522_v32 = vsub.f32 %v411_v13, %v667_v55 }
 0x100   : > { %v670_v60 = vld [vmem:[%s2520_s19 + $0x4d8] sm:$0xff]  ;;  %v671_v63 = vld [vmem:[%s2520_s19 + $0x4e0] sm:$0xff]  ;;  %v672_v4 = vld [vmem:[%s2520_s19 + $0x4e8] sm:$0xff]  ;;  %5947 = vst [vmem:[#allocation182_spill] sm:$0xff] %v3492_v17 }
 0x101   : > { %5946 = vst [vmem:[#allocation79_spill] sm:$0xff] %v3482_v53  ;;  %5948 = vst [vmem:[#allocation183_spill] sm:$0xff] %v3494_v39  ;;  %v5949_v6 = vld [vmem:[#allocation80_spill] sm:$0xff]  ;;  %v424_v53 = vld [vmem:[%s2514_s23 + $0x528] sm:$0xff]  ;;  %v3538_v55 = vsub.f32 %v414_v44, %v670_v60  ;;  %v3540_v45 = vsub.f32 %v415_v0, %v671_v63  ;;  %v3542_v40 = vsub.f32 %v416_v18, %v672_v4 }
 0x102   : > { %v3498_v33 = vmul.f32 %v5949_v6, %v5949_v6  ;;  %v423_v19 = vld [vmem:[%s2514_s23 + $0x520] sm:$0xff]  ;;  %v425_v36 = vld [vmem:[%s2514_s23 + $0x530] sm:$0xff]  ;;  %v674_v5 = vld [vmem:[%s2520_s19 + $0x4f8] sm:$0xff]  ;;  %5951 = vst [vmem:[#allocation184_spill] sm:$0xff] %v3506_v35  ;;  %v3562_v63 = vmul.f32 %v2978_v11, %v2978_v11 }
 0x103   : > { %v673_v57 = vld [vmem:[%s2520_s19 + $0x4f0] sm:$0xff]  ;;  %v675_v48 = vld [vmem:[%s2520_s19 + $0x500] sm:$0xff]  ;;  %5952 = vst [vmem:[#allocation185_spill] sm:$0xff] %v3508_v54  ;;  %5953 = vst [vmem:[#allocation186_spill] sm:$0xff] %v3510_v31  ;;  %v3556_v0 = vsub.f32 %v418_v14, %v674_v5 }
 0x104   : > { %5950 = vst [vmem:[#allocation80_spill] sm:$0xff] %v3498_v33  ;;  %5954 = vst [vmem:[#allocation187_spill] sm:$0xff] %v3514_v7  ;;  %v426_v51 = vld [vmem:[%s2514_s23 + $0x538] sm:$0xff]  ;;  %v427_v6 = vld [vmem:[%s2514_s23 + $0x540] sm:$0xff]  ;;  %v3554_v60 = vsub.f32 %v417_v23, %v673_v57  ;;  %v3558_v18 = vsub.f32 %v419_v59, %v675_v48 }
 0x105   : > { %v428_v33 = vld [vmem:[%s2514_s23 + $0x548] sm:$0xff]  ;;  %v677_v17 = vld [vmem:[%s2520_s19 + $0x510] sm:$0xff]  ;;  %v678_v2 = vld [vmem:[%s2520_s19 + $0x518] sm:$0xff]  ;;  %5955 = vst [vmem:[#allocation188_spill] sm:$0xff] %v3522_v32 }
 0x106   : > { %v676_v39 = vld [vmem:[%s2520_s19 + $0x508] sm:$0xff]  ;;  %5956 = vst [vmem:[#allocation189_spill] sm:$0xff] %v3524_v8  ;;  %5957 = vst [vmem:[#allocation190_spill] sm:$0xff] %v3526_v16  ;;  %v5958_v15 = vld [vmem:[#allocation82_spill] sm:$0xff]  ;;  %v3572_v14 = vsub.f32 %v421_v41, %v677_v17  ;;  %v3574_v59 = vsub.f32 %v422_v22, %v678_v2 }
 0x107   : > { %v3530_v56 = vmul.f32 %v5958_v15, %v5958_v15  ;;  %v429_v24 = vld [vmem:[%s2514_s23 + $0x550] sm:$0xff]  ;;  %v430_v7 = vld [vmem:[%s2514_s23 + $0x558] sm:$0xff]  ;;  %v431_v31 = vld [vmem:[%s2514_s23 + $0x560] sm:$0xff]  ;;  %5960 = vst [vmem:[#allocation191_spill] sm:$0xff] %v3540_v45  ;;  %v3570_v57 = vsub.f32 %v420_v26, %v676_v39 }
 0x108   : > { %v679_v54 = vld [vmem:[%s2520_s19 + $0x520] sm:$0xff]  ;;  %v680_v35 = vld [vmem:[%s2520_s19 + $0x528] sm:$0xff]  ;;  %v681_v13 = vld [vmem:[%s2520_s19 + $0x530] sm:$0xff]  ;;  %5961 = vst [vmem:[#allocation192_spill] sm:$0xff] %v3542_v40 }
 0x109   : > { %5959 = vst [vmem:[#allocation82_spill] sm:$0xff] %v3530_v56  ;;  %v5962_v3 = vld [vmem:[#allocation83_spill] sm:$0xff]  ;;  %v432_v15 = vld [vmem:[%s2514_s23 + $0x568] sm:$0xff]  ;;  %v433_v56 = vld [vmem:[%s2514_s23 + $0x570] sm:$0xff]  ;;  %v3586_v39 = vsub.f32 %v423_v19, %v679_v54  ;;  %v3588_v41 = vsub.f32 %v424_v53, %v680_v35  ;;  %v3590_v22 = vsub.f32 %v425_v36, %v681_v13  ;;  %v3610_v35 = vmul.f32 %v2994_v52, %v2994_v52 }
 0x10a   : > { %v3546_v61 = vmul.f32 %v5962_v3, %v5962_v3  ;;  %v434_v16 = vld [vmem:[%s2514_s23 + $0x578] sm:$0xff]  ;;  %v683_v32 = vld [vmem:[%s2520_s19 + $0x540] sm:$0xff]  ;;  %v684_v44 = vld [vmem:[%s2520_s19 + $0x548] sm:$0xff]  ;;  %5964 = vst [vmem:[#allocation193_spill] sm:$0xff] %v3554_v60 }
 0x10b   : > { %v682_v8 = vld [vmem:[%s2520_s19 + $0x538] sm:$0xff]  ;;  %5965 = vst [vmem:[#allocation194_spill] sm:$0xff] %v3556_v0  ;;  %5966 = vst [vmem:[#allocation195_spill] sm:$0xff] %v3558_v18  ;;  %v435_v4 = vld [vmem:[%s2514_s23 + $0x580] sm:$0xff]  ;;  %v3604_v53 = vsub.f32 %v427_v6, %v683_v32  ;;  %v3606_v36 = vsub.f32 %v428_v33, %v684_v44 }
 0x10c   : > { %5963 = vst [vmem:[#allocation83_spill] sm:$0xff] %v3546_v61  ;;  %5967 = vst [vmem:[#allocation196_spill] sm:$0xff] %v3562_v63  ;;  %v436_v3 = vld [vmem:[%s2514_s23 + $0x588] sm:$0xff]  ;;  %v437_v61 = vld [vmem:[%s2514_s23 + $0x590] sm:$0xff]  ;;  %v3602_v54 = vsub.f32 %v426_v51, %v682_v8 }
 0x10d   : > { %v685_v40 = vld [vmem:[%s2520_s19 + $0x550] sm:$0xff]  ;;  %v686_v45 = vld [vmem:[%s2520_s19 + $0x558] sm:$0xff]  ;;  %v687_v23 = vld [vmem:[%s2520_s19 + $0x560] sm:$0xff]  ;;  %5968 = vst [vmem:[#allocation197_spill] sm:$0xff] %v3570_v57 }
 0x10e   : > { %5969 = vst [vmem:[#allocation198_spill] sm:$0xff] %v3572_v14  ;;  %5970 = vst [vmem:[#allocation199_spill] sm:$0xff] %v3574_v59  ;;  %v5971_v5 = vld [vmem:[#allocation85_spill] sm:$0xff]  ;;  %v438_v48 = vld [vmem:[%s2514_s23 + $0x598] sm:$0xff]  ;;  %v3618_v8 = vsub.f32 %v429_v24, %v685_v40  ;;  %v3620_v6 = vsub.f32 %v430_v7, %v686_v45  ;;  %v3622_v33 = vsub.f32 %v431_v31, %v687_v23 }
 0x10f   : > { %v3578_v11 = vmul.f32 %v5971_v5, %v5971_v5  ;;  %v439_v63 = vld [vmem:[%s2514_s23 + $0x5a0] sm:$0xff]  ;;  %v440_v18 = vld [vmem:[%s2514_s23 + $0x5a8] sm:$0xff]  ;;  %v689_v60 = vld [vmem:[%s2520_s19 + $0x570] sm:$0xff]  ;;  %5973 = vst [vmem:[#allocation200_spill] sm:$0xff] %v3588_v41 }
 0x110   : > { %v688_v0 = vld [vmem:[%s2520_s19 + $0x568] sm:$0xff]  ;;  %v690_v26 = vld [vmem:[%s2520_s19 + $0x578] sm:$0xff]  ;;  %5974 = vst [vmem:[#allocation201_spill] sm:$0xff] %v3590_v22  ;;  %v5975_v17 = vld [vmem:[#allocation86_spill] sm:$0xff]  ;;  %v3636_v7 = vsub.f32 %v433_v56, %v689_v60  ;;  %v3658_v60 = vmul.f32 %v3010_v62, %v3010_v62 }
 0x111   : > { %5972 = vst [vmem:[#allocation85_spill] sm:$0xff] %v3578_v11  ;;  %v3594_v2 = vmul.f32 %v5975_v17, %v5975_v17  ;;  %v441_v5 = vld [vmem:[%s2514_s23 + $0x5b0] sm:$0xff]  ;;  %v442_v11 = vld [vmem:[%s2514_s23 + $0x5b8] sm:$0xff]  ;;  %v443_v59 = vld [vmem:[%s2514_s23 + $0x5c0] sm:$0xff]  ;;  %v3634_v40 = vsub.f32 %v432_v15, %v688_v0  ;;  %v3638_v31 = vsub.f32 %v434_v16, %v690_v26 }
 0x112   : > { %v691_v14 = vld [vmem:[%s2520_s19 + $0x580] sm:$0xff]  ;;  %v692_v57 = vld [vmem:[%s2520_s19 + $0x588] sm:$0xff]  ;;  %v693_v19 = vld [vmem:[%s2520_s19 + $0x590] sm:$0xff]  ;;  %5977 = vst [vmem:[#allocation202_spill] sm:$0xff] %v3602_v54 }
 0x113   : > { %5976 = vst [vmem:[#allocation86_spill] sm:$0xff] %v3594_v2  ;;  %5978 = vst [vmem:[#allocation203_spill] sm:$0xff] %v3604_v53  ;;  %v444_v13 = vld [vmem:[%s2514_s23 + $0x5c8] sm:$0xff]  ;;  %v445_v17 = vld [vmem:[%s2514_s23 + $0x5d0] sm:$0xff]  ;;  %v3650_v0 = vsub.f32 %v435_v4, %v691_v14  ;;  %v3652_v56 = vsub.f32 %v436_v3, %v692_v57  ;;  %v3654_v16 = vsub.f32 %v437_v61, %v693_v19 }
 0x114   : > { %5979 = vst [vmem:[#allocation204_spill] sm:$0xff] %v3606_v36  ;;  %5980 = vst [vmem:[#allocation205_spill] sm:$0xff] %v3610_v35  ;;  %v446_v2 = vld [vmem:[%s2514_s23 + $0x5d8] sm:$0xff]  ;;  %v695_v41 = vld [vmem:[%s2520_s19 + $0x5a0] sm:$0xff] }
 0x115   : > { %v694_v22 = vld [vmem:[%s2520_s19 + $0x598] sm:$0xff]  ;;  %v696_v51 = vld [vmem:[%s2520_s19 + $0x5a8] sm:$0xff]  ;;  %5981 = vst [vmem:[#allocation206_spill] sm:$0xff] %v3618_v8  ;;  %5982 = vst [vmem:[#allocation207_spill] sm:$0xff] %v3620_v6  ;;  %v3668_v3 = vsub.f32 %v439_v63, %v695_v41 }
 0x116   : > { %5983 = vst [vmem:[#allocation208_spill] sm:$0xff] %v3622_v33  ;;  %v5984_v32 = vld [vmem:[#allocation88_spill] sm:$0xff]  ;;  %v448_v35 = vld [vmem:[%s2514_s23 + $0x5e8] sm:$0xff]  ;;  %v449_v36 = vld [vmem:[%s2514_s23 + $0x5f0] sm:$0xff]  ;;  %v3666_v14 = vsub.f32 %v438_v48, %v694_v22  ;;  %v3670_v61 = vsub.f32 %v440_v18, %v696_v51 }
 0x117   : > { %v3626_v52 = vmul.f32 %v5984_v32, %v5984_v32  ;;  %v447_v44 = vld [vmem:[%s2514_s23 + $0x5e0] sm:$0xff]  ;;  %v697_v53 = vld [vmem:[%s2520_s19 + $0x5b0] sm:$0xff]  ;;  %v698_v54 = vld [vmem:[%s2520_s19 + $0x5b8] sm:$0xff]  ;;  %5986 = vst [vmem:[#allocation209_spill] sm:$0xff] %v3636_v7 }
 0x118   : > { %v699_v24 = vld [vmem:[%s2520_s19 + $0x5c0] sm:$0xff]  ;;  %5987 = vst [vmem:[#allocation210_spill] sm:$0xff] %v3638_v31  ;;  %v5988_v45 = vld [vmem:[#allocation89_spill] sm:$0xff]  ;;  %v450_v32 = vld [vmem:[%s2514_s23 + $0x5f8] sm:$0xff]  ;;  %v3682_v22 = vsub.f32 %v441_v5, %v697_v53  ;;  %v3684_v63 = vsub.f32 %v442_v11, %v698_v54  ;;  %v3706_v54 = vmul.f32 %v3026_v1, %v3026_v1 }
 0x119   : > { %5985 = vst [vmem:[#allocation88_spill] sm:$0xff] %v3626_v52  ;;  %v3642_v23 = vmul.f32 %v5988_v45, %v5988_v45  ;;  %v451_v52 = vld [vmem:[%s2514_s23 + $0x600] sm:$0xff]  ;;  %v452_v33 = vld [vmem:[%s2514_s23 + $0x608] sm:$0xff]  ;;  %v701_v8 = vld [vmem:[%s2520_s19 + $0x5d0] sm:$0xff]  ;;  %v3686_v18 = vsub.f32 %v443_v59, %v699_v24 }
 0x11a   : > { %v700_v6 = vld [vmem:[%s2520_s19 + $0x5c8] sm:$0xff]  ;;  %v702_v15 = vld [vmem:[%s2520_s19 + $0x5d8] sm:$0xff]  ;;  %5990 = vst [vmem:[#allocation211_spill] sm:$0xff] %v3650_v0  ;;  %5991 = vst [vmem:[#allocation212_spill] sm:$0xff] %v3652_v56  ;;  %v3700_v11 = vsub.f32 %v445_v17, %v701_v8 }
 0x11b   : > { %5989 = vst [vmem:[#allocation89_spill] sm:$0xff] %v3642_v23  ;;  %5992 = vst [vmem:[#allocation213_spill] sm:$0xff] %v3654_v16  ;;  %v453_v26 = vld [vmem:[%s2514_s23 + $0x610] sm:$0xff]  ;;  %v454_v45 = vld [vmem:[%s2514_s23 + $0x618] sm:$0xff]  ;;  %v3698_v53 = vsub.f32 %v444_v13, %v700_v6  ;;  %v3702_v59 = vsub.f32 %v446_v2, %v702_v15 }
 0x11c   : > { %5993 = vst [vmem:[#allocation214_spill] sm:$0xff] %v3658_v60  ;;  %v455_v23 = vld [vmem:[%s2514_s23 + $0x620] sm:$0xff]  ;;  %v704_v7 = vld [vmem:[%s2520_s19 + $0x5e8] sm:$0xff]  ;;  %v705_v4 = vld [vmem:[%s2520_s19 + $0x5f0] sm:$0xff] }
 0x11d   : > { %v703_v31 = vld [vmem:[%s2520_s19 + $0x5e0] sm:$0xff]  ;;  %5994 = vst [vmem:[#allocation215_spill] sm:$0xff] %v3666_v14  ;;  %5995 = vst [vmem:[#allocation216_spill] sm:$0xff] %v3668_v3  ;;  %v5997_v57 = vld [vmem:[#allocation91_spill] sm:$0xff]  ;;  %v3716_v17 = vsub.f32 %v448_v35, %v704_v7  ;;  %v3718_v2 = vsub.f32 %v449_v36, %v705_v4 }
 0x11e   : > { %5996 = vst [vmem:[#allocation217_spill] sm:$0xff] %v3670_v61  ;;  %v3674_v62 = vmul.f32 %v5997_v57, %v5997_v57  ;;  %v456_v19 = vld [vmem:[%s2514_s23 + $0x628] sm:$0xff]  ;;  %v457_v60 = vld [vmem:[%s2514_s23 + $0x630] sm:$0xff]  ;;  %v458_v16 = vld [vmem:[%s2514_s23 + $0x638] sm:$0xff]  ;;  %v3714_v6 = vsub.f32 %v447_v44, %v703_v31 }
 0x11f   : > { %v706_v56 = vld [vmem:[%s2520_s19 + $0x5f8] sm:$0xff]  ;;  %v707_v0 = vld [vmem:[%s2520_s19 + $0x600] sm:$0xff]  ;;  %v708_v48 = vld [vmem:[%s2520_s19 + $0x608] sm:$0xff]  ;;  %5999 = vst [vmem:[#allocation218_spill] sm:$0xff] %v3684_v63 }
 0x120   : > { %5998 = vst [vmem:[#allocation91_spill] sm:$0xff] %v3674_v62  ;;  %6000 = vst [vmem:[#allocation219_spill] sm:$0xff] %v3686_v18  ;;  %v6001_v41 = vld [vmem:[#allocation92_spill] sm:$0xff]  ;;  %v460_v62 = vld [vmem:[%s2514_s23 + $0x648] sm:$0xff]  ;;  %v3730_v31 = vsub.f32 %v450_v32, %v706_v56  ;;  %v3732_v35 = vsub.f32 %v451_v52, %v707_v0  ;;  %v3734_v36 = vsub.f32 %v452_v33, %v708_v48 }
 0x121   : > { %v3690_v51 = vmul.f32 %v6001_v41, %v6001_v41  ;;  %v459_v57 = vld [vmem:[%s2514_s23 + $0x640] sm:$0xff]  ;;  %v461_v61 = vld [vmem:[%s2514_s23 + $0x650] sm:$0xff]  ;;  %v710_v14 = vld [vmem:[%s2520_s19 + $0x618] sm:$0xff]  ;;  %6003 = vst [vmem:[#allocation220_spill] sm:$0xff] %v3698_v53  ;;  %v3754_v0 = vmul.f32 %v3042_v9, %v3042_v9 }
 0x122   : > { %v709_v3 = vld [vmem:[%s2520_s19 + $0x610] sm:$0xff]  ;;  %v711_v5 = vld [vmem:[%s2520_s19 + $0x620] sm:$0xff]  ;;  %6004 = vst [vmem:[#allocation221_spill] sm:$0xff] %v3700_v11  ;;  %6005 = vst [vmem:[#allocation222_spill] sm:$0xff] %v3702_v59  ;;  %v3748_v52 = vsub.f32 %v454_v45, %v710_v14 }
 0x123   : > { %6002 = vst [vmem:[#allocation92_spill] sm:$0xff] %v3690_v51  ;;  %6006 = vst [vmem:[#allocation223_spill] sm:$0xff] %v3706_v54  ;;  %v462_v24 = vld [vmem:[%s2514_s23 + $0x658] sm:$0xff]  ;;  %v463_v41 = vld [vmem:[%s2514_s23 + $0x660] sm:$0xff]  ;;  %v3746_v56 = vsub.f32 %v453_v26, %v709_v3  ;;  %v3750_v33 = vsub.f32 %v455_v23, %v711_v5 }
 0x124   : > { %v464_v51 = vld [vmem:[%s2514_s23 + $0x668] sm:$0xff]  ;;  %v713_v63 = vld [vmem:[%s2520_s19 + $0x630] sm:$0xff]  ;;  %v714_v13 = vld [vmem:[%s2520_s19 + $0x638] sm:$0xff]  ;;  %6007 = vst [vmem:[#allocation224_spill] sm:$0xff] %v3714_v6 }
 0x125   : > { %v712_v18 = vld [vmem:[%s2520_s19 + $0x628] sm:$0xff]  ;;  %6008 = vst [vmem:[#allocation225_spill] sm:$0xff] %v3716_v17  ;;  %6009 = vst [vmem:[#allocation226_spill] sm:$0xff] %v3718_v2  ;;  %v6010_v8 = vld [vmem:[#allocation94_spill] sm:$0xff]  ;;  %v3764_v45 = vsub.f32 %v457_v60, %v713_v63  ;;  %v3766_v23 = vsub.f32 %v458_v16, %v714_v13 }
 0x126   : > { %v3722_v1 = vmul.f32 %v6010_v8, %v6010_v8  ;;  %v465_v15 = vld [vmem:[%s2514_s23 + $0x670] sm:$0xff]  ;;  %v466_v54 = vld [vmem:[%s2514_s23 + $0x678] sm:$0xff]  ;;  %v467_v59 = vld [vmem:[%s2514_s23 + $0x680] sm:$0xff]  ;;  %6012 = vst [vmem:[#allocation227_spill] sm:$0xff] %v3732_v35  ;;  %v3762_v3 = vsub.f32 %v456_v19, %v712_v18 }
 0x127   : > { %v715_v11 = vld [vmem:[%s2520_s19 + $0x640] sm:$0xff]  ;;  %v716_v53 = vld [vmem:[%s2520_s19 + $0x648] sm:$0xff]  ;;  %v717_v44 = vld [vmem:[%s2520_s19 + $0x650] sm:$0xff]  ;;  %6013 = vst [vmem:[#allocation228_spill] sm:$0xff] %v3734_v36 }
 0x128   : > { %6011 = vst [vmem:[#allocation94_spill] sm:$0xff] %v3722_v1  ;;  %v6014_v7 = vld [vmem:[#allocation95_spill] sm:$0xff]  ;;  %v468_v8 = vld [vmem:[%s2514_s23 + $0x688] sm:$0xff]  ;;  %v469_v1 = vld [vmem:[%s2514_s23 + $0x690] sm:$0xff]  ;;  %v3778_v18 = vsub.f32 %v459_v57, %v715_v11  ;;  %v3780_v60 = vsub.f32 %v460_v62, %v716_v53  ;;  %v3782_v16 = vsub.f32 %v461_v61, %v717_v44  ;;  %v3802_v53 = vmul.f32 %v3058_v50, %v3058_v50 }
 0x129   : > { %v3738_v4 = vmul.f32 %v6014_v7, %v6014_v7  ;;  %v470_v2 = vld [vmem:[%s2514_s23 + $0x698] sm:$0xff]  ;;  %v719_v6 = vld [vmem:[%s2520_s19 + $0x660] sm:$0xff]  ;;  %v720_v32 = vld [vmem:[%s2520_s19 + $0x668] sm:$0xff]  ;;  %6016 = vst [vmem:[#allocation229_spill] sm:$0xff] %v3746_v56 }
 0x12a   : > { %v718_v17 = vld [vmem:[%s2520_s19 + $0x658] sm:$0xff]  ;;  %6017 = vst [vmem:[#allocation230_spill] sm:$0xff] %v3748_v52  ;;  %6018 = vst [vmem:[#allocation231_spill] sm:$0xff] %v3750_v33  ;;  %v471_v48 = vld [vmem:[%s2514_s23 + $0x6a0] sm:$0xff]  ;;  %v3796_v62 = vsub.f32 %v463_v41, %v719_v6  ;;  %v3798_v61 = vsub.f32 %v464_v51, %v720_v32 }
 0x12b   : > { %6015 = vst [vmem:[#allocation95_spill] sm:$0xff] %v3738_v4  ;;  %6019 = vst [vmem:[#allocation232_spill] sm:$0xff] %v3754_v0  ;;  %v472_v7 = vld [vmem:[%s2514_s23 + $0x6a8] sm:$0xff]  ;;  %v473_v4 = vld [vmem:[%s2514_s23 + $0x6b0] sm:$0xff]  ;;  %v3794_v11 = vsub.f32 %v462_v24, %v718_v17 }
 0x12c   : > { %v721_v36 = vld [vmem:[%s2520_s19 + $0x670] sm:$0xff]  ;;  %v722_v35 = vld [vmem:[%s2520_s19 + $0x678] sm:$0xff]  ;;  %v723_v26 = vld [vmem:[%s2520_s19 + $0x680] sm:$0xff]  ;;  %6020 = vst [vmem:[#allocation233_spill] sm:$0xff] %v3762_v3 }
 0x12d   : > { %6021 = vst [vmem:[#allocation234_spill] sm:$0xff] %v3764_v45  ;;  %6022 = vst [vmem:[#allocation235_spill] sm:$0xff] %v3766_v23  ;;  %v6023_v14 = vld [vmem:[#allocation97_spill] sm:$0xff]  ;;  %v474_v5 = vld [vmem:[%s2514_s23 + $0x6b8] sm:$0xff]  ;;  %v3810_v17 = vsub.f32 %v465_v15, %v721_v36  ;;  %v3812_v41 = vsub.f32 %v466_v54, %v722_v35  ;;  %v3814_v51 = vsub.f32 %v467_v59, %v723_v26 }
 0x12e   : > { %v3770_v9 = vmul.f32 %v6023_v14, %v6023_v14  ;;  %v475_v0 = vld [vmem:[%s2514_s23 + $0x6c0] sm:$0xff]  ;;  %v476_v33 = vld [vmem:[%s2514_s23 + $0x6c8] sm:$0xff]  ;;  %v725_v56 = vld [vmem:[%s2520_s19 + $0x690] sm:$0xff]  ;;  %6025 = vst [vmem:[#allocation236_spill] sm:$0xff] %v3780_v60 }
 0x12f   : > { %v724_v52 = vld [vmem:[%s2520_s19 + $0x688] sm:$0xff]  ;;  %v726_v19 = vld [vmem:[%s2520_s19 + $0x698] sm:$0xff]  ;;  %6026 = vst [vmem:[#allocation237_spill] sm:$0xff] %v3782_v16  ;;  %v6027_v63 = vld [vmem:[#allocation98_spill] sm:$0xff]  ;;  %v3828_v54 = vsub.f32 %v469_v1, %v725_v56  ;;  %v3850_v56 = vmul.f32 %v3074_v46, %v3074_v46 }
 0x130   : > { %6024 = vst [vmem:[#allocation97_spill] sm:$0xff] %v3770_v9  ;;  %v3786_v13 = vmul.f32 %v6027_v63, %v6027_v63  ;;  %v477_v14 = vld [vmem:[%s2514_s23 + $0x6d0] sm:$0xff]  ;;  %v478_v9 = vld [vmem:[%s2514_s23 + $0x6d8] sm:$0xff]  ;;  %v479_v23 = vld [vmem:[%s2514_s23 + $0x6e0] sm:$0xff]  ;;  %v3826_v36 = vsub.f32 %v468_v8, %v724_v52  ;;  %v3830_v59 = vsub.f32 %v470_v2, %v726_v19 }
 0x131   : > { %v727_v45 = vld [vmem:[%s2520_s19 + $0x6a0] sm:$0xff]  ;;  %v728_v3 = vld [vmem:[%s2520_s19 + $0x6a8] sm:$0xff]  ;;  %v729_v57 = vld [vmem:[%s2520_s19 + $0x6b0] sm:$0xff]  ;;  %6029 = vst [vmem:[#allocation238_spill] sm:$0xff] %v3794_v11 }
 0x132   : > { %6028 = vst [vmem:[#allocation98_spill] sm:$0xff] %v3786_v13  ;;  %6030 = vst [vmem:[#allocation239_spill] sm:$0xff] %v3796_v62  ;;  %v480_v44 = vld [vmem:[%s2514_s23 + $0x6e8] sm:$0xff]  ;;  %v481_v63 = vld [vmem:[%s2514_s23 + $0x6f0] sm:$0xff]  ;;  %v3842_v52 = vsub.f32 %v471_v48, %v727_v45  ;;  %v3844_v1 = vsub.f32 %v472_v7, %v728_v3  ;;  %v3846_v2 = vsub.f32 %v473_v4, %v729_v57 }
 0x133   : > { %6031 = vst [vmem:[#allocation240_spill] sm:$0xff] %v3798_v61  ;;  %6032 = vst [vmem:[#allocation241_spill] sm:$0xff] %v3802_v53  ;;  %v482_v13 = vld [vmem:[%s2514_s23 + $0x6f8] sm:$0xff]  ;;  %v731_v60 = vld [vmem:[%s2520_s19 + $0x6c0] sm:$0xff] }
 0x134   : > { %v730_v16 = vld [vmem:[%s2520_s19 + $0x6b8] sm:$0xff]  ;;  %v732_v24 = vld [vmem:[%s2520_s19 + $0x6c8] sm:$0xff]  ;;  %6033 = vst [vmem:[#allocation242_spill] sm:$0xff] %v3810_v17  ;;  %6034 = vst [vmem:[#allocation243_spill] sm:$0xff] %v3812_v41  ;;  %v3860_v7 = vsub.f32 %v475_v0, %v731_v60 }
 0x135   : > { %6035 = vst [vmem:[#allocation244_spill] sm:$0xff] %v3814_v51  ;;  %v6036_v6 = vld [vmem:[#allocation100_spill] sm:$0xff]  ;;  %v484_v53 = vld [vmem:[%s2514_s23 + $0x708] sm:$0xff]  ;;  %v485_v61 = vld [vmem:[%s2514_s23 + $0x710] sm:$0xff]  ;;  %v3858_v45 = vsub.f32 %v474_v5, %v730_v16  ;;  %v3862_v4 = vsub.f32 %v476_v33, %v732_v24 }
 0x136   : > { %v3818_v50 = vmul.f32 %v6036_v6, %v6036_v6  ;;  %v483_v32 = vld [vmem:[%s2514_s23 + $0x700] sm:$0xff]  ;;  %v733_v62 = vld [vmem:[%s2520_s19 + $0x6d0] sm:$0xff]  ;;  %v734_v11 = vld [vmem:[%s2520_s19 + $0x6d8] sm:$0xff]  ;;  %6038 = vst [vmem:[#allocation245_spill] sm:$0xff] %v3828_v54 }
 0x137   : > { %v735_v15 = vld [vmem:[%s2520_s19 + $0x6e0] sm:$0xff]  ;;  %6039 = vst [vmem:[#allocation246_spill] sm:$0xff] %v3830_v59  ;;  %v6040_v35 = vld [vmem:[#allocation101_spill] sm:$0xff]  ;;  %v486_v6 = vld [vmem:[%s2514_s23 + $0x718] sm:$0xff]  ;;  %v3874_v16 = vsub.f32 %v477_v14, %v733_v62  ;;  %v3876_v0 = vsub.f32 %v478_v9, %v734_v11  ;;  %v3898_v11 = vmul.f32 %v3090_v42, %v3090_v42 }
 0x138   : > { %6037 = vst [vmem:[#allocation100_spill] sm:$0xff] %v3818_v50  ;;  %v3834_v26 = vmul.f32 %v6040_v35, %v6040_v35  ;;  %v487_v50 = vld [vmem:[%s2514_s23 + $0x720] sm:$0xff]  ;;  %v488_v51 = vld [vmem:[%s2514_s23 + $0x728] sm:$0xff]  ;;  %v737_v17 = vld [vmem:[%s2520_s19 + $0x6f0] sm:$0xff]  ;;  %v3878_v33 = vsub.f32 %v479_v23, %v735_v15 }
 0x139   : > { %v736_v41 = vld [vmem:[%s2520_s19 + $0x6e8] sm:$0xff]  ;;  %v738_v8 = vld [vmem:[%s2520_s19 + $0x6f8] sm:$0xff]  ;;  %6042 = vst [vmem:[#allocation247_spill] sm:$0xff] %v3842_v52  ;;  %6043 = vst [vmem:[#allocation248_spill] sm:$0xff] %v3844_v1  ;;  %v3892_v9 = vsub.f32 %v481_v63, %v737_v17 }
 0x13a   : > { %6041 = vst [vmem:[#allocation101_spill] sm:$0xff] %v3834_v26  ;;  %6044 = vst [vmem:[#allocation249_spill] sm:$0xff] %v3846_v2  ;;  %v489_v19 = vld [vmem:[%s2514_s23 + $0x730] sm:$0xff]  ;;  %v490_v35 = vld [vmem:[%s2514_s23 + $0x738] sm:$0xff]  ;;  %v3890_v62 = vsub.f32 %v480_v44, %v736_v41  ;;  %v3894_v23 = vsub.f32 %v482_v13, %v738_v8 }
 0x13b   : > { %6045 = vst [vmem:[#allocation250_spill] sm:$0xff] %v3850_v56  ;;  %v491_v26 = vld [vmem:[%s2514_s23 + $0x740] sm:$0xff]  ;;  %v740_v54 = vld [vmem:[%s2520_s19 + $0x708] sm:$0xff]  ;;  %v741_v48 = vld [vmem:[%s2520_s19 + $0x710] sm:$0xff] }
 0x13c   : > { %v739_v59 = vld [vmem:[%s2520_s19 + $0x700] sm:$0xff]  ;;  %6046 = vst [vmem:[#allocation251_spill] sm:$0xff] %v3858_v45  ;;  %6047 = vst [vmem:[#allocation252_spill] sm:$0xff] %v3860_v7  ;;  %v6049_v3 = vld [vmem:[#allocation103_spill] sm:$0xff]  ;;  %v3908_v63 = vsub.f32 %v484_v53, %v740_v54  ;;  %v3910_v13 = vsub.f32 %v485_v61, %v741_v48 }
 0x13d   : > { %6048 = vst [vmem:[#allocation253_spill] sm:$0xff] %v3862_v4  ;;  %v3866_v46 = vmul.f32 %v6049_v3, %v6049_v3  ;;  %v492_v57 = vld [vmem:[%s2514_s23 + $0x748] sm:$0xff]  ;;  %v493_v56 = vld [vmem:[%s2514_s23 + $0x750] sm:$0xff]  ;;  %v494_v2 = vld [vmem:[%s2514_s23 + $0x758] sm:$0xff]  ;;  %v3906_v41 = vsub.f32 %v483_v32, %v739_v59 }
 0x13e   : > { %v742_v1 = vld [vmem:[%s2520_s19 + $0x718] sm:$0xff]  ;;  %v743_v52 = vld [vmem:[%s2520_s19 + $0x720] sm:$0xff]  ;;  %v744_v5 = vld [vmem:[%s2520_s19 + $0x728] sm:$0xff]  ;;  %6051 = vst [vmem:[#allocation254_spill] sm:$0xff] %v3876_v0 }
 0x13f   : > { %6050 = vst [vmem:[#allocation103_spill] sm:$0xff] %v3866_v46  ;;  %6052 = vst [vmem:[#allocation255_spill] sm:$0xff] %v3878_v33  ;;  %v6053_v60 = vld [vmem:[#allocation104_spill] sm:$0xff]  ;;  %v496_v46 = vld [vmem:[%s2514_s23 + $0x768] sm:$0xff]  ;;  %v3922_v59 = vsub.f32 %v486_v6, %v742_v1  ;;  %v3924_v53 = vsub.f32 %v487_v50, %v743_v52  ;;  %v3926_v61 = vsub.f32 %v488_v51, %v744_v5 }
 0x140   : > { %v3882_v24 = vmul.f32 %v6053_v60, %v6053_v60  ;;  %v495_v3 = vld [vmem:[%s2514_s23 + $0x760] sm:$0xff]  ;;  %v497_v4 = vld [vmem:[%s2514_s23 + $0x770] sm:$0xff]  ;;  %v746_v45 = vld [vmem:[%s2520_s19 + $0x738] sm:$0xff]  ;;  %6055 = vst [vmem:[#allocation256_spill] sm:$0xff] %v3890_v62  ;;  %v3946_v52 = vmul.f32 %v3106_v12, %v3106_v12 }
 0x141   : > { %v745_v7 = vld [vmem:[%s2520_s19 + $0x730] sm:$0xff]  ;;  %v747_v14 = vld [vmem:[%s2520_s19 + $0x740] sm:$0xff]  ;;  %6056 = vst [vmem:[#allocation257_spill] sm:$0xff] %v3892_v9  ;;  %6057 = vst [vmem:[#allocation258_spill] sm:$0xff] %v3894_v23  ;;  %v3940_v50 = vsub.f32 %v490_v35, %v746_v45 }
 0x142   : > { %6054 = vst [vmem:[#allocation104_spill] sm:$0xff] %v3882_v24  ;;  %6058 = vst [vmem:[#allocation259_spill] sm:$0xff] %v3898_v11  ;;  %v498_v15 = vld [vmem:[%s2514_s23 + $0x778] sm:$0xff]  ;;  %v499_v60 = vld [vmem:[%s2514_s23 + $0x780] sm:$0xff]  ;;  %v3938_v1 = vsub.f32 %v489_v19, %v745_v7  ;;  %v3942_v51 = vsub.f32 %v491_v26, %v747_v14 }
 0x143   : > { %v500_v24 = vld [vmem:[%s2514_s23 + $0x788] sm:$0xff]  ;;  %v749_v0 = vld [vmem:[%s2520_s19 + $0x750] sm:$0xff]  ;;  %v750_v44 = vld [vmem:[%s2520_s19 + $0x758] sm:$0xff]  ;;  %6059 = vst [vmem:[#allocation260_spill] sm:$0xff] %v3906_v41 }
 0x144   : > { %v748_v33 = vld [vmem:[%s2520_s19 + $0x748] sm:$0xff]  ;;  %6060 = vst [vmem:[#allocation261_spill] sm:$0xff] %v3908_v63  ;;  %6061 = vst [vmem:[#allocation262_spill] sm:$0xff] %v3910_v13  ;;  %v6062_v17 = vld [vmem:[#allocation106_spill] sm:$0xff]  ;;  %v3956_v35 = vsub.f32 %v493_v56, %v749_v0  ;;  %v3958_v26 = vsub.f32 %v494_v2, %v750_v44 }
 0x145   : > { %v3914_v42 = vmul.f32 %v6062_v17, %v6062_v17  ;;  %v501_v8 = vld [vmem:[%s2514_s23 + $0x790] sm:$0xff]  ;;  %v502_v11 = vld [vmem:[%s2514_s23 + $0x798] sm:$0xff]  ;;  %v503_v23 = vld [vmem:[%s2514_s23 + $0x7a0] sm:$0xff]  ;;  %6064 = vst [vmem:[#allocation263_spill] sm:$0xff] %v3922_v59  ;;  %v3954_v7 = vsub.f32 %v492_v57, %v748_v33 }
 0x146   : > { %v751_v9 = vld [vmem:[%s2520_s19 + $0x760] sm:$0xff]  ;;  %v752_v62 = vld [vmem:[%s2520_s19 + $0x768] sm:$0xff]  ;;  %v753_v32 = vld [vmem:[%s2520_s19 + $0x770] sm:$0xff]  ;;  %6065 = vst [vmem:[#allocation264_spill] sm:$0xff] %v3924_v53 }
 0x147   : > { %6063 = vst [vmem:[#allocation106_spill] sm:$0xff] %v3914_v42  ;;  %6066 = vst [vmem:[#allocation265_spill] sm:$0xff] %v3926_v61  ;;  %v6067_v54 = vld [vmem:[#allocation107_spill] sm:$0xff]  ;;  %v504_v17 = vld [vmem:[%s2514_s23 + $0x7a8] sm:$0xff]  ;;  %v3970_v33 = vsub.f32 %v495_v3, %v751_v9  ;;  %v3972_v56 = vsub.f32 %v496_v46, %v752_v62  ;;  %v3974_v0 = vsub.f32 %v497_v4, %v753_v32 }
 0x148   : > { %v3930_v48 = vmul.f32 %v6067_v54, %v6067_v54  ;;  %v505_v42 = vld [vmem:[%s2514_s23 + $0x7b0] sm:$0xff]  ;;  %v506_v13 = vld [vmem:[%s2514_s23 + $0x7b8] sm:$0xff]  ;;  %v755_v41 = vld [vmem:[%s2520_s19 + $0x780] sm:$0xff]  ;;  %6069 = vst [vmem:[#allocation266_spill] sm:$0xff] %v3938_v1  ;;  %v3992_v4 = vmul.f32 %v3122_v29, %v3122_v29 }
 0x149   : > { %v754_v63 = vld [vmem:[%s2520_s19 + $0x778] sm:$0xff]  ;;  %v756_v6 = vld [vmem:[%s2520_s19 + $0x788] sm:$0xff]  ;;  %6070 = vst [vmem:[#allocation267_spill] sm:$0xff] %v3940_v50  ;;  %6071 = vst [vmem:[#allocation268_spill] sm:$0xff] %v3942_v51  ;;  %v3986_v59 = vsub.f32 %v499_v60, %v755_v41 }
 0x14a   : > { %6068 = vst [vmem:[#allocation107_spill] sm:$0xff] %v3930_v48  ;;  %6072 = vst [vmem:[#allocation269_spill] sm:$0xff] %v3946_v52  ;;  %v507_v5 = vld [vmem:[%s2514_s23 + $0x7c0] sm:$0xff]  ;;  %v508_v54 = vld [vmem:[%s2514_s23 + $0x7c8] sm:$0xff]  ;;  %v3988_v3 = vsub.f32 %v500_v24, %v756_v6 }
 0x14b   : > { %v509_v48 = vld [vmem:[%s2514_s23 + $0x7d0] sm:$0xff]  ;;  %v758_v53 = vld [vmem:[%s2520_s19 + $0x798] sm:$0xff]  ;;  %v759_v19 = vld [vmem:[%s2520_s19 + $0x7a0] sm:$0xff]  ;;  %6073 = vst [vmem:[#allocation270_spill] sm:$0xff] %v3954_v7  ;;  %v3984_v7 = vsub.f32 %v498_v15, %v754_v63 }
 0x14c   : > { %v757_v61 = vld [vmem:[%s2520_s19 + $0x790] sm:$0xff]  ;;  %6074 = vst [vmem:[#allocation271_spill] sm:$0xff] %v3956_v35  ;;  %6075 = vst [vmem:[#allocation272_spill] sm:$0xff] %v3958_v26  ;;  %v6076_v45 = vld [vmem:[#allocation109_spill] sm:$0xff] }
 0x14d   : > { %v3962_v12 = vmul.f32 %v6076_v45, %v6076_v45  ;;  %v510_v14 = vld [vmem:[%s2514_s23 + $0x7d8] sm:$0xff]  ;;  %v511_v52 = vld [vmem:[%s2514_s23 + $0x7e0] sm:$0xff]  ;;  %v512_v51 = vld [vmem:[%s2514_s23 + $0x7e8] sm:$0xff]  ;;  %6078 = vst [vmem:[#allocation273_spill] sm:$0xff] %v3974_v0  ;;  %v3997_v32 = vsub.f32 %v501_v8, %v757_v61  ;;  %v4028_v61 = vmul.f32 %v3138_v28, %v3138_v28  ;;  %v4050_v28 = vmul.f32 %v3154_v30, %v3154_v30 }
 0x14e   : > { %v760_v50 = vld [vmem:[%s2520_s19 + $0x7a8] sm:$0xff]  ;;  %v761_v1 = vld [vmem:[%s2520_s19 + $0x7b0] sm:$0xff]  ;;  %v762_v57 = vld [vmem:[%s2520_s19 + $0x7b8] sm:$0xff]  ;;  %6081 = vst [vmem:[#allocation274_spill] sm:$0xff] %v3992_v4 }
 0x14f   : > { %6077 = vst [vmem:[#allocation109_spill] sm:$0xff] %v3962_v12  ;;  %v6079_v2 = vld [vmem:[#allocation110_spill] sm:$0xff]  ;;  %v763_v12 = vld [vmem:[%s2520_s19 + $0x7c0] sm:$0xff]  ;;  %v764_v26 = vld [vmem:[%s2520_s19 + $0x7c8] sm:$0xff]  ;;  %v4010_v63 = vsub.f32 %v504_v17, %v760_v50  ;;  %v4012_v29 = vsub.f32 %v505_v42, %v761_v1  ;;  %v4014_v6 = vsub.f32 %v506_v13, %v762_v57 }
 0x150   : > { %v3978_v44 = vmul.f32 %v6079_v2, %v6079_v2  ;;  %v513_v45 = vld [vmem:[%s2514_s23 + $0x7f0] sm:$0xff]  ;;  %v766_v46 = vld [vmem:[%s2520_s19 + $0x7d8] sm:$0xff]  ;;  %v767_v62 = vld [vmem:[%s2520_s19 + $0x7e0] sm:$0xff]  ;;  %v3999_v2 = vsub.f32 %v502_v11, %v758_v53  ;;  %v4020_v11 = vsub.f32 %v507_v5, %v763_v12  ;;  %v4062_v12 = vmul.f32 %v3170_v27, %v3170_v27 }
 0x151   : > { %v765_v35 = vld [vmem:[%s2520_s19 + $0x7d0] sm:$0xff]  ;;  %v768_v9 = vld [vmem:[%s2520_s19 + $0x7e8] sm:$0xff]  ;;  %v6082_v0 = vld [vmem:[#allocation112_spill] sm:$0xff]  ;;  %v4030_v17 = vsub.f32 %v510_v14, %v766_v46  ;;  %v4032_v42 = vsub.f32 %v511_v52, %v767_v62 }
 0x152   : > { %6080 = vst [vmem:[#allocation110_spill] sm:$0xff] %v3978_v44  ;;  %v4001_v44 = vsub.f32 %v503_v23, %v759_v19  ;;  %v4005_v15 = vmul.f32 %v6082_v0, %v6082_v0  ;;  %v514_v60 = vld [vmem:[%s2514_s23 + $0x7f8] sm:$0xff]  ;;  %v769_v24 = vld [vmem:[%s2520_s19 + $0x7f0] sm:$0xff]  ;;  %v6083_v4 = vld [vmem:[#allocation113_spill] sm:$0xff]  ;;  %v4022_v23 = vsub.f32 %v508_v54, %v764_v26  ;;  %v4024_v53 = vsub.f32 %v509_v48, %v765_v35 }
 0x153   : > { %v770_v41 = vld [vmem:[%s2520_s19 + $0x7f8] sm:$0xff]  ;;  %v4018_v8 = vmul.f32 %v6083_v4, %v6083_v4  ;;  %v4034_v13 = vsub.f32 %v512_v51, %v768_v9  ;;  %v4040_v5 = vsub.f32 %v513_v45, %v769_v24  ;;  %v6085_v48 = vld [vmem:[#allocation116_spill] sm:$0xff]  ;;  %v6086_v52 = vld [vmem:[#allocation118_spill] sm:$0xff]  ;;  %v4074_v45 = vmul.f32 %v3186_v25, %v3186_v25 }
 0x154   : > { %v6084_v1 = vld [vmem:[#allocation115_spill] sm:$0xff]  ;;  %v4042_v54 = vsub.f32 %v514_v60, %v770_v41  ;;  %v4046_v19 = vmul.f32 %v6085_v48, %v6085_v48  ;;  %v4054_v51 = vmul.f32 %v6086_v52, %v6086_v52  ;;  %v6088_v14 = vld [vmem:[#allocation121_spill] sm:$0xff]  ;;  %v6089_v0 = vld [vmem:[#allocation122_spill] sm:$0xff]  ;;  %v4086_v9 = vmul.f32 %v3202_v37, %v3202_v37 }
 0x155   : > { %v4038_v50 = vmul.f32 %v6084_v1, %v6084_v1  ;;  %v6087_v35 = vld [vmem:[#allocation119_spill] sm:$0xff]  ;;  %v4066_v57 = vmul.f32 %v6088_v14, %v6088_v14  ;;  %v4070_v30 = vmul.f32 %v6089_v0, %v6089_v0  ;;  %v6090_v4 = vld [vmem:[#allocation124_spill] sm:$0xff]  ;;  %v6091_v62 = vld [vmem:[#allocation125_spill] sm:$0xff]  ;;  %v4098_v1 = vmul.f32 %v3218_v10, %v3218_v10 }
 0x156   : > { %v4058_v26 = vmul.f32 %v6087_v35, %v6087_v35  ;;  %v4078_v46 = vmul.f32 %v6090_v4, %v6090_v4  ;;  %v4082_v27 = vmul.f32 %v6091_v62, %v6091_v62  ;;  %v6092_v60 = vld [vmem:[#allocation127_spill] sm:$0xff]  ;;  %v6093_v41 = vld [vmem:[#allocation128_spill] sm:$0xff]  ;;  %v6094_v48 = vld [vmem:[#allocation130_spill] sm:$0xff]  ;;  %v4110_v14 = vmul.f32 %v3234_v58, %v3234_v58 }
 0x157   : > { %v4090_v24 = vmul.f32 %v6092_v60, %v6092_v60  ;;  %v4094_v25 = vmul.f32 %v6093_v41, %v6093_v41  ;;  %v4102_v52 = vmul.f32 %v6094_v48, %v6094_v48  ;;  %v6095_v35 = vld [vmem:[#allocation131_spill] sm:$0xff]  ;;  %v6096_v0 = vld [vmem:[#allocation133_spill] sm:$0xff]  ;;  %v6098_v62 = vld [vmem:[#allocation134_spill] sm:$0xff]  ;;  %v4122_v60 = vmul.f32 %v3250_v34, %v3250_v34 }
 0x158   : > { %v4106_v37 = vmul.f32 %v6095_v35, %v6095_v35  ;;  %v4114_v4 = vmul.f32 %v6096_v0, %v6096_v0  ;;  %v4118_v10 = vmul.f32 %v6098_v62, %v6098_v62  ;;  %v6101_v41 = vld [vmem:[#allocation136_spill] sm:$0xff]  ;;  %v6103_v35 = vld [vmem:[#allocation137_spill] sm:$0xff]  ;;  %v4134_v0 = vmul.f32 %v3266_v49, %v3266_v49 }
 0x159   : > { %6100 = vst [vmem:[#allocation115_spill] sm:$0xff] %v4122_v60  ;;  %v4126_v48 = vmul.f32 %v6101_v41, %v6101_v41  ;;  %v4130_v58 = vmul.f32 %v6103_v35, %v6103_v35  ;;  %v6109_v60 = vld [vmem:[#allocation142_spill] sm:$0xff] }
 0x15a   : > { %6097 = vst [vmem:[#allocation112_spill] sm:$0xff] %v4114_v4  ;;  %6099 = vst [vmem:[#allocation113_spill] sm:$0xff] %v4118_v10  ;;  %v6105_v4 = vld [vmem:[#allocation139_spill] sm:$0xff]  ;;  %v6107_v10 = vld [vmem:[#allocation140_spill] sm:$0xff]  ;;  %v4146_v41 = vmul.f32 %v6109_v60, %v6109_v60 }
 0x15b   : > { %6102 = vst [vmem:[#allocation116_spill] sm:$0xff] %v4126_v48  ;;  %6104 = vst [vmem:[#allocation118_spill] sm:$0xff] %v4130_v58  ;;  %v4138_v62 = vmul.f32 %v6105_v4, %v6105_v4  ;;  %v4142_v34 = vmul.f32 %v6107_v10, %v6107_v10  ;;  %v6111_v48 = vld [vmem:[#allocation143_spill] sm:$0xff]  ;;  %v6113_v58 = vld [vmem:[#allocation144_spill] sm:$0xff]  ;;  %v4158_v4 = vmul.f32 %v3298_v47, %v3298_v47 }
 0x15c   : > { %6110 = vst [vmem:[#allocation122_spill] sm:$0xff] %v4146_v41  ;;  %v4150_v35 = vmul.f32 %v6111_v48, %v6111_v48  ;;  %v4154_v49 = vmul.f32 %v6113_v58, %v6113_v58  ;;  %v6120_v41 = vld [vmem:[#allocation148_spill] sm:$0xff] }
 0x15d   : > { %6106 = vst [vmem:[#allocation119_spill] sm:$0xff] %v4138_v62  ;;  %6108 = vst [vmem:[#allocation121_spill] sm:$0xff] %v4142_v34  ;;  %v6116_v62 = vld [vmem:[#allocation146_spill] sm:$0xff]  ;;  %v6118_v34 = vld [vmem:[#allocation147_spill] sm:$0xff]  ;;  %v4170_v48 = vmul.f32 %v6120_v41, %v6120_v41 }
 0x15e   : > { %6112 = vst [vmem:[#allocation124_spill] sm:$0xff] %v4150_v35  ;;  %6114 = vst [vmem:[#allocation125_spill] sm:$0xff] %v4154_v49  ;;  %v4162_v10 = vmul.f32 %v6116_v62, %v6116_v62  ;;  %v4166_v60 = vmul.f32 %v6118_v34, %v6118_v34  ;;  %v6121_v35 = vld [vmem:[#allocation149_spill] sm:$0xff]  ;;  %v6123_v49 = vld [vmem:[#allocation150_spill] sm:$0xff] }
 0x15f   : > { %6115 = vst [vmem:[#allocation127_spill] sm:$0xff] %v4158_v4  ;;  %v4174_v58 = vmul.f32 %v6121_v35, %v6121_v35  ;;  %v4178_v47 = vmul.f32 %v6123_v49, %v6123_v49  ;;  %v6125_v4 = vld [vmem:[#allocation152_spill] sm:$0xff]  ;;  %v4194_v35 = vmul.f32 %v3346_v43, %v3346_v43 }
 0x160   : > { %6117 = vst [vmem:[#allocation128_spill] sm:$0xff] %v4162_v10  ;;  %6119 = vst [vmem:[#allocation130_spill] sm:$0xff] %v4166_v60  ;;  %v4182_v62 = vmul.f32 %v6125_v4, %v6125_v4  ;;  %v6127_v10 = vld [vmem:[#allocation153_spill] sm:$0xff]  ;;  %v6129_v60 = vld [vmem:[#allocation154_spill] sm:$0xff] }
 0x161   : > { %6122 = vst [vmem:[#allocation131_spill] sm:$0xff] %v4174_v58  ;;  %6124 = vst [vmem:[#allocation133_spill] sm:$0xff] %v4178_v47  ;;  %v4186_v34 = vmul.f32 %v6127_v10, %v6127_v10  ;;  %v4190_v41 = vmul.f32 %v6129_v60, %v6129_v60  ;;  %v6132_v58 = vld [vmem:[#allocation155_spill] sm:$0xff]  ;;  %v6134_v47 = vld [vmem:[#allocation156_spill] sm:$0xff] }
 0x162   : > { %6126 = vst [vmem:[#allocation134_spill] sm:$0xff] %v4182_v62  ;;  %6131 = vst [vmem:[#allocation139_spill] sm:$0xff] %v4194_v35  ;;  %v4198_v49 = vmul.f32 %v6132_v58, %v6132_v58  ;;  %v4202_v4 = vmul.f32 %v6134_v47, %v6134_v47  ;;  %v6136_v62 = vld [vmem:[#allocation157_spill] sm:$0xff] }
 0x163   : > { %6128 = vst [vmem:[#allocation136_spill] sm:$0xff] %v4186_v34  ;;  %6130 = vst [vmem:[#allocation137_spill] sm:$0xff] %v4190_v41  ;;  %v4206_v10 = vmul.f32 %v6136_v62, %v6136_v62  ;;  %v6137_v34 = vld [vmem:[#allocation158_spill] sm:$0xff]  ;;  %v6139_v41 = vld [vmem:[#allocation159_spill] sm:$0xff] }
 0x164   : > { %6133 = vst [vmem:[#allocation140_spill] sm:$0xff] %v4198_v49  ;;  %6135 = vst [vmem:[#allocation142_spill] sm:$0xff] %v4202_v4  ;;  %v4210_v60 = vmul.f32 %v6137_v34, %v6137_v34  ;;  %v4214_v43 = vmul.f32 %v6139_v41, %v6139_v41  ;;  %v6141_v35 = vld [vmem:[#allocation161_spill] sm:$0xff]  ;;  %v6143_v49 = vld [vmem:[#allocation162_spill] sm:$0xff]  ;;  %v4230_v34 = vmul.f32 %v3394_v38, %v3394_v38 }
 0x165   : > { %v4218_v58 = vmul.f32 %v6141_v35, %v6141_v35  ;;  %v4222_v47 = vmul.f32 %v6143_v49, %v6143_v49  ;;  %v6145_v4 = vld [vmem:[#allocation163_spill] sm:$0xff] }
 0x166   : > { %6138 = vst [vmem:[#allocation143_spill] sm:$0xff] %v4210_v60  ;;  %6140 = vst [vmem:[#allocation144_spill] sm:$0xff] %v4214_v43  ;;  %v4226_v62 = vmul.f32 %v6145_v4, %v6145_v4  ;;  %v6148_v60 = vld [vmem:[#allocation164_spill] sm:$0xff]  ;;  %v6150_v43 = vld [vmem:[#allocation165_spill] sm:$0xff] }
 0x167   : > { %6142 = vst [vmem:[#allocation146_spill] sm:$0xff] %v4218_v58  ;;  %6144 = vst [vmem:[#allocation147_spill] sm:$0xff] %v4222_v47  ;;  %v4234_v41 = vmul.f32 %v6148_v60, %v6148_v60  ;;  %v4238_v35 = vmul.f32 %v6150_v43, %v6150_v43  ;;  %v6152_v58 = vld [vmem:[#allocation166_spill] sm:$0xff]  ;;  %v6153_v47 = vld [vmem:[#allocation167_spill] sm:$0xff] }
 0x168   : > { %6146 = vst [vmem:[#allocation148_spill] sm:$0xff] %v4226_v62  ;;  %6147 = vst [vmem:[#allocation149_spill] sm:$0xff] %v4230_v34  ;;  %v4242_v49 = vmul.f32 %v6152_v58, %v6152_v58  ;;  %v4246_v4 = vmul.f32 %v6153_v47, %v6153_v47  ;;  %v6155_v62 = vld [vmem:[#allocation168_spill] sm:$0xff]  ;;  %v6157_v34 = vld [vmem:[#allocation170_spill] sm:$0xff]  ;;  %v4266_v47 = vmul.f32 %v3442_v21, %v3442_v21 }
 0x169   : > { %6149 = vst [vmem:[#allocation150_spill] sm:$0xff] %v4234_v41  ;;  %6151 = vst [vmem:[#allocation152_spill] sm:$0xff] %v4238_v35  ;;  %v4250_v38 = vmul.f32 %v6155_v62, %v6155_v62  ;;  %v4254_v60 = vmul.f32 %v6157_v34, %v6157_v34  ;;  %v6159_v41 = vld [vmem:[#allocation171_spill] sm:$0xff]  ;;  %v6161_v35 = vld [vmem:[#allocation172_spill] sm:$0xff] }
 0x16a   : > { %6154 = vst [vmem:[#allocation153_spill] sm:$0xff] %v4246_v4  ;;  %v4258_v43 = vmul.f32 %v6159_v41, %v6159_v41  ;;  %v4262_v58 = vmul.f32 %v6161_v35, %v6161_v35  ;;  %6163 = vst [vmem:[#allocation158_spill] sm:$0xff] %v4266_v47  ;;  %v6164_v4 = vld [vmem:[#allocation173_spill] sm:$0xff]  ;;  %v6173_v47 = vld [vmem:[#allocation179_spill] sm:$0xff] }
 0x16b   : > { %6156 = vst [vmem:[#allocation154_spill] sm:$0xff] %v4250_v38  ;;  %6158 = vst [vmem:[#allocation155_spill] sm:$0xff] %v4254_v60  ;;  %v4270_v62 = vmul.f32 %v6164_v4, %v6164_v4  ;;  %v6166_v38 = vld [vmem:[#allocation174_spill] sm:$0xff]  ;;  %v6168_v60 = vld [vmem:[#allocation175_spill] sm:$0xff]  ;;  %v4290_v4 = vmul.f32 %v6173_v47, %v6173_v47 }
 0x16c   : > { %6160 = vst [vmem:[#allocation156_spill] sm:$0xff] %v4258_v43  ;;  %6162 = vst [vmem:[#allocation157_spill] sm:$0xff] %v4262_v58  ;;  %v4274_v34 = vmul.f32 %v6166_v38, %v6166_v38  ;;  %v4278_v41 = vmul.f32 %v6168_v60, %v6168_v60  ;;  %v6169_v43 = vld [vmem:[#allocation176_spill] sm:$0xff]  ;;  %v6171_v58 = vld [vmem:[#allocation177_spill] sm:$0xff] }
 0x16d   : > { %6165 = vst [vmem:[#allocation159_spill] sm:$0xff] %v4270_v62  ;;  %v4282_v35 = vmul.f32 %v6169_v43, %v6169_v43  ;;  %v4286_v21 = vmul.f32 %v6171_v58, %v6171_v58  ;;  %6174 = vst [vmem:[#allocation164_spill] sm:$0xff] %v4290_v4  ;;  %v6175_v62 = vld [vmem:[#allocation180_spill] sm:$0xff]  ;;  %v4302_v43 = vmul.f32 %v3490_v20, %v3490_v20 }
 0x16e   : > { %6167 = vst [vmem:[#allocation161_spill] sm:$0xff] %v4274_v34  ;;  %v4294_v38 = vmul.f32 %v6175_v62, %v6175_v62  ;;  %v6177_v34 = vld [vmem:[#allocation181_spill] sm:$0xff]  ;;  %v6184_v4 = vld [vmem:[#allocation184_spill] sm:$0xff] }
 0x16f   : > { %6170 = vst [vmem:[#allocation162_spill] sm:$0xff] %v4282_v35  ;;  %6172 = vst [vmem:[#allocation163_spill] sm:$0xff] %v4286_v21  ;;  %v4298_v60 = vmul.f32 %v6177_v34, %v6177_v34  ;;  %v6180_v35 = vld [vmem:[#allocation182_spill] sm:$0xff]  ;;  %v6182_v21 = vld [vmem:[#allocation183_spill] sm:$0xff]  ;;  %v4314_v62 = vmul.f32 %v6184_v4, %v6184_v4 }
 0x170   : > { %6176 = vst [vmem:[#allocation165_spill] sm:$0xff] %v4294_v38  ;;  %6179 = vst [vmem:[#allocation167_spill] sm:$0xff] %v4302_v43  ;;  %v4306_v58 = vmul.f32 %v6180_v35, %v6180_v35  ;;  %v4310_v47 = vmul.f32 %v6182_v21, %v6182_v21  ;;  %v6185_v38 = vld [vmem:[#allocation185_spill] sm:$0xff]  ;;  %v6189_v43 = vld [vmem:[#allocation188_spill] sm:$0xff] }
 0x171   : > { %6178 = vst [vmem:[#allocation166_spill] sm:$0xff] %v4298_v60  ;;  %v4318_v34 = vmul.f32 %v6185_v38, %v6185_v38  ;;  %v6187_v60 = vld [vmem:[#allocation186_spill] sm:$0xff]  ;;  %v4326_v35 = vmul.f32 %v6189_v43, %v6189_v43  ;;  %v4338_v38 = vmul.f32 %v3538_v55, %v3538_v55 }
 0x172   : > { %6181 = vst [vmem:[#allocation168_spill] sm:$0xff] %v4306_v58  ;;  %6183 = vst [vmem:[#allocation170_spill] sm:$0xff] %v4310_v47  ;;  %v4322_v20 = vmul.f32 %v6187_v60, %v6187_v60  ;;  %v6191_v58 = vld [vmem:[#allocation189_spill] sm:$0xff]  ;;  %v6193_v47 = vld [vmem:[#allocation190_spill] sm:$0xff] }
 0x173   : > { %6186 = vst [vmem:[#allocation171_spill] sm:$0xff] %v4318_v34  ;;  %6190 = vst [vmem:[#allocation173_spill] sm:$0xff] %v4326_v35  ;;  %v4330_v21 = vmul.f32 %v6191_v58, %v6191_v58  ;;  %v4334_v4 = vmul.f32 %v6193_v47, %v6193_v47  ;;  %v6196_v34 = vld [vmem:[#allocation191_spill] sm:$0xff]  ;;  %v6200_v35 = vld [vmem:[#allocation193_spill] sm:$0xff] }
 0x174   : > { %6188 = vst [vmem:[#allocation172_spill] sm:$0xff] %v4322_v20  ;;  %6195 = vst [vmem:[#allocation176_spill] sm:$0xff] %v4338_v38  ;;  %v4342_v60 = vmul.f32 %v6196_v34, %v6196_v34  ;;  %v6198_v20 = vld [vmem:[#allocation192_spill] sm:$0xff]  ;;  %v4350_v58 = vmul.f32 %v6200_v35, %v6200_v35  ;;  %v6205_v38 = vld [vmem:[#allocation197_spill] sm:$0xff] }
 0x175   : > { %6192 = vst [vmem:[#allocation174_spill] sm:$0xff] %v4330_v21  ;;  %6194 = vst [vmem:[#allocation175_spill] sm:$0xff] %v4334_v4  ;;  %v4346_v43 = vmul.f32 %v6198_v20, %v6198_v20  ;;  %v6201_v21 = vld [vmem:[#allocation194_spill] sm:$0xff]  ;;  %v6203_v4 = vld [vmem:[#allocation195_spill] sm:$0xff]  ;;  %v4362_v34 = vmul.f32 %v6205_v38, %v6205_v38 }
 0x176   : > { %6197 = vst [vmem:[#allocation177_spill] sm:$0xff] %v4342_v60  ;;  %v4354_v47 = vmul.f32 %v6201_v21, %v6201_v21  ;;  %v4358_v55 = vmul.f32 %v6203_v4, %v6203_v4  ;;  %v6207_v60 = vld [vmem:[#allocation198_spill] sm:$0xff]  ;;  %v4374_v21 = vmul.f32 %v3586_v39, %v3586_v39 }
 0x177   : > { %6199 = vst [vmem:[#allocation179_spill] sm:$0xff] %v4346_v43  ;;  %6206 = vst [vmem:[#allocation182_spill] sm:$0xff] %v4362_v34  ;;  %v4366_v20 = vmul.f32 %v6207_v60, %v6207_v60  ;;  %v6209_v43 = vld [vmem:[#allocation199_spill] sm:$0xff]  ;;  %v6216_v34 = vld [vmem:[#allocation202_spill] sm:$0xff] }
 0x178   : > { %6202 = vst [vmem:[#allocation180_spill] sm:$0xff] %v4354_v47  ;;  %6204 = vst [vmem:[#allocation181_spill] sm:$0xff] %v4358_v55  ;;  %v4370_v35 = vmul.f32 %v6209_v43, %v6209_v43  ;;  %v6212_v47 = vld [vmem:[#allocation200_spill] sm:$0xff]  ;;  %v6214_v55 = vld [vmem:[#allocation201_spill] sm:$0xff]  ;;  %v4386_v60 = vmul.f32 %v6216_v34, %v6216_v34 }
 0x179   : > { %6208 = vst [vmem:[#allocation183_spill] sm:$0xff] %v4366_v20  ;;  %6211 = vst [vmem:[#allocation185_spill] sm:$0xff] %v4374_v21  ;;  %v4378_v4 = vmul.f32 %v6212_v47, %v6212_v47  ;;  %v4382_v38 = vmul.f32 %v6214_v55, %v6214_v55  ;;  %v6217_v20 = vld [vmem:[#allocation203_spill] sm:$0xff]  ;;  %v6221_v21 = vld [vmem:[#allocation206_spill] sm:$0xff] }
 0x17a   : > { %6210 = vst [vmem:[#allocation184_spill] sm:$0xff] %v4370_v35  ;;  %v4390_v43 = vmul.f32 %v6217_v20, %v6217_v20  ;;  %v6219_v35 = vld [vmem:[#allocation204_spill] sm:$0xff]  ;;  %v4398_v47 = vmul.f32 %v6221_v21, %v6221_v21  ;;  %v4410_v20 = vmul.f32 %v3634_v40, %v3634_v40 }
 0x17b   : > { %6213 = vst [vmem:[#allocation186_spill] sm:$0xff] %v4378_v4  ;;  %6215 = vst [vmem:[#allocation188_spill] sm:$0xff] %v4382_v38  ;;  %v4394_v39 = vmul.f32 %v6219_v35, %v6219_v35  ;;  %v6223_v4 = vld [vmem:[#allocation207_spill] sm:$0xff]  ;;  %v6225_v38 = vld [vmem:[#allocation208_spill] sm:$0xff] }
 0x17c   : > { %6218 = vst [vmem:[#allocation189_spill] sm:$0xff] %v4390_v43  ;;  %6222 = vst [vmem:[#allocation191_spill] sm:$0xff] %v4398_v47  ;;  %v4402_v55 = vmul.f32 %v6223_v4, %v6223_v4  ;;  %v4406_v34 = vmul.f32 %v6225_v38, %v6225_v38  ;;  %v6228_v43 = vld [vmem:[#allocation209_spill] sm:$0xff]  ;;  %v6232_v47 = vld [vmem:[#allocation211_spill] sm:$0xff] }
 0x17d   : > { %6220 = vst [vmem:[#allocation190_spill] sm:$0xff] %v4394_v39  ;;  %6227 = vst [vmem:[#allocation194_spill] sm:$0xff] %v4410_v20  ;;  %v4414_v35 = vmul.f32 %v6228_v43, %v6228_v43  ;;  %v6230_v39 = vld [vmem:[#allocation210_spill] sm:$0xff]  ;;  %v4422_v4 = vmul.f32 %v6232_v47, %v6232_v47  ;;  %v6238_v20 = vld [vmem:[#allocation215_spill] sm:$0xff] }
 0x17e   : > { %6224 = vst [vmem:[#allocation192_spill] sm:$0xff] %v4402_v55  ;;  %6226 = vst [vmem:[#allocation193_spill] sm:$0xff] %v4406_v34  ;;  %v4418_v21 = vmul.f32 %v6230_v39, %v6230_v39  ;;  %v6234_v55 = vld [vmem:[#allocation212_spill] sm:$0xff]  ;;  %v6236_v34 = vld [vmem:[#allocation213_spill] sm:$0xff]  ;;  %v4434_v43 = vmul.f32 %v6238_v20, %v6238_v20 }
 0x17f   : > { %6229 = vst [vmem:[#allocation195_spill] sm:$0xff] %v4414_v35  ;;  %6233 = vst [vmem:[#allocation198_spill] sm:$0xff] %v4422_v4  ;;  %v4426_v38 = vmul.f32 %v6234_v55, %v6234_v55  ;;  %v4430_v40 = vmul.f32 %v6236_v34, %v6236_v34  ;;  %v6240_v35 = vld [vmem:[#allocation216_spill] sm:$0xff]  ;;  %v4446_v55 = vmul.f32 %v3682_v22, %v3682_v22 }
 0x180   : > { %6231 = vst [vmem:[#allocation197_spill] sm:$0xff] %v4418_v21  ;;  %6239 = vst [vmem:[#allocation201_spill] sm:$0xff] %v4434_v43  ;;  %v4438_v39 = vmul.f32 %v6240_v35, %v6240_v35  ;;  %v6242_v21 = vld [vmem:[#allocation217_spill] sm:$0xff]  ;;  %v6249_v43 = vld [vmem:[#allocation220_spill] sm:$0xff] }
 0x181   : > { %6235 = vst [vmem:[#allocation199_spill] sm:$0xff] %v4426_v38  ;;  %6237 = vst [vmem:[#allocation200_spill] sm:$0xff] %v4430_v40  ;;  %v4442_v47 = vmul.f32 %v6242_v21, %v6242_v21  ;;  %v6245_v38 = vld [vmem:[#allocation218_spill] sm:$0xff]  ;;  %v6247_v40 = vld [vmem:[#allocation219_spill] sm:$0xff]  ;;  %v4458_v35 = vmul.f32 %v6249_v43, %v6249_v43 }
 0x182   : > { %6241 = vst [vmem:[#allocation202_spill] sm:$0xff] %v4438_v39  ;;  %6244 = vst [vmem:[#allocation204_spill] sm:$0xff] %v4446_v55  ;;  %v4450_v34 = vmul.f32 %v6245_v38, %v6245_v38  ;;  %v4454_v20 = vmul.f32 %v6247_v40, %v6247_v40  ;;  %v6251_v39 = vld [vmem:[#allocation221_spill] sm:$0xff]  ;;  %v6255_v55 = vld [vmem:[#allocation224_spill] sm:$0xff] }
 0x183   : > { %6243 = vst [vmem:[#allocation203_spill] sm:$0xff] %v4442_v47  ;;  %6250 = vst [vmem:[#allocation208_spill] sm:$0xff] %v4458_v35  ;;  %v4462_v21 = vmul.f32 %v6251_v39, %v6251_v39  ;;  %v6253_v47 = vld [vmem:[#allocation222_spill] sm:$0xff]  ;;  %v4470_v38 = vmul.f32 %v6255_v55, %v6255_v55  ;;  %v4482_v39 = vmul.f32 %v3730_v31, %v3730_v31 }
 0x184   : > { %6246 = vst [vmem:[#allocation206_spill] sm:$0xff] %v4450_v34  ;;  %6248 = vst [vmem:[#allocation207_spill] sm:$0xff] %v4454_v20  ;;  %v4466_v22 = vmul.f32 %v6253_v47, %v6253_v47  ;;  %v6257_v34 = vld [vmem:[#allocation225_spill] sm:$0xff]  ;;  %v6259_v20 = vld [vmem:[#allocation226_spill] sm:$0xff] }
 0x185   : > { %6252 = vst [vmem:[#allocation209_spill] sm:$0xff] %v4462_v21  ;;  %6256 = vst [vmem:[#allocation211_spill] sm:$0xff] %v4470_v38  ;;  %v4474_v40 = vmul.f32 %v6257_v34, %v6257_v34  ;;  %v4478_v43 = vmul.f32 %v6259_v20, %v6259_v20  ;;  %v6262_v21 = vld [vmem:[#allocation227_spill] sm:$0xff]  ;;  %v6266_v38 = vld [vmem:[#allocation229_spill] sm:$0xff] }
 0x186   : > { %6254 = vst [vmem:[#allocation210_spill] sm:$0xff] %v4466_v22  ;;  %6261 = vst [vmem:[#allocation215_spill] sm:$0xff] %v4482_v39  ;;  %v4486_v47 = vmul.f32 %v6262_v21, %v6262_v21  ;;  %v6264_v22 = vld [vmem:[#allocation228_spill] sm:$0xff]  ;;  %v4494_v34 = vmul.f32 %v6266_v38, %v6266_v38  ;;  %v6272_v39 = vld [vmem:[#allocation233_spill] sm:$0xff] }
 0x187   : > { %6258 = vst [vmem:[#allocation212_spill] sm:$0xff] %v4474_v40  ;;  %6260 = vst [vmem:[#allocation213_spill] sm:$0xff] %v4478_v43  ;;  %v4490_v55 = vmul.f32 %v6264_v22, %v6264_v22  ;;  %v6268_v40 = vld [vmem:[#allocation230_spill] sm:$0xff]  ;;  %v6270_v43 = vld [vmem:[#allocation231_spill] sm:$0xff]  ;;  %v4506_v21 = vmul.f32 %v6272_v39, %v6272_v39 }
 0x188   : > { %6263 = vst [vmem:[#allocation216_spill] sm:$0xff] %v4486_v47  ;;  %6267 = vst [vmem:[#allocation218_spill] sm:$0xff] %v4494_v34  ;;  %v4498_v20 = vmul.f32 %v6268_v40, %v6268_v40  ;;  %v4502_v31 = vmul.f32 %v6270_v43, %v6270_v43  ;;  %v6274_v47 = vld [vmem:[#allocation234_spill] sm:$0xff]  ;;  %v4518_v40 = vmul.f32 %v3778_v18, %v3778_v18 }
 0x189   : > { %6265 = vst [vmem:[#allocation217_spill] sm:$0xff] %v4490_v55  ;;  %6273 = vst [vmem:[#allocation221_spill] sm:$0xff] %v4506_v21  ;;  %v4510_v22 = vmul.f32 %v6274_v47, %v6274_v47  ;;  %v6276_v55 = vld [vmem:[#allocation235_spill] sm:$0xff]  ;;  %v6283_v21 = vld [vmem:[#allocation238_spill] sm:$0xff] }
 0x18a   : > { %6269 = vst [vmem:[#allocation219_spill] sm:$0xff] %v4498_v20  ;;  %6271 = vst [vmem:[#allocation220_spill] sm:$0xff] %v4502_v31  ;;  %v4514_v38 = vmul.f32 %v6276_v55, %v6276_v55  ;;  %v6279_v20 = vld [vmem:[#allocation236_spill] sm:$0xff]  ;;  %v6281_v31 = vld [vmem:[#allocation237_spill] sm:$0xff]  ;;  %v4530_v47 = vmul.f32 %v6283_v21, %v6283_v21 }
 0x18b   : > { %6275 = vst [vmem:[#allocation222_spill] sm:$0xff] %v4510_v22  ;;  %6278 = vst [vmem:[#allocation225_spill] sm:$0xff] %v4518_v40  ;;  %v4522_v43 = vmul.f32 %v6279_v20, %v6279_v20  ;;  %v4526_v39 = vmul.f32 %v6281_v31, %v6281_v31  ;;  %v6285_v22 = vld [vmem:[#allocation239_spill] sm:$0xff]  ;;  %v6289_v40 = vld [vmem:[#allocation242_spill] sm:$0xff] }
 0x18c   : > { %6277 = vst [vmem:[#allocation224_spill] sm:$0xff] %v4514_v38  ;;  %6284 = vst [vmem:[#allocation228_spill] sm:$0xff] %v4530_v47  ;;  %v4534_v55 = vmul.f32 %v6285_v22, %v6285_v22  ;;  %v6287_v38 = vld [vmem:[#allocation240_spill] sm:$0xff]  ;;  %v4542_v20 = vmul.f32 %v6289_v40, %v6289_v40  ;;  %v4554_v22 = vmul.f32 %v3826_v36, %v3826_v36 }
 0x18d   : > { %6280 = vst [vmem:[#allocation226_spill] sm:$0xff] %v4522_v43  ;;  %6282 = vst [vmem:[#allocation227_spill] sm:$0xff] %v4526_v39  ;;  %v4538_v18 = vmul.f32 %v6287_v38, %v6287_v38  ;;  %v6291_v43 = vld [vmem:[#allocation243_spill] sm:$0xff]  ;;  %v6293_v39 = vld [vmem:[#allocation244_spill] sm:$0xff] }
 0x18e   : > { %6286 = vst [vmem:[#allocation229_spill] sm:$0xff] %v4534_v55  ;;  %6290 = vst [vmem:[#allocation231_spill] sm:$0xff] %v4542_v20  ;;  %v4546_v31 = vmul.f32 %v6291_v43, %v6291_v43  ;;  %v4550_v21 = vmul.f32 %v6293_v39, %v6293_v39  ;;  %v6296_v55 = vld [vmem:[#allocation245_spill] sm:$0xff]  ;;  %v6300_v20 = vld [vmem:[#allocation247_spill] sm:$0xff] }
 0x18f   : > { %6288 = vst [vmem:[#allocation230_spill] sm:$0xff] %v4538_v18  ;;  %6295 = vst [vmem:[#allocation235_spill] sm:$0xff] %v4554_v22  ;;  %v4558_v38 = vmul.f32 %v6296_v55, %v6296_v55  ;;  %v6298_v18 = vld [vmem:[#allocation246_spill] sm:$0xff]  ;;  %v4566_v43 = vmul.f32 %v6300_v20, %v6300_v20  ;;  %v6306_v22 = vld [vmem:[#allocation251_spill] sm:$0xff] }
 0x190   : > { %6292 = vst [vmem:[#allocation233_spill] sm:$0xff] %v4546_v31  ;;  %6294 = vst [vmem:[#allocation234_spill] sm:$0xff] %v4550_v21  ;;  %v4562_v40 = vmul.f32 %v6298_v18, %v6298_v18  ;;  %v6302_v31 = vld [vmem:[#allocation248_spill] sm:$0xff]  ;;  %v6304_v21 = vld [vmem:[#allocation249_spill] sm:$0xff]  ;;  %v4578_v55 = vmul.f32 %v6306_v22, %v6306_v22 }
 0x191   : > { %6297 = vst [vmem:[#allocation236_spill] sm:$0xff] %v4558_v38  ;;  %6301 = vst [vmem:[#allocation238_spill] sm:$0xff] %v4566_v43  ;;  %v4570_v39 = vmul.f32 %v6302_v31, %v6302_v31  ;;  %v4574_v36 = vmul.f32 %v6304_v21, %v6304_v21  ;;  %v6308_v38 = vld [vmem:[#allocation252_spill] sm:$0xff]  ;;  %v4590_v31 = vmul.f32 %v3874_v16, %v3874_v16  ;;  %v6377_v43 = vld [vmem:[#allocation59_spill] sm:$0xff] }
 0x192   : > { %6299 = vst [vmem:[#allocation237_spill] sm:$0xff] %v4562_v40  ;;  %6307 = vst [vmem:[#allocation242_spill] sm:$0xff] %v4578_v55  ;;  %v4582_v18 = vmul.f32 %v6308_v38, %v6308_v38  ;;  %v6310_v40 = vld [vmem:[#allocation253_spill] sm:$0xff]  ;;  %v6317_v55 = vld [vmem:[#allocation256_spill] sm:$0xff] }
 0x193   : > { %6303 = vst [vmem:[#allocation239_spill] sm:$0xff] %v4570_v39  ;;  %6305 = vst [vmem:[#allocation240_spill] sm:$0xff] %v4574_v36  ;;  %v4586_v20 = vmul.f32 %v6310_v40, %v6310_v40  ;;  %v6313_v39 = vld [vmem:[#allocation254_spill] sm:$0xff]  ;;  %v6315_v36 = vld [vmem:[#allocation255_spill] sm:$0xff]  ;;  %v4602_v38 = vmul.f32 %v6317_v55, %v6317_v55 }
 0x194   : > { %6309 = vst [vmem:[#allocation243_spill] sm:$0xff] %v4582_v18  ;;  %6312 = vst [vmem:[#allocation245_spill] sm:$0xff] %v4590_v31  ;;  %v4594_v21 = vmul.f32 %v6313_v39, %v6313_v39  ;;  %v4598_v22 = vmul.f32 %v6315_v36, %v6315_v36  ;;  %v6319_v18 = vld [vmem:[#allocation257_spill] sm:$0xff]  ;;  %v6323_v31 = vld [vmem:[#allocation260_spill] sm:$0xff] }
 0x195   : > { %6311 = vst [vmem:[#allocation244_spill] sm:$0xff] %v4586_v20  ;;  %6318 = vst [vmem:[#allocation248_spill] sm:$0xff] %v4602_v38  ;;  %v4606_v40 = vmul.f32 %v6319_v18, %v6319_v18  ;;  %v6321_v20 = vld [vmem:[#allocation258_spill] sm:$0xff]  ;;  %v4614_v39 = vmul.f32 %v6323_v31, %v6323_v31  ;;  %v6329_v38 = vld [vmem:[#allocation263_spill] sm:$0xff] }
 0x196   : > { %6314 = vst [vmem:[#allocation246_spill] sm:$0xff] %v4594_v21  ;;  %6316 = vst [vmem:[#allocation247_spill] sm:$0xff] %v4598_v22  ;;  %v4610_v16 = vmul.f32 %v6321_v20, %v6321_v20  ;;  %v6325_v21 = vld [vmem:[#allocation261_spill] sm:$0xff]  ;;  %v6327_v22 = vld [vmem:[#allocation262_spill] sm:$0xff]  ;;  %v4626_v18 = vmul.f32 %v6329_v38, %v6329_v38 }
 0x197   : > { %6320 = vst [vmem:[#allocation249_spill] sm:$0xff] %v4606_v40  ;;  %6324 = vst [vmem:[#allocation252_spill] sm:$0xff] %v4614_v39  ;;  %v4618_v36 = vmul.f32 %v6325_v21, %v6325_v21  ;;  %v4622_v55 = vmul.f32 %v6327_v22, %v6327_v22  ;;  %v6331_v40 = vld [vmem:[#allocation264_spill] sm:$0xff]  ;;  %v6335_v39 = vld [vmem:[#allocation266_spill] sm:$0xff] }
 0x198   : > { %6322 = vst [vmem:[#allocation251_spill] sm:$0xff] %v4610_v16  ;;  %6330 = vst [vmem:[#allocation255_spill] sm:$0xff] %v4626_v18  ;;  %v4630_v20 = vmul.f32 %v6331_v40, %v6331_v40  ;;  %v6333_v16 = vld [vmem:[#allocation265_spill] sm:$0xff]  ;;  %v4638_v21 = vmul.f32 %v6335_v39, %v6335_v39  ;;  %v6341_v18 = vld [vmem:[#allocation270_spill] sm:$0xff] }
 0x199   : > { %6326 = vst [vmem:[#allocation253_spill] sm:$0xff] %v4618_v36  ;;  %6328 = vst [vmem:[#allocation254_spill] sm:$0xff] %v4622_v55  ;;  %v4634_v31 = vmul.f32 %v6333_v16, %v6333_v16  ;;  %v6337_v36 = vld [vmem:[#allocation267_spill] sm:$0xff]  ;;  %v6339_v55 = vld [vmem:[#allocation268_spill] sm:$0xff]  ;;  %v4650_v40 = vmul.f32 %v6341_v18, %v6341_v18 }
 0x19a   : > { %6332 = vst [vmem:[#allocation256_spill] sm:$0xff] %v4630_v20  ;;  %6336 = vst [vmem:[#allocation258_spill] sm:$0xff] %v4638_v21  ;;  %v4642_v22 = vmul.f32 %v6337_v36, %v6337_v36  ;;  %v4646_v38 = vmul.f32 %v6339_v55, %v6339_v55  ;;  %v6343_v20 = vld [vmem:[#allocation271_spill] sm:$0xff]  ;;  %v4662_v36 = vmul.f32 %v3970_v33, %v3970_v33 }
 0x19b   : > { %6334 = vst [vmem:[#allocation257_spill] sm:$0xff] %v4634_v31  ;;  %6342 = vst [vmem:[#allocation262_spill] sm:$0xff] %v4650_v40  ;;  %v4654_v16 = vmul.f32 %v6343_v20, %v6343_v20  ;;  %v6345_v31 = vld [vmem:[#allocation272_spill] sm:$0xff]  ;;  %v4666_v55 = vmul.f32 %v3972_v56, %v3972_v56  ;;  %v4674_v20 = vmul.f32 %v3984_v7, %v3984_v7 }
 0x19c   : > { %6338 = vst [vmem:[#allocation260_spill] sm:$0xff] %v4642_v22  ;;  %6340 = vst [vmem:[#allocation261_spill] sm:$0xff] %v4646_v38  ;;  %v4658_v39 = vmul.f32 %v6345_v31, %v6345_v31  ;;  %v6349_v38 = vld [vmem:[#allocation273_spill] sm:$0xff]  ;;  %v4678_v31 = vmul.f32 %v3986_v59, %v3986_v59  ;;  %v4682_v33 = vmul.f32 %v3988_v3, %v3988_v3  ;;  %v6376_v22 = vld [vmem:[#allocation58_spill] sm:$0xff] }
 0x19d   : > { %6344 = vst [vmem:[#allocation263_spill] sm:$0xff] %v4654_v16  ;;  %6347 = vst [vmem:[#allocation265_spill] sm:$0xff] %v4662_v36  ;;  %v4670_v18 = vmul.f32 %v6349_v38, %v6349_v38  ;;  %v4686_v56 = vmul.f32 %v3997_v32, %v3997_v32  ;;  %v4690_v38 = vmul.f32 %v3999_v2, %v3999_v2  ;;  %v6374_v36 = vld [vmem:[#allocation13_spill] sm:$0xff]  ;;  %v6375_v16 = vld [vmem:[#allocation56_spill] sm:$0xff] }
 0x19e   : > { %6346 = vst [vmem:[#allocation264_spill] sm:$0xff] %v4658_v39  ;;  %6348 = vst [vmem:[#allocation266_spill] sm:$0xff] %v4666_v55  ;;  %v4694_v7 = vmul.f32 %v4001_v44, %v4001_v44  ;;  %v4698_v59 = vmul.f32 %v4010_v63, %v4010_v63  ;;  %v4702_v3 = vmul.f32 %v4012_v29, %v4012_v29  ;;  %v6373_v55 = vld [vmem:[#allocation55_spill] sm:$0xff] }
 0x19f   : > { %6350 = vst [vmem:[#allocation267_spill] sm:$0xff] %v4670_v18  ;;  %6351 = vst [vmem:[#allocation268_spill] sm:$0xff] %v4674_v20  ;;  %v4706_v32 = vmul.f32 %v4014_v6, %v4014_v6  ;;  %v4710_v2 = vmul.f32 %v4020_v11, %v4020_v11  ;;  %v4714_v44 = vmul.f32 %v4022_v23, %v4022_v23 }
 0x1a0   : > { %6352 = vst [vmem:[#allocation270_spill] sm:$0xff] %v4678_v31  ;;  %6353 = vst [vmem:[#allocation271_spill] sm:$0xff] %v4682_v33  ;;  %v4718_v63 = vmul.f32 %v4024_v53, %v4024_v53  ;;  %v4722_v29 = vmul.f32 %v4030_v17, %v4030_v17  ;;  %v4727_v6 = vmul.f32 %v4032_v42, %v4032_v42  ;;  %v6369_v17 = vld [vmem:[#allocation15_spill] sm:$0xff]  ;;  %v6372_v31 = vld [vmem:[#allocation17_spill] sm:$0xff] }
 0x1a1   : > { %6354 = vst [vmem:[#allocation272_spill] sm:$0xff] %v4686_v56  ;;  %6355 = vst [vmem:[#allocation273_spill] sm:$0xff] %v4690_v38  ;;  %v4731_v11 = vmul.f32 %v4034_v13, %v4034_v13  ;;  %v4735_v23 = vmul.f32 %v4040_v5, %v4040_v5  ;;  %v4739_v53 = vmul.f32 %v4042_v54, %v4042_v54  ;;  %vm1417_vm1 = vcmp.lt.s32.totalorder %v6369_v17, 1200  ;;  %v6371_v54 = vld [vmem:[#allocation16_spill] sm:$0xff] }
 0x1a2   : > { %6356 = vst [vmem:[#allocation275_spill] sm:$0xff] %v4694_v7  ;;  %6357 = vst [vmem:[#allocation276_spill] sm:$0xff] %v4698_v59  ;;  %vm1418_vm2 = vcmp.lt.s32.totalorder %v6371_v54, 1200  ;;  %vm1419_vm3 = vcmp.lt.s32.totalorder %v6372_v31, 1200  ;;  %v4764_v39 = vadd.s32 %v6374_v36, %v6373_v55  ;;  %v4768_v40 = vadd.s32 %v6374_v36, %v6375_v16  ;;  %v6379_v55 = vld [vmem:[#allocation18_spill] sm:$0xff]  ;;  %v6408_v17 = vld [vmem:[#allocation72_spill] sm:$0xff] }
 0x1a3   : > { %6358 = vst [vmem:[#allocation277_spill] sm:$0xff] %v4702_v3  ;;  %6359 = vst [vmem:[#allocation278_spill] sm:$0xff] %v4706_v32  ;;  %v6364_v3 = vld [vmem:[#allocation14_spill] sm:$0xff]  ;;  %v4772_v21 = vadd.s32 %v6374_v36, %v6376_v22  ;;  %v4776_v47 = vadd.s32 %v6374_v36, %v6377_v43  ;;  %vm1420_vm4 = vcmp.lt.s32.totalorder %v6379_v55, 1200 }
 0x1a4   : > { %6360 = vst [vmem:[#allocation279_spill] sm:$0xff] %v4710_v2  ;;  %6361 = vst [vmem:[#allocation280_spill] sm:$0xff] %v4714_v44  ;;  %vm1416_vm0 = vcmp.lt.s32.totalorder %v6364_v3, 1200  ;;  %v6415_v54 = vld [vmem:[#allocation90_spill] sm:$0xff] }
 0x1a5   : > { %6362 = vst [vmem:[#allocation281_spill] sm:$0xff] %v4718_v63  ;;  %6363 = vst [vmem:[#allocation282_spill] sm:$0xff] %v4722_v29  ;;  %v6370_v29 = vld [vmem:[#allocation12_spill] sm:$0xff]  ;;  %v6420_v31 = vld [vmem:[#allocation102_spill] sm:$0xff] }
 0x1a6   : > { %6365 = vst [vmem:[#allocation14_spill] sm:$0xff] %v4727_v6  ;;  %6366 = vst [vmem:[#allocation283_spill] sm:$0xff] %v4731_v11  ;;  %v1333_v63 = vadd.s32 368, %v6370_v29  ;;  %v1334_v44 = vadd.s32 376, %v6370_v29  ;;  %v1335_v42 = vadd.s32 384, %v6370_v29  ;;  %v1336_v6 = vadd.s32 392, %v6370_v29 }
 0x1a7   : > { %6367 = vst [vmem:[#allocation284_spill] sm:$0xff] %v4735_v23  ;;  %6368 = vst [vmem:[#allocation285_spill] sm:$0xff] %v4739_v53  ;;  %v1337_v13 = vadd.s32 400, %v6370_v29  ;;  %v1338_v11 = vadd.s32 408, %v6370_v29  ;;  %v1339_v5 = vadd.s32 416, %v6370_v29  ;;  %v1340_v23 = vadd.s32 424, %v6370_v29 }
 0x1a8   : > { %v1341_v53 = vadd.s32 432, %v6370_v29  ;;  %v1342_v2 = vadd.s32 440, %v6370_v29  ;;  %v1343_v32 = vadd.s32 448, %v6370_v29  ;;  %v1344_v59 = vadd.s32 456, %v6370_v29  ;;  %v6425_v55 = vld [vmem:[#allocation114_spill] sm:$0xff] }
 0x1a9   : > { %v1345_v7 = vadd.s32 464, %v6370_v29  ;;  %v1346_v38 = vadd.s32 472, %v6370_v29  ;;  %v1347_v56 = vadd.s32 480, %v6370_v29  ;;  %v1348_v33 = vadd.s32 488, %v6370_v29 }
 0x1aa   : > { %v1349_v20 = vadd.s32 496, %v6370_v29  ;;  %v1350_v18 = vadd.s32 504, %v6370_v29  ;;  %v4779_v34 = vadd.s32 %v6374_v36, %v1333_v63  ;;  %v4782_v29 = vadd.s32 %v6374_v36, %v1334_v44 }
 0x1ab   : > { %v4786_v35 = vadd.s32 %v6374_v36, %v1335_v42  ;;  %v4789_v16 = vadd.s32 %v6374_v36, %v1336_v6  ;;  %v4792_v22 = vadd.s32 %v6374_v36, %v1337_v13  ;;  %v4795_v43 = vadd.s32 %v6374_v36, %v1338_v11  ;;  %v6388_v6 = vld [vmem:[#allocation19_spill] sm:$0xff] }
 0x1ac   : > { %6378 = vst [vmem:[#allocation15_spill] sm:$0xff] %v4782_v29  ;;  %v4798_v63 = vadd.s32 %v6374_v36, %v1339_v5  ;;  %v4801_v44 = vadd.s32 %v6374_v36, %v1340_v23  ;;  %v4804_v4 = vadd.s32 %v6374_v36, %v1341_v53  ;;  %v4807_v42 = vadd.s32 %v6374_v36, %v1342_v2  ;;  %v6394_v53 = vld [vmem:[#allocation60_spill] sm:$0xff]  ;;  %v6414_v29 = vld [vmem:[#allocation87_spill] sm:$0xff] }
 0x1ad   : > { %6380 = vst [vmem:[#allocation12_spill] sm:$0xff] %v4786_v35  ;;  %6381 = vst [vmem:[#allocation16_spill] sm:$0xff] %v4789_v16  ;;  %vm1421_vm5 = vcmp.lt.s32.totalorder %v6388_v6, 1200  ;;  %v4811_v13 = vadd.s32 %v6374_v36, %v1343_v32  ;;  %v4814_v11 = vadd.s32 %v6374_v36, %v1344_v59  ;;  %v4817_v5 = vadd.s32 %v6374_v36, %v1345_v7  ;;  %v6412_v16 = vld [vmem:[#allocation81_spill] sm:$0xff]  ;;  %v6413_v35 = vld [vmem:[#allocation84_spill] sm:$0xff] }
 0x1ae   : > { %6382 = vst [vmem:[#allocation17_spill] sm:$0xff] %v4792_v22  ;;  %6383 = vst [vmem:[#allocation55_spill] sm:$0xff] %v4795_v43  ;;  %v4820_v23 = vadd.s32 %v6374_v36, %v1346_v38  ;;  %v1480_v2 = vsel %vm1416_vm0, %v6394_v53, 0.0  ;;  %v6398_v38 = vld [vmem:[#allocation64_spill] sm:$0xff]  ;;  %v4848_v43 = vadd.s32 %v6374_v36, %v1347_v56  ;;  %v4851_v3 = vadd.s32 %v6374_v36, %v1348_v33  ;;  %v6407_v22 = vld [vmem:[#allocation69_spill] sm:$0xff] }
 0x1af   : > { %6384 = vst [vmem:[#allocation13_spill] sm:$0xff] %v4798_v63  ;;  %6385 = vst [vmem:[#allocation56_spill] sm:$0xff] %v4801_v44  ;;  %v6393_v44 = vld [vmem:[#allocation20_spill] sm:$0xff]  ;;  %v6401_v63 = vld [vmem:[#allocation67_spill] sm:$0xff]  ;;  %v1489_v56 = vsel %vm1418_vm2, %v6408_v17, 0.0  ;;  %v1493_v17 = vsel %vm1419_vm3, %v6413_v35, 0.0 }
 0x1b0   : > { %6386 = vst [vmem:[#allocation58_spill] sm:$0xff] %v4804_v4  ;;  %6387 = vst [vmem:[#allocation59_spill] sm:$0xff] %v4807_v42  ;;  %vm1422_vm6 = vcmp.lt.s32.totalorder %v6393_v44, 1200  ;;  %v6395_v42 = vld [vmem:[#allocation61_spill] sm:$0xff]  ;;  %v6400_v4 = vld [vmem:[#allocation66_spill] sm:$0xff] }
 0x1b1   : > { %6389 = vst [vmem:[#allocation18_spill] sm:$0xff] %v4811_v13  ;;  %6390 = vst [vmem:[#allocation19_spill] sm:$0xff] %v4814_v11  ;;  %v1481_v32 = vsel %vm1416_vm0, %v6395_v42, 0.0  ;;  %v6396_v13 = vld [vmem:[#allocation62_spill] sm:$0xff]  ;;  %v6397_v11 = vld [vmem:[#allocation63_spill] sm:$0xff]  ;;  %v1486_v42 = vsel %vm1417_vm1, %v6400_v4, 0.0 }
 0x1b2   : > { %6391 = vst [vmem:[#allocation286_spill] sm:$0xff] %v4817_v5  ;;  %6392 = vst [vmem:[#allocation287_spill] sm:$0xff] %v4820_v23  ;;  %v1482_v59 = vsel %vm1416_vm0, %v6396_v13, 0.0  ;;  %v1483_v7 = vsel %vm1416_vm0, %v6397_v11, 0.0  ;;  %v1484_v23 = vsel %vm1417_vm1, %v6398_v38, 0.0  ;;  %v6399_v5 = vld [vmem:[#allocation65_spill] sm:$0xff]  ;;  %v4854_v11 = vadd.s32 %v6374_v36, %v1349_v20 }
 0x1b3   : > { %v1485_v53 = vsel %vm1417_vm1, %v6399_v5, 0.0  ;;  %v1487_v13 = vsel %vm1417_vm1, %v6401_v63, 0.0  ;;  %6402 = vst [vmem:[#allocation20_spill] sm:$0xff] %v4848_v43  ;;  %6403 = vst [vmem:[#allocation60_spill] sm:$0xff] %v4851_v3  ;;  %v4857_v38 = vadd.s32 %v6374_v36, %v1350_v18  ;;  %v6406_v5 = vld [vmem:[#allocation21_spill] sm:$0xff]  ;;  %v1488_v4 = vsel %vm1418_vm2, %v6407_v22, 0.0 }
 0x1b4   : > { %6404 = vst [vmem:[#allocation61_spill] sm:$0xff] %v4854_v11  ;;  %vm1423_vm7 = vcmp.lt.s32.totalorder %v6406_v5, 1200  ;;  %v6409_v63 = vld [vmem:[#allocation75_spill] sm:$0xff]  ;;  %v6410_v3 = vld [vmem:[#allocation78_spill] sm:$0xff]  ;;  %v1740_v18 = vadd.f32 %v1484_v23, %v1480_v2  ;;  %v1866_v11 = vadd.f32 %v1486_v42, %v1482_v59  ;;  %v1929_v43 = vadd.f32 %v1487_v13, %v1483_v7  ;;  %v6418_v42 = vld [vmem:[#allocation96_spill] sm:$0xff] }
 0x1b5   : > { %6405 = vst [vmem:[#allocation62_spill] sm:$0xff] %v4857_v38  ;;  %v1490_v33 = vsel %vm1418_vm2, %v6409_v63, 0.0  ;;  %v1491_v20 = vsel %vm1418_vm2, %v6410_v3, 0.0  ;;  %v6411_v36 = vld [vmem:[#allocation22_spill] sm:$0xff]  ;;  %v1803_v38 = vadd.f32 %v1485_v53, %v1481_v32  ;;  %v1492_v22 = vsel %vm1419_vm3, %v6412_v16, 0.0  ;;  %v6416_v23 = vld [vmem:[#allocation23_spill] sm:$0xff] }
 0x1b6   : > { %vm1424_vm8 = vcmp.lt.s32.totalorder %v6411_v36, 1200  ;;  %v1494_v63 = vsel %vm1419_vm3, %v6414_v29, 0.0  ;;  %v1495_v3 = vsel %vm1419_vm3, %v6415_v54, 0.0  ;;  %vm1425_vm9 = vcmp.lt.s32.totalorder %v6416_v23, 1200  ;;  %v6417_v53 = vld [vmem:[#allocation93_spill] sm:$0xff]  ;;  %v6419_v13 = vld [vmem:[#allocation99_spill] sm:$0xff] }
 0x1b7   : > { %v1741_v2 = vadd.f32 %v1740_v18, %v1488_v4  ;;  %v1804_v32 = vadd.f32 %v1803_v38, %v1489_v56  ;;  %v1867_v59 = vadd.f32 %v1866_v11, %v1490_v33  ;;  %v1930_v7 = vadd.f32 %v1929_v43, %v1491_v20  ;;  %v6421_v4 = vld [vmem:[#allocation24_spill] sm:$0xff]  ;;  %v6422_v33 = vld [vmem:[#allocation105_spill] sm:$0xff]  ;;  %v6430_v6 = vld [vmem:[#allocation126_spill] sm:$0xff] }
 0x1b8   : > { %v1496_v16 = vsel %vm1420_vm4, %v6417_v53, 0.0  ;;  %v1497_v35 = vsel %vm1420_vm4, %v6418_v42, 0.0  ;;  %v1498_v29 = vsel %vm1420_vm4, %v6419_v13, 0.0  ;;  %v1499_v54 = vsel %vm1420_vm4, %v6420_v31, 0.0  ;;  %v6423_v18 = vld [vmem:[#allocation108_spill] sm:$0xff]  ;;  %v6424_v42 = vld [vmem:[#allocation111_spill] sm:$0xff] }
 0x1b9   : > { %vm1426_vm10 = vcmp.lt.s32.totalorder %v6421_v4, 1200  ;;  %v1742_v11 = vadd.f32 %v1741_v2, %v1492_v22  ;;  %v1805_v43 = vadd.f32 %v1804_v32, %v1493_v17  ;;  %v1868_v38 = vadd.f32 %v1867_v59, %v1494_v63  ;;  %v6426_v22 = vld [vmem:[#allocation25_spill] sm:$0xff]  ;;  %v6435_v44 = vld [vmem:[#allocation138_spill] sm:$0xff]  ;;  %v6440_v5 = vld [vmem:[#allocation151_spill] sm:$0xff] }
 0x1ba   : > { %v1931_v56 = vadd.f32 %v1930_v7, %v1495_v3  ;;  %v1500_v20 = vsel %vm1421_vm5, %v6422_v33, 0.0  ;;  %v1501_v53 = vsel %vm1421_vm5, %v6423_v18, 0.0  ;;  %v1502_v13 = vsel %vm1421_vm5, %v6424_v42, 0.0  ;;  %v6427_v32 = vld [vmem:[#allocation117_spill] sm:$0xff]  ;;  %v6428_v7 = vld [vmem:[#allocation120_spill] sm:$0xff]  ;;  %v6429_v18 = vld [vmem:[#allocation123_spill] sm:$0xff] }
 0x1bb   : > { %v1503_v31 = vsel %vm1421_vm5, %v6425_v55, 0.0  ;;  %vm1427_vm11 = vcmp.lt.s32.totalorder %v6426_v22, 1200  ;;  %v1743_v17 = vadd.f32 %v1742_v11, %v1496_v16  ;;  %v1806_v63 = vadd.f32 %v1805_v43, %v1497_v35  ;;  %v6431_v16 = vld [vmem:[#allocation26_spill] sm:$0xff]  ;;  %v6432_v43 = vld [vmem:[#allocation129_spill] sm:$0xff]  ;;  %v6455_v4 = vld [vmem:[#allocation187_spill] sm:$0xff] }
 0x1bc   : > { %v1869_v3 = vadd.f32 %v1868_v38, %v1498_v29  ;;  %v1932_v2 = vadd.f32 %v1931_v56, %v1499_v54  ;;  %v1504_v59 = vsel %vm1422_vm6, %v6427_v32, 0.0  ;;  %v1505_v33 = vsel %vm1422_vm6, %v6428_v7, 0.0  ;;  %v6433_v56 = vld [vmem:[#allocation132_spill] sm:$0xff]  ;;  %v6434_v7 = vld [vmem:[#allocation135_spill] sm:$0xff]  ;;  %v6445_v36 = vld [vmem:[#allocation73_spill] sm:$0xff] }
 0x1bd   : > { %v1506_v42 = vsel %vm1422_vm6, %v6429_v18, 0.0  ;;  %v1507_v55 = vsel %vm1422_vm6, %v6430_v6, 0.0  ;;  %vm1428_vm12 = vcmp.lt.s32.totalorder %v6431_v16, 1200  ;;  %v1744_v35 = vadd.f32 %v1743_v17, %v1500_v20  ;;  %v6436_v20 = vld [vmem:[#allocation27_spill] sm:$0xff]  ;;  %v6450_v23 = vld [vmem:[#allocation77_spill] sm:$0xff] }
 0x1be   : > { %v1807_v29 = vadd.f32 %v1806_v63, %v1501_v53  ;;  %v1870_v54 = vadd.f32 %v1869_v3, %v1502_v13  ;;  %v1933_v11 = vadd.f32 %v1932_v2, %v1503_v31  ;;  %v1508_v38 = vsel %vm1423_vm7, %v6432_v43, 0.0  ;;  %v6437_v63 = vld [vmem:[#allocation141_spill] sm:$0xff] }
 0x1bf   : > { %v1509_v32 = vsel %vm1423_vm7, %v6433_v56, 0.0  ;;  %v1510_v18 = vsel %vm1423_vm7, %v6434_v7, 0.0  ;;  %v1511_v6 = vsel %vm1423_vm7, %v6435_v44, 0.0  ;;  %vm1429_vm13 = vcmp.lt.s32.totalorder %v6436_v20, 1200  ;;  %v6438_v2 = vld [vmem:[#allocation145_spill] sm:$0xff]  ;;  %v6439_v56 = vld [vmem:[#allocation68_spill] sm:$0xff] }
 0x1c0   : > { %v1745_v53 = vadd.f32 %v1744_v35, %v1504_v59  ;;  %v1808_v13 = vadd.f32 %v1807_v29, %v1505_v33  ;;  %v1871_v31 = vadd.f32 %v1870_v54, %v1506_v42  ;;  %v1934_v17 = vadd.f32 %v1933_v11, %v1507_v55  ;;  %v6441_v59 = vld [vmem:[#allocation28_spill] sm:$0xff]  ;;  %v6442_v29 = vld [vmem:[#allocation70_spill] sm:$0xff]  ;;  %v6443_v11 = vld [vmem:[#allocation71_spill] sm:$0xff] }
 0x1c1   : > { %v1512_v3 = vsel %vm1424_vm8, %v6437_v63, 0.0  ;;  %v1513_v43 = vsel %vm1424_vm8, %v6438_v2, 0.0  ;;  %v1514_v7 = vsel %vm1424_vm8, %v6439_v56, 0.0  ;;  %v1515_v44 = vsel %vm1424_vm8, %v6440_v5, 0.0  ;;  %v6444_v2 = vld [vmem:[#allocation160_spill] sm:$0xff]  ;;  %v6460_v22 = vld [vmem:[#allocation85_spill] sm:$0xff] }
 0x1c2   : > { %vm1430_vm14 = vcmp.lt.s32.totalorder %v6441_v59, 1200  ;;  %v1746_v33 = vadd.f32 %v1745_v53, %v1508_v38  ;;  %v1809_v42 = vadd.f32 %v1808_v13, %v1509_v32  ;;  %v1872_v55 = vadd.f32 %v1871_v31, %v1510_v18  ;;  %v6446_v38 = vld [vmem:[#allocation29_spill] sm:$0xff]  ;;  %v6447_v13 = vld [vmem:[#allocation74_spill] sm:$0xff]  ;;  %v6470_v20 = vld [vmem:[#allocation223_spill] sm:$0xff] }
 0x1c3   : > { %v1935_v35 = vadd.f32 %v1934_v17, %v1511_v6  ;;  %v1516_v54 = vsel %vm1425_vm9, %v6442_v29, 0.0  ;;  %v1517_v63 = vsel %vm1425_vm9, %v6443_v11, 0.0  ;;  %v1518_v56 = vsel %vm1425_vm9, %v6444_v2, 0.0  ;;  %v6448_v17 = vld [vmem:[#allocation169_spill] sm:$0xff]  ;;  %v6449_v11 = vld [vmem:[#allocation76_spill] sm:$0xff] }
 0x1c4   : > { %v1519_v5 = vsel %vm1425_vm9, %v6445_v36, 0.0  ;;  %vm1431_vm15 = vcmp.lt.s32.totalorder %v6446_v38, 1200  ;;  %v1747_v32 = vadd.f32 %v1746_v33, %v1512_v3  ;;  %v1810_v18 = vadd.f32 %v1809_v42, %v1513_v43  ;;  %v6451_v3 = vld [vmem:[#allocation30_spill] sm:$0xff]  ;;  %v6465_v16 = vld [vmem:[#allocation89_spill] sm:$0xff] }
 0x1c5   : > { %v1873_v6 = vadd.f32 %v1872_v55, %v1514_v7  ;;  %v1936_v53 = vadd.f32 %v1935_v35, %v1515_v44  ;;  %v1520_v31 = vsel %vm1426_vm10, %v6447_v13, 0.0  ;;  %v1521_v29 = vsel %vm1426_vm10, %v6448_v17, 0.0  ;;  %v6452_v42 = vld [vmem:[#allocation178_spill] sm:$0xff]  ;;  %v6453_v35 = vld [vmem:[#allocation79_spill] sm:$0xff]  ;;  %v6454_v17 = vld [vmem:[#allocation80_spill] sm:$0xff] }
 0x1c6   : > { %v1522_v2 = vsel %vm1426_vm10, %v6449_v11, 0.0  ;;  %v1523_v36 = vsel %vm1426_vm10, %v6450_v23, 0.0  ;;  %vm1432_vm0 = vcmp.lt.s32.totalorder %v6451_v3, 1200  ;;  %v1748_v43 = vadd.f32 %v1747_v32, %v1516_v54  ;;  %v6456_v54 = vld [vmem:[#allocation31_spill] sm:$0xff]  ;;  %v6475_v59 = vld [vmem:[#allocation97_spill] sm:$0xff] }
 0x1c7   : > { %v1811_v7 = vadd.f32 %v1810_v18, %v1517_v63  ;;  %v1874_v44 = vadd.f32 %v1873_v6, %v1518_v56  ;;  %v1937_v33 = vadd.f32 %v1936_v53, %v1519_v5  ;;  %v1524_v55 = vsel %vm1427_vm11, %v6452_v42, 0.0  ;;  %v6457_v18 = vld [vmem:[#allocation82_spill] sm:$0xff]  ;;  %v6458_v53 = vld [vmem:[#allocation83_spill] sm:$0xff]  ;;  %v6480_v38 = vld [vmem:[#allocation101_spill] sm:$0xff] }
 0x1c8   : > { %v1525_v13 = vsel %vm1427_vm11, %v6453_v35, 0.0  ;;  %v1526_v11 = vsel %vm1427_vm11, %v6454_v17, 0.0  ;;  %v1527_v23 = vsel %vm1427_vm11, %v6455_v4, 0.0  ;;  %vm1433_vm1 = vcmp.lt.s32.totalorder %v6456_v54, 1200  ;;  %v6459_v35 = vld [vmem:[#allocation196_spill] sm:$0xff]  ;;  %v6485_v3 = vld [vmem:[#allocation259_spill] sm:$0xff] }
 0x1c9   : > { %v1749_v63 = vadd.f32 %v1748_v43, %v1520_v31  ;;  %v1812_v56 = vadd.f32 %v1811_v7, %v1521_v29  ;;  %v1875_v5 = vadd.f32 %v1874_v44, %v1522_v2  ;;  %v1938_v32 = vadd.f32 %v1937_v33, %v1523_v36  ;;  %v6461_v31 = vld [vmem:[#allocation32_spill] sm:$0xff]  ;;  %v6462_v7 = vld [vmem:[#allocation86_spill] sm:$0xff]  ;;  %v6463_v33 = vld [vmem:[#allocation205_spill] sm:$0xff] }
 0x1ca   : > { %v1528_v6 = vsel %vm1428_vm12, %v6457_v18, 0.0  ;;  %v1529_v42 = vsel %vm1428_vm12, %v6458_v53, 0.0  ;;  %v1530_v17 = vsel %vm1428_vm12, %v6459_v35, 0.0  ;;  %v1531_v4 = vsel %vm1428_vm12, %v6460_v22, 0.0  ;;  %v6464_v53 = vld [vmem:[#allocation88_spill] sm:$0xff]  ;;  %v6490_v54 = vld [vmem:[#allocation109_spill] sm:$0xff] }
 0x1cb   : > { %vm1434_vm2 = vcmp.lt.s32.totalorder %v6461_v31, 1200  ;;  %v1750_v29 = vadd.f32 %v1749_v63, %v1524_v55  ;;  %v1813_v2 = vadd.f32 %v1812_v56, %v1525_v13  ;;  %v1876_v36 = vadd.f32 %v1875_v5, %v1526_v11  ;;  %v6466_v55 = vld [vmem:[#allocation33_spill] sm:$0xff]  ;;  %v6467_v56 = vld [vmem:[#allocation214_spill] sm:$0xff] }
 0x1cc   : > { %v1939_v43 = vadd.f32 %v1938_v32, %v1527_v23  ;;  %v1532_v44 = vsel %vm1429_vm13, %v6462_v7, 0.0  ;;  %v1533_v18 = vsel %vm1429_vm13, %v6463_v33, 0.0  ;;  %v1534_v35 = vsel %vm1429_vm13, %v6464_v53, 0.0  ;;  %v6468_v32 = vld [vmem:[#allocation91_spill] sm:$0xff]  ;;  %v6469_v33 = vld [vmem:[#allocation92_spill] sm:$0xff] }
 0x1cd   : > { %v1535_v22 = vsel %vm1429_vm13, %v6465_v16, 0.0  ;;  %vm1435_vm3 = vcmp.lt.s32.totalorder %v6466_v55, 1200  ;;  %v1751_v13 = vadd.f32 %v1750_v29, %v1528_v6  ;;  %v1814_v11 = vadd.f32 %v1813_v2, %v1529_v42  ;;  %v6471_v6 = vld [vmem:[#allocation34_spill] sm:$0xff]  ;;  %v6495_v55 = vld [vmem:[#allocation40_spill] sm:$0xff] }
 0x1ce   : > { %v1877_v23 = vadd.f32 %v1876_v36, %v1530_v17  ;;  %v1940_v63 = vadd.f32 %v1939_v43, %v1531_v4  ;;  %v1536_v5 = vsel %vm1430_vm14, %v6467_v56, 0.0  ;;  %v1537_v7 = vsel %vm1430_vm14, %v6468_v32, 0.0  ;;  %v6472_v2 = vld [vmem:[#allocation94_spill] sm:$0xff]  ;;  %v6473_v43 = vld [vmem:[#allocation95_spill] sm:$0xff]  ;;  %v6474_v32 = vld [vmem:[#allocation232_spill] sm:$0xff] }
 0x1cf   : > { %v1538_v53 = vsel %vm1430_vm14, %v6469_v33, 0.0  ;;  %v1539_v16 = vsel %vm1430_vm14, %v6470_v20, 0.0  ;;  %vm1436_vm4 = vcmp.lt.s32.totalorder %v6471_v6, 1200  ;;  %v1752_v42 = vadd.f32 %v1751_v13, %v1532_v44  ;;  %v6476_v44 = vld [vmem:[#allocation35_spill] sm:$0xff]  ;;  %v6496_v6 = vld [vmem:[#allocation41_spill] sm:$0xff] }
 0x1d0   : > { %v1815_v17 = vadd.f32 %v1814_v11, %v1533_v18  ;;  %v1878_v4 = vadd.f32 %v1877_v23, %v1534_v35  ;;  %v1941_v29 = vadd.f32 %v1940_v63, %v1535_v22  ;;  %v1540_v36 = vsel %vm1431_vm15, %v6472_v2, 0.0  ;;  %v6477_v11 = vld [vmem:[#allocation98_spill] sm:$0xff]  ;;  %v6478_v63 = vld [vmem:[#allocation241_spill] sm:$0xff] }
 0x1d1   : > { %v1541_v56 = vsel %vm1431_vm15, %v6473_v43, 0.0  ;;  %v1542_v33 = vsel %vm1431_vm15, %v6474_v32, 0.0  ;;  %v1543_v20 = vsel %vm1431_vm15, %v6475_v59, 0.0  ;;  %vm1437_vm5 = vcmp.lt.s32.totalorder %v6476_v44, 1200  ;;  %v6479_v43 = vld [vmem:[#allocation100_spill] sm:$0xff]  ;;  %v6497_v44 = vld [vmem:[#allocation42_spill] sm:$0xff] }
 0x1d2   : > { %v1753_v18 = vadd.f32 %v1752_v42, %v1536_v5  ;;  %v1816_v35 = vadd.f32 %v1815_v17, %v1537_v7  ;;  %v1879_v22 = vadd.f32 %v1878_v4, %v1538_v53  ;;  %v1942_v13 = vadd.f32 %v1941_v29, %v1539_v16  ;;  %v6481_v5 = vld [vmem:[#allocation36_spill] sm:$0xff]  ;;  %v6482_v17 = vld [vmem:[#allocation250_spill] sm:$0xff]  ;;  %v6483_v29 = vld [vmem:[#allocation103_spill] sm:$0xff] }
 0x1d3   : > { %v1544_v23 = vsel %vm1432_vm0, %v6477_v11, 0.0  ;;  %v1545_v2 = vsel %vm1432_vm0, %v6478_v63, 0.0  ;;  %v1546_v32 = vsel %vm1432_vm0, %v6479_v43, 0.0  ;;  %v1547_v59 = vsel %vm1432_vm0, %v6480_v38, 0.0  ;;  %v6484_v63 = vld [vmem:[#allocation104_spill] sm:$0xff] }
 0x1d4   : > { %vm1438_vm6 = vcmp.lt.s32.totalorder %v6481_v5, 1200  ;;  %v1754_v7 = vadd.f32 %v1753_v18, %v1540_v36  ;;  %v1817_v53 = vadd.f32 %v1816_v35, %v1541_v56  ;;  %v1880_v16 = vadd.f32 %v1879_v22, %v1542_v33  ;;  %v6486_v36 = vld [vmem:[#allocation37_spill] sm:$0xff]  ;;  %v6487_v35 = vld [vmem:[#allocation106_spill] sm:$0xff]  ;;  %v6498_v5 = vld [vmem:[#allocation43_spill] sm:$0xff] }
 0x1d5   : > { %v1943_v42 = vadd.f32 %v1942_v13, %v1543_v20  ;;  %v1548_v4 = vsel %vm1433_vm1, %v6482_v17, 0.0  ;;  %v1549_v11 = vsel %vm1433_vm1, %v6483_v29, 0.0  ;;  %v1550_v43 = vsel %vm1433_vm1, %v6484_v63, 0.0  ;;  %v6488_v13 = vld [vmem:[#allocation107_spill] sm:$0xff]  ;;  %v6489_v29 = vld [vmem:[#allocation269_spill] sm:$0xff] }
 0x1d6   : > { %v1551_v38 = vsel %vm1433_vm1, %v6485_v3, 0.0  ;;  %vm1439_vm7 = vcmp.lt.s32.totalorder %v6486_v36, 1200  ;;  %v1755_v56 = vadd.f32 %v1754_v7, %v1544_v23  ;;  %v1818_v33 = vadd.f32 %v1817_v53, %v1545_v2  ;;  %v6491_v23 = vld [vmem:[#allocation38_spill] sm:$0xff]  ;;  %v6499_v36 = vld [vmem:[#allocation112_spill] sm:$0xff] }
 0x1d7   : > { %v1881_v20 = vadd.f32 %v1880_v16, %v1546_v32  ;;  %v1944_v18 = vadd.f32 %v1943_v42, %v1547_v59  ;;  %v1552_v22 = vsel %vm1434_vm2, %v6487_v35, 0.0  ;;  %v1553_v17 = vsel %vm1434_vm2, %v6488_v13, 0.0  ;;  %v6492_v53 = vld [vmem:[#allocation110_spill] sm:$0xff] }
 0x1d8   : > { %v1554_v63 = vsel %vm1434_vm2, %v6489_v29, 0.0  ;;  %v1555_v3 = vsel %vm1434_vm2, %v6490_v54, 0.0  ;;  %vm1440_vm8 = vcmp.lt.s32.totalorder %v6491_v23, 1200  ;;  %v1756_v2 = vadd.f32 %v1755_v56, %v1548_v4  ;;  %v6493_v42 = vld [vmem:[#allocation274_spill] sm:$0xff]  ;;  %v6494_v4 = vld [vmem:[#allocation39_spill] sm:$0xff] }
 0x1d9   : > { %v1819_v32 = vadd.f32 %v1818_v33, %v1549_v11  ;;  %v1882_v59 = vadd.f32 %v1881_v20, %v1550_v43  ;;  %v1945_v7 = vadd.f32 %v1944_v18, %v1551_v38  ;;  %v1556_v16 = vsel %vm1435_vm3, %v6492_v53, 0.0  ;;  %v6504_v23 = vld [vmem:[#allocation118_spill] sm:$0xff] }
 0x1da   : > { %v1557_v35 = vsel %vm1435_vm3, %v6493_v42, 0.0  ;;  %v1558_v13 = vsel %vm1435_vm3, %v4005_v15, 0.0  ;;  %v1559_v31 = vsel %vm1435_vm3, %v4018_v8, 0.0  ;;  %vm1441_vm9 = vcmp.lt.s32.totalorder %v6494_v4, 1200  ;;  %v6508_v4 = vld [vmem:[#allocation122_spill] sm:$0xff] }
 0x1db   : > { %v1757_v11 = vadd.f32 %v1756_v2, %v1552_v22  ;;  %v1820_v43 = vadd.f32 %v1819_v32, %v1553_v17  ;;  %v1883_v38 = vadd.f32 %v1882_v59, %v1554_v63  ;;  %v1946_v56 = vadd.f32 %v1945_v7, %v1555_v3 }
 0x1dc   : > { %v1560_v33 = vsel %vm1436_vm4, %v4028_v61, 0.0  ;;  %v1561_v20 = vsel %vm1436_vm4, %v4038_v50, 0.0  ;;  %v1562_v15 = vsel %vm1436_vm4, %v4046_v19, 0.0  ;;  %v1563_v8 = vsel %vm1436_vm4, %v4050_v28, 0.0 }
 0x1dd   : > { %vm1442_vm10 = vcmp.lt.s32.totalorder %v6495_v55, 1200  ;;  %v1758_v18 = vadd.f32 %v1757_v11, %v1556_v16  ;;  %v1821_v22 = vadd.f32 %v1820_v43, %v1557_v35  ;;  %v1884_v17 = vadd.f32 %v1883_v38, %v1558_v13  ;;  %v6513_v55 = vld [vmem:[#allocation128_spill] sm:$0xff] }
 0x1de   : > { %v1947_v29 = vadd.f32 %v1946_v56, %v1559_v31  ;;  %v1564_v61 = vsel %vm1437_vm5, %v4054_v51, 0.0  ;;  %v1565_v50 = vsel %vm1437_vm5, %v4058_v26, 0.0  ;;  %v1566_v19 = vsel %vm1437_vm5, %v4062_v12, 0.0  ;;  %v6500_v31 = vld [vmem:[#allocation44_spill] sm:$0xff] }
 0x1df   : > { %v1567_v28 = vsel %vm1437_vm5, %v4066_v57, 0.0  ;;  %vm1443_vm11 = vcmp.lt.s32.totalorder %v6496_v6, 1200  ;;  %v1759_v63 = vadd.f32 %v1758_v18, %v1560_v33  ;;  %v1822_v54 = vadd.f32 %v1821_v22, %v1561_v20  ;;  %v6501_v33 = vld [vmem:[#allocation113_spill] sm:$0xff]  ;;  %v6502_v20 = vld [vmem:[#allocation115_spill] sm:$0xff] }
 0x1e0   : > { %v1885_v3 = vadd.f32 %v1884_v17, %v1562_v15  ;;  %v1948_v2 = vadd.f32 %v1947_v29, %v1563_v8  ;;  %v1568_v51 = vsel %vm1438_vm6, %v4070_v30, 0.0  ;;  %v1569_v26 = vsel %vm1438_vm6, %v4074_v45, 0.0  ;;  %v6503_v15 = vld [vmem:[#allocation116_spill] sm:$0xff]  ;;  %v6505_v18 = vld [vmem:[#allocation45_spill] sm:$0xff] }
 0x1e1   : > { %v1570_v12 = vsel %vm1438_vm6, %v4078_v46, 0.0  ;;  %v1571_v57 = vsel %vm1438_vm6, %v4082_v27, 0.0  ;;  %vm1444_vm12 = vcmp.lt.s32.totalorder %v6497_v44, 1200  ;;  %v1760_v32 = vadd.f32 %v1759_v63, %v1564_v61  ;;  %v6507_v63 = vld [vmem:[#allocation121_spill] sm:$0xff]  ;;  %v6522_v44 = vld [vmem:[#allocation139_spill] sm:$0xff] }
 0x1e2   : > { %v1823_v59 = vadd.f32 %v1822_v54, %v1565_v50  ;;  %v1886_v7 = vadd.f32 %v1885_v3, %v1566_v19  ;;  %v1949_v53 = vadd.f32 %v1948_v2, %v1567_v28  ;;  %v1572_v30 = vsel %vm1439_vm7, %v4086_v9, 0.0  ;;  %v6506_v19 = vld [vmem:[#allocation119_spill] sm:$0xff]  ;;  %v6509_v2 = vld [vmem:[#allocation46_spill] sm:$0xff]  ;;  %v6517_v6 = vld [vmem:[#allocation133_spill] sm:$0xff] }
 0x1e3   : > { %v1573_v45 = vsel %vm1439_vm7, %v4090_v24, 0.0  ;;  %v1574_v46 = vsel %vm1439_vm7, %v4094_v25, 0.0  ;;  %v1575_v27 = vsel %vm1439_vm7, %v4098_v1, 0.0  ;;  %vm1445_vm13 = vcmp.lt.s32.totalorder %v6498_v5, 1200  ;;  %v6526_v5 = vld [vmem:[#allocation143_spill] sm:$0xff] }
 0x1e4   : > { %v1761_v16 = vadd.f32 %v1760_v32, %v1568_v51  ;;  %v1824_v42 = vadd.f32 %v1823_v59, %v1569_v26  ;;  %v1887_v35 = vadd.f32 %v1886_v7, %v1570_v12  ;;  %v1950_v13 = vadd.f32 %v1949_v53, %v1571_v57  ;;  %v6510_v32 = vld [vmem:[#allocation124_spill] sm:$0xff]  ;;  %v6511_v59 = vld [vmem:[#allocation125_spill] sm:$0xff]  ;;  %v6512_v53 = vld [vmem:[#allocation127_spill] sm:$0xff] }
 0x1e5   : > { %v1576_v9 = vsel %vm1440_vm8, %v4102_v52, 0.0  ;;  %v1577_v24 = vsel %vm1440_vm8, %v4106_v37, 0.0  ;;  %v1578_v25 = vsel %vm1440_vm8, %v4110_v14, 0.0  ;;  %v1579_v1 = vsel %vm1440_vm8, %v6499_v36, 0.0 }
 0x1e6   : > { %vm1446_vm14 = vcmp.lt.s32.totalorder %v6500_v31, 1200  ;;  %v1762_v11 = vadd.f32 %v1761_v16, %v1572_v30  ;;  %v1825_v43 = vadd.f32 %v1824_v42, %v1573_v45  ;;  %v1888_v38 = vadd.f32 %v1887_v35, %v1574_v46  ;;  %v6514_v46 = vld [vmem:[#allocation47_spill] sm:$0xff]  ;;  %v6531_v31 = vld [vmem:[#allocation148_spill] sm:$0xff] }
 0x1e7   : > { %v1951_v56 = vadd.f32 %v1950_v13, %v1575_v27  ;;  %v1580_v52 = vsel %vm1441_vm9, %v6501_v33, 0.0  ;;  %v1581_v37 = vsel %vm1441_vm9, %v6502_v20, 0.0  ;;  %v1582_v14 = vsel %vm1441_vm9, %v6503_v15, 0.0  ;;  %v6515_v13 = vld [vmem:[#allocation130_spill] sm:$0xff]  ;;  %v6521_v15 = vld [vmem:[#allocation137_spill] sm:$0xff] }
 0x1e8   : > { %v1583_v8 = vsel %vm1441_vm9, %v6504_v23, 0.0  ;;  %vm1447_vm15 = vcmp.lt.s32.totalorder %v6505_v18, 1200  ;;  %v1763_v22 = vadd.f32 %v1762_v11, %v1576_v9  ;;  %v1826_v17 = vadd.f32 %v1825_v43, %v1577_v24  ;;  %v6518_v11 = vld [vmem:[#allocation48_spill] sm:$0xff] }
 0x1e9   : > { %v1889_v29 = vadd.f32 %v1888_v38, %v1578_v25  ;;  %v1952_v61 = vadd.f32 %v1951_v56, %v1579_v1  ;;  %v1584_v50 = vsel %vm1442_vm10, %v4134_v0, 0.0  ;;  %v1585_v28 = vsel %vm1442_vm10, %v6506_v19, 0.0  ;;  %v6516_v25 = vld [vmem:[#allocation131_spill] sm:$0xff] }
 0x1ea   : > { %v1586_v54 = vsel %vm1442_vm10, %v6507_v63, 0.0  ;;  %v1587_v3 = vsel %vm1442_vm10, %v6508_v4, 0.0  ;;  %vm1448_vm0 = vcmp.lt.s32.totalorder %v6509_v2, 1200  ;;  %v1764_v51 = vadd.f32 %v1763_v22, %v1580_v52  ;;  %v6519_v52 = vld [vmem:[#allocation134_spill] sm:$0xff]  ;;  %v6540_v2 = vld [vmem:[#allocation156_spill] sm:$0xff] }
 0x1eb   : > { %v1827_v26 = vadd.f32 %v1826_v17, %v1581_v37  ;;  %v1890_v12 = vadd.f32 %v1889_v29, %v1582_v14  ;;  %v1953_v57 = vadd.f32 %v1952_v61, %v1583_v8  ;;  %v1588_v0 = vsel %vm1443_vm11, %v6510_v32, 0.0  ;;  %v6520_v37 = vld [vmem:[#allocation136_spill] sm:$0xff]  ;;  %v6523_v8 = vld [vmem:[#allocation49_spill] sm:$0xff] }
 0x1ec   : > { %v1589_v7 = vsel %vm1443_vm11, %v6511_v59, 0.0  ;;  %v1590_v30 = vsel %vm1443_vm11, %v6512_v53, 0.0  ;;  %v1591_v45 = vsel %vm1443_vm11, %v6513_v55, 0.0  ;;  %vm1449_vm1 = vcmp.lt.s32.totalorder %v6514_v46, 1200  ;;  %v6528_v32 = vld [vmem:[#allocation144_spill] sm:$0xff]  ;;  %v6529_v59 = vld [vmem:[#allocation146_spill] sm:$0xff] }
 0x1ed   : > { %v1765_v27 = vadd.f32 %v1764_v51, %v1584_v50  ;;  %v1828_v16 = vadd.f32 %v1827_v26, %v1585_v28  ;;  %v1891_v42 = vadd.f32 %v1890_v12, %v1586_v54  ;;  %v1954_v35 = vadd.f32 %v1953_v57, %v1587_v3  ;;  %v6524_v50 = vld [vmem:[#allocation140_spill] sm:$0xff]  ;;  %v6525_v28 = vld [vmem:[#allocation142_spill] sm:$0xff]  ;;  %v6530_v53 = vld [vmem:[#allocation147_spill] sm:$0xff] }
 0x1ee   : > { %v1592_v9 = vsel %vm1444_vm12, %v6515_v13, 0.0  ;;  %v1593_v24 = vsel %vm1444_vm12, %v4170_v48, 0.0  ;;  %v1594_v36 = vsel %vm1444_vm12, %v6516_v25, 0.0  ;;  %v1595_v1 = vsel %vm1444_vm12, %v6517_v6, 0.0  ;;  %v6527_v3 = vld [vmem:[#allocation50_spill] sm:$0xff]  ;;  %v6532_v55 = vld [vmem:[#allocation51_spill] sm:$0xff] }
 0x1ef   : > { %vm1450_vm2 = vcmp.lt.s32.totalorder %v6518_v11, 1200  ;;  %v1766_v43 = vadd.f32 %v1765_v27, %v1588_v0  ;;  %v1829_v38 = vadd.f32 %v1828_v16, %v1589_v7  ;;  %v1892_v56 = vadd.f32 %v1891_v42, %v1590_v30  ;;  %v6535_v25 = vld [vmem:[#allocation152_spill] sm:$0xff]  ;;  %v6545_v46 = vld [vmem:[#allocation161_spill] sm:$0xff] }
 0x1f0   : > { %v1955_v33 = vadd.f32 %v1954_v35, %v1591_v45  ;;  %v1596_v20 = vsel %vm1445_vm13, %v6519_v52, 0.0  ;;  %v1597_v48 = vsel %vm1445_vm13, %v6520_v37, 0.0  ;;  %v1598_v14 = vsel %vm1445_vm13, %v6521_v15, 0.0  ;;  %v6533_v35 = vld [vmem:[#allocation149_spill] sm:$0xff]  ;;  %v6536_v6 = vld [vmem:[#allocation52_spill] sm:$0xff] }
 0x1f1   : > { %v1599_v23 = vsel %vm1445_vm13, %v6522_v44, 0.0  ;;  %vm1451_vm3 = vcmp.lt.s32.totalorder %v6523_v8, 1200  ;;  %v1767_v22 = vadd.f32 %v1766_v43, %v1592_v9  ;;  %v1830_v17 = vadd.f32 %v1829_v38, %v1593_v24  ;;  %v6534_v9 = vld [vmem:[#allocation150_spill] sm:$0xff]  ;;  %v6549_v11 = vld [vmem:[#allocation164_spill] sm:$0xff] }
 0x1f2   : > { %v1893_v29 = vadd.f32 %v1892_v56, %v1594_v36  ;;  %v1956_v61 = vadd.f32 %v1955_v33, %v1595_v1  ;;  %v1600_v19 = vsel %vm1446_vm14, %v6524_v50, 0.0  ;;  %v1601_v63 = vsel %vm1446_vm14, %v6525_v28, 0.0  ;;  %v6537_v33 = vld [vmem:[#allocation153_spill] sm:$0xff]  ;;  %v6543_v50 = vld [vmem:[#allocation158_spill] sm:$0xff]  ;;  %v6544_v28 = vld [vmem:[#allocation159_spill] sm:$0xff] }
 0x1f3   : > { %v1602_v54 = vsel %vm1446_vm14, %v4206_v10, 0.0  ;;  %v1603_v4 = vsel %vm1446_vm14, %v6526_v5, 0.0  ;;  %vm1452_vm4 = vcmp.lt.s32.totalorder %v6527_v3, 1200  ;;  %v1768_v51 = vadd.f32 %v1767_v22, %v1596_v20  ;;  %v6538_v20 = vld [vmem:[#allocation154_spill] sm:$0xff]  ;;  %v6554_v8 = vld [vmem:[#allocation168_spill] sm:$0xff] }
 0x1f4   : > { %v1831_v26 = vadd.f32 %v1830_v17, %v1597_v48  ;;  %v1894_v12 = vadd.f32 %v1893_v29, %v1598_v14  ;;  %v1957_v57 = vadd.f32 %v1956_v61, %v1599_v23  ;;  %v1604_v0 = vsel %vm1447_vm15, %v6528_v32, 0.0  ;;  %v6539_v48 = vld [vmem:[#allocation155_spill] sm:$0xff]  ;;  %v6541_v14 = vld [vmem:[#allocation53_spill] sm:$0xff]  ;;  %v6546_v5 = vld [vmem:[#allocation54_spill] sm:$0xff] }
 0x1f5   : > { %v1605_v7 = vsel %vm1447_vm15, %v6529_v59, 0.0  ;;  %v1606_v10 = vsel %vm1447_vm15, %v6530_v53, 0.0  ;;  %v1607_v30 = vsel %vm1447_vm15, %v6531_v31, 0.0  ;;  %vm1453_vm5 = vcmp.lt.s32.totalorder %v6532_v55, 1200  ;;  %v6542_v29 = vld [vmem:[#allocation157_spill] sm:$0xff]  ;;  %v6547_v32 = vld [vmem:[#allocation162_spill] sm:$0xff] }
 0x1f6   : > { %v1769_v45 = vadd.f32 %v1768_v51, %v1600_v19  ;;  %v1832_v27 = vadd.f32 %v1831_v26, %v1601_v63  ;;  %v1895_v16 = vadd.f32 %v1894_v12, %v1602_v54  ;;  %v1958_v42 = vadd.f32 %v1957_v57, %v1603_v4  ;;  %v6548_v59 = vld [vmem:[#allocation163_spill] sm:$0xff]  ;;  %v6557_v3 = vld [vmem:[#allocation172_spill] sm:$0xff] }
 0x1f7   : > { %v1608_v13 = vsel %vm1448_vm0, %v6533_v35, 0.0  ;;  %v1609_v24 = vsel %vm1448_vm0, %v6534_v9, 0.0  ;;  %v1610_v36 = vsel %vm1448_vm0, %v6535_v25, 0.0  ;;  %v1611_v18 = vsel %vm1448_vm0, %v4242_v49, 0.0  ;;  %v6561_v55 = vld [vmem:[#allocation176_spill] sm:$0xff] }
 0x1f8   : > { %vm1454_vm6 = vcmp.lt.s32.totalorder %v6536_v6, 1200  ;;  %v1770_v1 = vadd.f32 %v1769_v45, %v1604_v0  ;;  %v1833_v43 = vadd.f32 %v1832_v27, %v1605_v7  ;;  %v1896_v38 = vadd.f32 %v1895_v16, %v1606_v10  ;;  %v6550_v10 = vld [vmem:[#allocation57_spill] sm:$0xff]  ;;  %v6564_v6 = vld [vmem:[#allocation180_spill] sm:$0xff] }
 0x1f9   : > { %v1959_v56 = vadd.f32 %v1958_v42, %v1607_v30  ;;  %v1612_v52 = vsel %vm1449_vm1, %v6537_v33, 0.0  ;;  %v1613_v37 = vsel %vm1449_vm1, %v6538_v20, 0.0  ;;  %v1614_v15 = vsel %vm1449_vm1, %v6539_v48, 0.0  ;;  %v6551_v16 = vld [vmem:[#allocation165_spill] sm:$0xff]  ;;  %v6552_v42 = vld [vmem:[#allocation166_spill] sm:$0xff]  ;;  %v6556_v33 = vld [vmem:[#allocation171_spill] sm:$0xff] }
 0x1fa   : > { %v1615_v49 = vsel %vm1449_vm1, %v6540_v2, 0.0  ;;  %vm1455_vm7 = vcmp.lt.s32.totalorder %v6541_v14, 1200  ;;  %v1771_v44 = vadd.f32 %v1770_v1, %v1608_v13  ;;  %v1834_v23 = vadd.f32 %v1833_v43, %v1609_v24  ;;  %v6553_v13 = vld [vmem:[#allocation167_spill] sm:$0xff]  ;;  %v6555_v43 = vld [vmem:[#allocation170_spill] sm:$0xff]  ;;  %v6568_v14 = vld [vmem:[#allocation184_spill] sm:$0xff] }
 0x1fb   : > { %v1897_v22 = vadd.f32 %v1896_v38, %v1610_v36  ;;  %v1960_v17 = vadd.f32 %v1959_v56, %v1611_v18  ;;  %v1616_v61 = vsel %vm1450_vm2, %v6542_v29, 0.0  ;;  %v1617_v19 = vsel %vm1450_vm2, %v6543_v50, 0.0 }
 0x1fc   : > { %v1618_v63 = vsel %vm1450_vm2, %v6544_v28, 0.0  ;;  %v1619_v54 = vsel %vm1450_vm2, %v6545_v46, 0.0  ;;  %vm1456_vm8 = vcmp.lt.s32.totalorder %v6546_v5, 1200  ;;  %v1772_v4 = vadd.f32 %v1771_v44, %v1612_v52 }
 0x1fd   : > { %v1835_v51 = vadd.f32 %v1834_v23, %v1613_v37  ;;  %v1898_v26 = vadd.f32 %v1897_v22, %v1614_v15  ;;  %v1961_v12 = vadd.f32 %v1960_v17, %v1615_v49  ;;  %v1620_v57 = vsel %vm1451_vm3, %v4278_v41, 0.0  ;;  %v6558_v49 = vld [vmem:[#allocation173_spill] sm:$0xff]  ;;  %v6559_v23 = vld [vmem:[#allocation174_spill] sm:$0xff]  ;;  %v6560_v22 = vld [vmem:[#allocation175_spill] sm:$0xff] }
 0x1fe   : > { %v1621_v0 = vsel %vm1451_vm3, %v6547_v32, 0.0  ;;  %v1622_v7 = vsel %vm1451_vm3, %v6548_v59, 0.0  ;;  %v1623_v53 = vsel %vm1451_vm3, %v6549_v11, 0.0  ;;  %vm1457_vm9 = vcmp.lt.s32.totalorder %v6550_v10, 1200  ;;  %v6565_v59 = vld [vmem:[#allocation181_spill] sm:$0xff]  ;;  %v6566_v11 = vld [vmem:[#allocation182_spill] sm:$0xff] }
 0x1ff   : > { %v1773_v31 = vadd.f32 %v1772_v4, %v1616_v61  ;;  %v1836_v30 = vadd.f32 %v1835_v51, %v1617_v19  ;;  %v1899_v45 = vadd.f32 %v1898_v26, %v1618_v63  ;;  %v1962_v27 = vadd.f32 %v1961_v12, %v1619_v54  ;;  %v6562_v63 = vld [vmem:[#allocation177_spill] sm:$0xff]  ;;  %v6563_v54 = vld [vmem:[#allocation179_spill] sm:$0xff]  ;;  %v6576_v10 = vld [vmem:[#allocation192_spill] sm:$0xff] }
 0x200   : > { %v1624_v41 = vsel %vm1452_vm4, %v6551_v16, 0.0  ;;  %v1625_v35 = vsel %vm1452_vm4, %v6552_v42, 0.0  ;;  %v1626_v9 = vsel %vm1452_vm4, %v6553_v13, 0.0  ;;  %v1627_v24 = vsel %vm1452_vm4, %v6554_v8, 0.0  ;;  %v6569_v42 = vld [vmem:[#allocation185_spill] sm:$0xff]  ;;  %v6570_v13 = vld [vmem:[#allocation186_spill] sm:$0xff] }
 0x201   : > { %vm1458_vm10 = vcmp.lt.s32.totalorder %v4764_v39, 1200  ;;  %v1774_v25 = vadd.f32 %v1773_v31, %v1620_v57  ;;  %v1837_v36 = vadd.f32 %v1836_v30, %v1621_v0  ;;  %v1900_v18 = vadd.f32 %v1899_v45, %v1622_v7  ;;  %v6567_v31 = vld [vmem:[#allocation183_spill] sm:$0xff]  ;;  %v6571_v8 = vld [vmem:[#allocation188_spill] sm:$0xff]  ;;  %v6581_v39 = vld [vmem:[#allocation197_spill] sm:$0xff] }
 0x202   : > { %v1963_v1 = vadd.f32 %v1962_v27, %v1623_v53  ;;  %v1628_v38 = vsel %vm1453_vm5, %v6555_v43, 0.0  ;;  %v1629_v56 = vsel %vm1453_vm5, %v4314_v62, 0.0  ;;  %v1630_v52 = vsel %vm1453_vm5, %v6556_v33, 0.0  ;;  %v6574_v33 = vld [vmem:[#allocation190_spill] sm:$0xff] }
 0x203   : > { %v1631_v20 = vsel %vm1453_vm5, %v6557_v3, 0.0  ;;  %vm1459_vm11 = vcmp.lt.s32.totalorder %v4768_v40, 1200  ;;  %v1775_v37 = vadd.f32 %v1774_v25, %v1624_v41  ;;  %v1838_v48 = vadd.f32 %v1837_v36, %v1625_v35  ;;  %v6572_v25 = vld [vmem:[#allocation15_spill] sm:$0xff]  ;;  %v6586_v40 = vld [vmem:[#allocation201_spill] sm:$0xff] }
 0x204   : > { %v1901_v15 = vadd.f32 %v1900_v18, %v1626_v9  ;;  %v1964_v2 = vadd.f32 %v1963_v1, %v1627_v24  ;;  %v1632_v44 = vsel %vm1454_vm6, %v6558_v49, 0.0  ;;  %v1633_v62 = vsel %vm1454_vm6, %v6559_v23, 0.0  ;;  %v6575_v3 = vld [vmem:[#allocation191_spill] sm:$0xff] }
 0x205   : > { %v1634_v17 = vsel %vm1454_vm6, %v6560_v22, 0.0  ;;  %v1635_v29 = vsel %vm1454_vm6, %v6561_v55, 0.0  ;;  %vm1460_vm12 = vcmp.lt.s32.totalorder %v4772_v21, 1200  ;;  %v1776_v61 = vadd.f32 %v1775_v37, %v1628_v38  ;;  %v6573_v38 = vld [vmem:[#allocation189_spill] sm:$0xff]  ;;  %v6577_v37 = vld [vmem:[#allocation12_spill] sm:$0xff]  ;;  %v6591_v21 = vld [vmem:[#allocation206_spill] sm:$0xff] }
 0x206   : > { %v1839_v50 = vadd.f32 %v1838_v48, %v1629_v56  ;;  %v1902_v19 = vadd.f32 %v1901_v15, %v1630_v52  ;;  %v1965_v28 = vadd.f32 %v1964_v2, %v1631_v20  ;;  %v1636_v46 = vsel %vm1455_vm7, %v6562_v63, 0.0 }
 0x207   : > { %v1637_v4 = vsel %vm1455_vm7, %v6563_v54, 0.0  ;;  %v1638_v51 = vsel %vm1455_vm7, %v4350_v58, 0.0  ;;  %v1639_v26 = vsel %vm1455_vm7, %v6564_v6, 0.0  ;;  %vm1461_vm13 = vcmp.lt.s32.totalorder %v4776_v47, 1200  ;;  %v6585_v6 = vld [vmem:[#allocation200_spill] sm:$0xff]  ;;  %v6596_v47 = vld [vmem:[#allocation210_spill] sm:$0xff] }
 0x208   : > { %v1777_v12 = vadd.f32 %v1776_v61, %v1632_v44  ;;  %v1840_v57 = vadd.f32 %v1839_v50, %v1633_v62  ;;  %v1903_v32 = vadd.f32 %v1902_v19, %v1634_v17  ;;  %v1966_v0 = vadd.f32 %v1965_v28, %v1635_v29  ;;  %v6578_v44 = vld [vmem:[#allocation193_spill] sm:$0xff]  ;;  %v6579_v62 = vld [vmem:[#allocation194_spill] sm:$0xff]  ;;  %v6580_v17 = vld [vmem:[#allocation195_spill] sm:$0xff] }
 0x209   : > { %v1640_v7 = vsel %vm1456_vm8, %v6565_v59, 0.0  ;;  %v1641_v53 = vsel %vm1456_vm8, %v6566_v11, 0.0  ;;  %v1642_v58 = vsel %vm1456_vm8, %v6567_v31, 0.0  ;;  %v1643_v30 = vsel %vm1456_vm8, %v6568_v14, 0.0  ;;  %v6582_v61 = vld [vmem:[#allocation16_spill] sm:$0xff]  ;;  %v6588_v11 = vld [vmem:[#allocation202_spill] sm:$0xff] }
 0x20a   : > { %vm1462_vm14 = vcmp.lt.s32.totalorder %v4779_v34, 1200  ;;  %v1778_v45 = vadd.f32 %v1777_v12, %v1636_v46  ;;  %v1841_v27 = vadd.f32 %v1840_v57, %v1637_v4  ;;  %v1904_v16 = vadd.f32 %v1903_v32, %v1638_v51  ;;  %v6583_v46 = vld [vmem:[#allocation198_spill] sm:$0xff]  ;;  %v6584_v4 = vld [vmem:[#allocation199_spill] sm:$0xff]  ;;  %v6587_v57 = vld [vmem:[#allocation17_spill] sm:$0xff] }
 0x20b   : > { %v1967_v41 = vadd.f32 %v1966_v0, %v1639_v26  ;;  %v1644_v35 = vsel %vm1457_vm9, %v6569_v42, 0.0  ;;  %v1645_v9 = vsel %vm1457_vm9, %v6570_v13, 0.0  ;;  %v1646_v24 = vsel %vm1457_vm9, %v6571_v8, 0.0  ;;  %v6589_v31 = vld [vmem:[#allocation203_spill] sm:$0xff]  ;;  %v6590_v14 = vld [vmem:[#allocation204_spill] sm:$0xff] }
 0x20c   : > { %v1647_v5 = vsel %vm1457_vm9, %v4386_v60, 0.0  ;;  %vm1463_vm15 = vcmp.lt.s32.totalorder %v6572_v25, 1200  ;;  %v1779_v36 = vadd.f32 %v1778_v45, %v1640_v7  ;;  %v1842_v18 = vadd.f32 %v1841_v27, %v1641_v53  ;;  %v6592_v27 = vld [vmem:[#allocation55_spill] sm:$0xff]  ;;  %v6594_v8 = vld [vmem:[#allocation208_spill] sm:$0xff] }
 0x20d   : > { %v1905_v1 = vadd.f32 %v1904_v16, %v1642_v58  ;;  %v1968_v43 = vadd.f32 %v1967_v41, %v1643_v30  ;;  %v1648_v56 = vsel %vm1458_vm10, %v6573_v38, 0.0  ;;  %v1649_v52 = vsel %vm1458_vm10, %v6574_v33, 0.0  ;;  %v6593_v13 = vld [vmem:[#allocation207_spill] sm:$0xff] }
 0x20e   : > { %v1650_v20 = vsel %vm1458_vm10, %v6575_v3, 0.0  ;;  %v1651_v60 = vsel %vm1458_vm10, %v6576_v10, 0.0  ;;  %vm1464_vm0 = vcmp.lt.s32.totalorder %v6577_v37, 1200  ;;  %v1780_v48 = vadd.f32 %v1779_v36, %v1644_v35  ;;  %v6601_v34 = vld [vmem:[#allocation215_spill] sm:$0xff]  ;;  %v6611_v37 = vld [vmem:[#allocation224_spill] sm:$0xff] }
 0x20f   : > { %v1843_v15 = vadd.f32 %v1842_v18, %v1645_v9  ;;  %v1906_v2 = vadd.f32 %v1905_v1, %v1646_v24  ;;  %v1969_v49 = vadd.f32 %v1968_v43, %v1647_v5  ;;  %v1652_v23 = vsel %vm1459_vm11, %v6578_v44, 0.0  ;;  %v6595_v5 = vld [vmem:[#allocation209_spill] sm:$0xff]  ;;  %v6606_v25 = vld [vmem:[#allocation219_spill] sm:$0xff] }
 0x210   : > { %v1653_v22 = vsel %vm1459_vm11, %v6579_v62, 0.0  ;;  %v1654_v55 = vsel %vm1459_vm11, %v6580_v17, 0.0  ;;  %v1655_v29 = vsel %vm1459_vm11, %v6581_v39, 0.0  ;;  %vm1465_vm1 = vcmp.lt.s32.totalorder %v6582_v61, 1200  ;;  %v6597_v1 = vld [vmem:[#allocation13_spill] sm:$0xff]  ;;  %v6616_v61 = vld [vmem:[#allocation228_spill] sm:$0xff] }
 0x211   : > { %v1781_v50 = vadd.f32 %v1780_v48, %v1648_v56  ;;  %v1844_v19 = vadd.f32 %v1843_v15, %v1649_v52  ;;  %v1907_v28 = vadd.f32 %v1906_v2, %v1650_v20  ;;  %v1970_v63 = vadd.f32 %v1969_v49, %v1651_v60  ;;  %v6598_v52 = vld [vmem:[#allocation211_spill] sm:$0xff]  ;;  %v6599_v20 = vld [vmem:[#allocation212_spill] sm:$0xff]  ;;  %v6600_v60 = vld [vmem:[#allocation213_spill] sm:$0xff] }
 0x212   : > { %v1656_v54 = vsel %vm1460_vm12, %v6583_v46, 0.0  ;;  %v1657_v51 = vsel %vm1460_vm12, %v6584_v4, 0.0  ;;  %v1658_v26 = vsel %vm1460_vm12, %v6585_v6, 0.0  ;;  %v1659_v12 = vsel %vm1460_vm12, %v6586_v40, 0.0  ;;  %v6602_v2 = vld [vmem:[#allocation56_spill] sm:$0xff] }
 0x213   : > { %vm1466_vm2 = vcmp.lt.s32.totalorder %v6587_v57, 1200  ;;  %v1782_v32 = vadd.f32 %v1781_v50, %v1652_v23  ;;  %v1845_v0 = vadd.f32 %v1844_v19, %v1653_v22  ;;  %v1908_v59 = vadd.f32 %v1907_v28, %v1654_v55  ;;  %v6603_v22 = vld [vmem:[#allocation216_spill] sm:$0xff]  ;;  %v6604_v55 = vld [vmem:[#allocation217_spill] sm:$0xff]  ;;  %v6607_v28 = vld [vmem:[#allocation58_spill] sm:$0xff] }
 0x214   : > { %v1971_v7 = vadd.f32 %v1970_v63, %v1655_v29  ;;  %v1660_v53 = vsel %vm1461_vm13, %v6588_v11, 0.0  ;;  %v1661_v58 = vsel %vm1461_vm13, %v6589_v31, 0.0  ;;  %v1662_v30 = vsel %vm1461_vm13, %v6590_v14, 0.0  ;;  %v6605_v29 = vld [vmem:[#allocation218_spill] sm:$0xff]  ;;  %v6621_v57 = vld [vmem:[#allocation233_spill] sm:$0xff] }
 0x215   : > { %v1663_v45 = vsel %vm1461_vm13, %v6591_v21, 0.0  ;;  %vm1467_vm3 = vcmp.lt.s32.totalorder %v6592_v27, 1200  ;;  %v1783_v16 = vadd.f32 %v1782_v32, %v1656_v54  ;;  %v1846_v41 = vadd.f32 %v1845_v0, %v1657_v51  ;;  %v6608_v51 = vld [vmem:[#allocation220_spill] sm:$0xff]  ;;  %v6626_v27 = vld [vmem:[#allocation237_spill] sm:$0xff] }
 0x216   : > { %v1909_v42 = vadd.f32 %v1908_v59, %v1658_v26  ;;  %v1972_v35 = vadd.f32 %v1971_v7, %v1659_v12  ;;  %v1664_v9 = vsel %vm1462_vm14, %v6593_v13, 0.0  ;;  %v1665_v24 = vsel %vm1462_vm14, %v6594_v8, 0.0  ;;  %v6609_v26 = vld [vmem:[#allocation221_spill] sm:$0xff]  ;;  %v6610_v12 = vld [vmem:[#allocation222_spill] sm:$0xff]  ;;  %v6612_v59 = vld [vmem:[#allocation59_spill] sm:$0xff] }
 0x217   : > { %v1666_v36 = vsel %vm1462_vm14, %v6595_v5, 0.0  ;;  %v1667_v18 = vsel %vm1462_vm14, %v6596_v47, 0.0  ;;  %vm1468_vm4 = vcmp.lt.s32.totalorder %v6597_v1, 1200  ;;  %v1784_v43 = vadd.f32 %v1783_v16, %v1660_v53  ;;  %v6631_v1 = vld [vmem:[#allocation242_spill] sm:$0xff] }
 0x218   : > { %v1847_v38 = vadd.f32 %v1846_v41, %v1661_v58  ;;  %v1910_v56 = vadd.f32 %v1909_v42, %v1662_v30  ;;  %v1973_v33 = vadd.f32 %v1972_v35, %v1663_v45  ;;  %v1668_v3 = vsel %vm1463_vm15, %v6598_v52, 0.0  ;;  %v6613_v58 = vld [vmem:[#allocation225_spill] sm:$0xff]  ;;  %v6614_v30 = vld [vmem:[#allocation226_spill] sm:$0xff]  ;;  %v6615_v45 = vld [vmem:[#allocation227_spill] sm:$0xff] }
 0x219   : > { %v1669_v10 = vsel %vm1463_vm15, %v6599_v20, 0.0  ;;  %v1670_v48 = vsel %vm1463_vm15, %v6600_v60, 0.0  ;;  %v1671_v15 = vsel %vm1463_vm15, %v6601_v34, 0.0  ;;  %vm1469_vm5 = vcmp.lt.s32.totalorder %v6602_v2, 1200  ;;  %v6617_v42 = vld [vmem:[#allocation18_spill] sm:$0xff] }
 0x21a   : > { %v1785_v49 = vadd.f32 %v1784_v43, %v1664_v9  ;;  %v1848_v44 = vadd.f32 %v1847_v38, %v1665_v24  ;;  %v1911_v23 = vadd.f32 %v1910_v56, %v1666_v36  ;;  %v1974_v62 = vadd.f32 %v1973_v33, %v1667_v18  ;;  %v6618_v24 = vld [vmem:[#allocation229_spill] sm:$0xff]  ;;  %v6619_v36 = vld [vmem:[#allocation230_spill] sm:$0xff]  ;;  %v6620_v18 = vld [vmem:[#allocation231_spill] sm:$0xff] }
 0x21b   : > { %v1672_v17 = vsel %vm1464_vm0, %v6603_v22, 0.0  ;;  %v1673_v39 = vsel %vm1464_vm0, %v6604_v55, 0.0  ;;  %v1674_v50 = vsel %vm1464_vm0, %v6605_v29, 0.0  ;;  %v1675_v19 = vsel %vm1464_vm0, %v6606_v25, 0.0  ;;  %v6622_v56 = vld [vmem:[#allocation19_spill] sm:$0xff]  ;;  %v6636_v2 = vld [vmem:[#allocation246_spill] sm:$0xff] }
 0x21c   : > { %vm1470_vm6 = vcmp.lt.s32.totalorder %v6607_v28, 1200  ;;  %v1786_v63 = vadd.f32 %v1785_v49, %v1668_v3  ;;  %v1849_v46 = vadd.f32 %v1848_v44, %v1669_v10  ;;  %v1912_v54 = vadd.f32 %v1911_v23, %v1670_v48  ;;  %v6623_v10 = vld [vmem:[#allocation234_spill] sm:$0xff]  ;;  %v6624_v48 = vld [vmem:[#allocation235_spill] sm:$0xff] }
 0x21d   : > { %v1975_v4 = vadd.f32 %v1974_v62, %v1671_v15  ;;  %v1676_v6 = vsel %vm1465_vm1, %v6608_v51, 0.0  ;;  %v1677_v40 = vsel %vm1465_vm1, %v6609_v26, 0.0  ;;  %v1678_v32 = vsel %vm1465_vm1, %v6610_v12, 0.0  ;;  %v6625_v15 = vld [vmem:[#allocation236_spill] sm:$0xff]  ;;  %v6627_v23 = vld [vmem:[#allocation286_spill] sm:$0xff]  ;;  %v6641_v28 = vld [vmem:[#allocation251_spill] sm:$0xff] }
 0x21e   : > { %v1679_v0 = vsel %vm1465_vm1, %v6611_v37, 0.0  ;;  %vm1471_vm7 = vcmp.lt.s32.totalorder %v6612_v59, 1200  ;;  %v1787_v7 = vadd.f32 %v1786_v63, %v1672_v17  ;;  %v1850_v11 = vadd.f32 %v1849_v46, %v1673_v39  ;;  %v6628_v39 = vld [vmem:[#allocation238_spill] sm:$0xff]  ;;  %v6646_v59 = vld [vmem:[#allocation255_spill] sm:$0xff] }
 0x21f   : > { %v1913_v53 = vadd.f32 %v1912_v54, %v1674_v50  ;;  %v1976_v31 = vadd.f32 %v1975_v4, %v1675_v19  ;;  %v1680_v14 = vsel %vm1466_vm2, %v6613_v58, 0.0  ;;  %v1681_v21 = vsel %vm1466_vm2, %v6614_v30, 0.0  ;;  %v6629_v50 = vld [vmem:[#allocation239_spill] sm:$0xff]  ;;  %v6630_v19 = vld [vmem:[#allocation240_spill] sm:$0xff] }
 0x220   : > { %v1682_v16 = vsel %vm1466_vm2, %v6615_v45, 0.0  ;;  %v1683_v41 = vsel %vm1466_vm2, %v6616_v61, 0.0  ;;  %vm1472_vm8 = vcmp.lt.s32.totalorder %v6617_v42, 1200  ;;  %v1788_v35 = vadd.f32 %v1787_v7, %v1676_v6  ;;  %v6632_v54 = vld [vmem:[#allocation287_spill] sm:$0xff]  ;;  %v6651_v42 = vld [vmem:[#allocation260_spill] sm:$0xff] }
 0x221   : > { %v1851_v13 = vadd.f32 %v1850_v11, %v1677_v40  ;;  %v1914_v9 = vadd.f32 %v1913_v53, %v1678_v32  ;;  %v1977_v8 = vadd.f32 %v1976_v31, %v1679_v0  ;;  %v1684_v5 = vsel %vm1467_vm3, %v6618_v24, 0.0  ;;  %v6633_v40 = vld [vmem:[#allocation243_spill] sm:$0xff]  ;;  %v6634_v32 = vld [vmem:[#allocation244_spill] sm:$0xff]  ;;  %v6635_v0 = vld [vmem:[#allocation245_spill] sm:$0xff] }
 0x222   : > { %v1685_v47 = vsel %vm1467_vm3, %v6619_v36, 0.0  ;;  %v1686_v43 = vsel %vm1467_vm3, %v6620_v18, 0.0  ;;  %v1687_v38 = vsel %vm1467_vm3, %v6621_v57, 0.0  ;;  %vm1473_vm9 = vcmp.lt.s32.totalorder %v6622_v56, 1200  ;;  %v6637_v53 = vld [vmem:[#allocation20_spill] sm:$0xff] }
 0x223   : > { %v1789_v33 = vadd.f32 %v1788_v35, %v1680_v14  ;;  %v1852_v52 = vadd.f32 %v1851_v13, %v1681_v21  ;;  %v1915_v3 = vadd.f32 %v1914_v9, %v1682_v16  ;;  %v1978_v20 = vadd.f32 %v1977_v8, %v1683_v41  ;;  %v6638_v21 = vld [vmem:[#allocation247_spill] sm:$0xff]  ;;  %v6639_v16 = vld [vmem:[#allocation248_spill] sm:$0xff]  ;;  %v6640_v41 = vld [vmem:[#allocation249_spill] sm:$0xff] }
 0x224   : > { %v1688_v60 = vsel %vm1468_vm4, %v6623_v10, 0.0  ;;  %v1689_v34 = vsel %vm1468_vm4, %v6624_v48, 0.0  ;;  %v1690_v49 = vsel %vm1468_vm4, %v6625_v15, 0.0  ;;  %v1691_v44 = vsel %vm1468_vm4, %v6626_v27, 0.0  ;;  %v6642_v9 = vld [vmem:[#allocation60_spill] sm:$0xff] }
 0x225   : > { %vm1474_vm10 = vcmp.lt.s32.totalorder %v6627_v23, 1200  ;;  %v1790_v62 = vadd.f32 %v1789_v33, %v1684_v5  ;;  %v1853_v22 = vadd.f32 %v1852_v52, %v1685_v47  ;;  %v1916_v17 = vadd.f32 %v1915_v3, %v1686_v43  ;;  %v6643_v47 = vld [vmem:[#allocation252_spill] sm:$0xff]  ;;  %v6644_v43 = vld [vmem:[#allocation253_spill] sm:$0xff] }
 0x226   : > { %v1979_v55 = vadd.f32 %v1978_v20, %v1687_v38  ;;  %v1692_v29 = vsel %vm1469_vm5, %v6628_v39, 0.0  ;;  %v1693_v25 = vsel %vm1469_vm5, %v6629_v50, 0.0  ;;  %v1694_v63 = vsel %vm1469_vm5, %v6630_v19, 0.0  ;;  %v6645_v38 = vld [vmem:[#allocation254_spill] sm:$0xff]  ;;  %v6647_v3 = vld [vmem:[#allocation61_spill] sm:$0xff]  ;;  %v6656_v56 = vld [vmem:[#allocation264_spill] sm:$0xff] }
 0x227   : > { %v1695_v46 = vsel %vm1469_vm5, %v6631_v1, 0.0  ;;  %vm1475_vm11 = vcmp.lt.s32.totalorder %v6632_v54, 1200  ;;  %v1791_v4 = vadd.f32 %v1790_v62, %v1688_v60  ;;  %v1854_v51 = vadd.f32 %v1853_v22, %v1689_v34  ;;  %v6648_v34 = vld [vmem:[#allocation256_spill] sm:$0xff] }
 0x228   : > { %v1917_v6 = vadd.f32 %v1916_v17, %v1690_v49  ;;  %v1980_v26 = vadd.f32 %v1979_v55, %v1691_v44  ;;  %v1696_v12 = vsel %vm1470_vm6, %v6633_v40, 0.0  ;;  %v1697_v37 = vsel %vm1470_vm6, %v6634_v32, 0.0  ;;  %v6649_v49 = vld [vmem:[#allocation257_spill] sm:$0xff]  ;;  %v6650_v44 = vld [vmem:[#allocation258_spill] sm:$0xff] }
 0x229   : > { %v1698_v7 = vsel %vm1470_vm6, %v6635_v0, 0.0  ;;  %v1699_v11 = vsel %vm1470_vm6, %v6636_v2, 0.0  ;;  %vm1476_vm12 = vcmp.lt.s32.totalorder %v6637_v53, 1200  ;;  %v1792_v31 = vadd.f32 %v1791_v4, %v1692_v29  ;;  %v6652_v17 = vld [vmem:[#allocation62_spill] sm:$0xff]  ;;  %v6657_v32 = vld [vmem:[#allocation265_spill] sm:$0xff]  ;;  %v6659_v2 = vld [vmem:[#allocation267_spill] sm:$0xff] }
 0x22a   : > { %v1855_v58 = vadd.f32 %v1854_v51, %v1693_v25  ;;  %v1918_v14 = vadd.f32 %v1917_v6, %v1694_v63  ;;  %v1981_v30 = vadd.f32 %v1980_v26, %v1695_v46  ;;  %v1700_v45 = vsel %vm1471_vm7, %v6638_v21, 0.0  ;;  %v6653_v25 = vld [vmem:[#allocation261_spill] sm:$0xff]  ;;  %v6654_v63 = vld [vmem:[#allocation262_spill] sm:$0xff]  ;;  %v6655_v46 = vld [vmem:[#allocation263_spill] sm:$0xff] }
 0x22b   : > { %v1701_v61 = vsel %vm1471_vm7, %v6639_v16, 0.0  ;;  %v1702_v35 = vsel %vm1471_vm7, %v6640_v41, 0.0  ;;  %v1703_v13 = vsel %vm1471_vm7, %v6641_v28, 0.0  ;;  %vm1477_vm13 = vcmp.lt.s32.totalorder %v6642_v9, 1200  ;;  %v6658_v0 = vld [vmem:[#allocation266_spill] sm:$0xff] }
 0x22c   : > { %v1793_v8 = vadd.f32 %v1792_v31, %v1696_v12  ;;  %v1856_v24 = vadd.f32 %v1855_v58, %v1697_v37  ;;  %v1919_v5 = vadd.f32 %v1918_v14, %v1698_v7  ;;  %v1982_v36 = vadd.f32 %v1981_v30, %v1699_v11  ;;  %v6660_v31 = vld [vmem:[#allocation268_spill] sm:$0xff] }
 0x22d   : > { %v1704_v18 = vsel %vm1472_vm8, %v6643_v47, 0.0  ;;  %v1705_v57 = vsel %vm1472_vm8, %v6644_v43, 0.0  ;;  %v1706_v33 = vsel %vm1472_vm8, %v6645_v38, 0.0  ;;  %v1707_v52 = vsel %vm1472_vm8, %v6646_v59, 0.0  ;;  %v6665_v47 = vld [vmem:[#allocation275_spill] sm:$0xff]  ;;  %v6666_v43 = vld [vmem:[#allocation276_spill] sm:$0xff] }
 0x22e   : > { %vm1478_vm14 = vcmp.lt.s32.totalorder %v6647_v3, 1200  ;;  %v1794_v20 = vadd.f32 %v1793_v8, %v1700_v45  ;;  %v1857_v10 = vadd.f32 %v1856_v24, %v1701_v61  ;;  %v1920_v60 = vadd.f32 %v1919_v5, %v1702_v35  ;;  %v6661_v45 = vld [vmem:[#allocation270_spill] sm:$0xff]  ;;  %v6662_v61 = vld [vmem:[#allocation271_spill] sm:$0xff]  ;;  %v6663_v35 = vld [vmem:[#allocation272_spill] sm:$0xff] }
 0x22f   : > { %v1983_v48 = vadd.f32 %v1982_v36, %v1703_v13  ;;  %v1708_v15 = vsel %vm1473_vm9, %v6648_v34, 0.0  ;;  %v1709_v27 = vsel %vm1473_vm9, %v6649_v49, 0.0  ;;  %v1710_v62 = vsel %vm1473_vm9, %v6650_v44, 0.0  ;;  %v6664_v13 = vld [vmem:[#allocation273_spill] sm:$0xff]  ;;  %v6668_v59 = vld [vmem:[#allocation278_spill] sm:$0xff] }
 0x230   : > { %v1711_v22 = vsel %vm1473_vm9, %v6651_v42, 0.0  ;;  %vm1479_vm15 = vcmp.lt.s32.totalorder %v6652_v17, 1200  ;;  %v1795_v55 = vadd.f32 %v1794_v20, %v1704_v18  ;;  %v1858_v39 = vadd.f32 %v1857_v10, %v1705_v57  ;;  %v6667_v38 = vld [vmem:[#allocation277_spill] sm:$0xff] }
 0x231   : > { %v1921_v29 = vadd.f32 %v1920_v60, %v1706_v33  ;;  %v1984_v50 = vadd.f32 %v1983_v48, %v1707_v52  ;;  %v1712_v19 = vsel %vm1474_vm10, %v6653_v25, 0.0  ;;  %v1713_v1 = vsel %vm1474_vm10, %v6654_v63, 0.0  ;;  %v6669_v48 = vld [vmem:[#allocation279_spill] sm:$0xff]  ;;  %v6675_v63 = vld [vmem:[#allocation284_spill] sm:$0xff] }
 0x232   : > { %v1714_v4 = vsel %vm1474_vm10, %v6655_v46, 0.0  ;;  %v1715_v51 = vsel %vm1474_vm10, %v6656_v56, 0.0  ;;  %v1796_v6 = vadd.f32 %v1795_v55, %v1708_v15  ;;  %v1859_v26 = vadd.f32 %v1858_v39, %v1709_v27  ;;  %v6670_v15 = vld [vmem:[#allocation280_spill] sm:$0xff]  ;;  %v6671_v27 = vld [vmem:[#allocation281_spill] sm:$0xff]  ;;  %v6674_v25 = vld [vmem:[#allocation283_spill] sm:$0xff] }
 0x233   : > { %v1922_v40 = vadd.f32 %v1921_v29, %v1710_v62  ;;  %v1985_v12 = vadd.f32 %v1984_v50, %v1711_v22  ;;  %v1716_v37 = vsel %vm1475_vm11, %v6657_v32, 0.0  ;;  %v1717_v7 = vsel %vm1475_vm11, %v6658_v0, 0.0  ;;  %v6672_v62 = vld [vmem:[#allocation282_spill] sm:$0xff]  ;;  %v6676_v46 = vld [vmem:[#allocation285_spill] sm:$0xff]  ;;  %v1739_v32 = vld [vmem:[#allocation2 + $0x18] sm:$0xff] }
 0x234   : > { %v1718_v11 = vsel %vm1475_vm11, %v6659_v2, 0.0  ;;  %v1719_v23 = vsel %vm1475_vm11, %v6660_v31, 0.0  ;;  %v1797_v58 = vadd.f32 %v1796_v6, %v1712_v19  ;;  %v1860_v14 = vadd.f32 %v1859_v26, %v1713_v1  ;;  %v6673_v29 = vld [vmem:[#allocation14_spill] sm:$0xff] }
 0x235   : > { %v1923_v30 = vadd.f32 %v1922_v40, %v1714_v4  ;;  %v1986_v21 = vadd.f32 %v1985_v12, %v1715_v51  ;;  %v1720_v16 = vsel %vm1476_vm12, %v6661_v45, 0.0  ;;  %v1721_v41 = vsel %vm1476_vm12, %v6662_v61, 0.0  ;;  %v1736_v4 = vld [vmem:[#allocation2] sm:$0xff]  ;;  %v1737_v40 = vld [vmem:[#allocation2 + $0x8] sm:$0xff]  ;;  %v1738_v12 = vld [vmem:[#allocation2 + $0x10] sm:$0xff] }
 0x236   : > { %v1722_v28 = vsel %vm1476_vm12, %v6663_v35, 0.0  ;;  %v1723_v54 = vsel %vm1476_vm12, %v6664_v13, 0.0  ;;  %v1798_v8 = vadd.f32 %v1797_v58, %v1716_v37  ;;  %v1861_v24 = vadd.f32 %v1860_v14, %v1717_v7 }
 0x237   : > { %v1924_v5 = vadd.f32 %v1923_v30, %v1718_v11  ;;  %v1987_v36 = vadd.f32 %v1986_v21, %v1719_v23  ;;  %v1724_v18 = vsel %vm1477_vm13, %v6665_v47, 0.0  ;;  %v1725_v57 = vsel %vm1477_vm13, %v6666_v43, 0.0 }
 0x238   : > { %v1726_v33 = vsel %vm1477_vm13, %v6667_v38, 0.0  ;;  %v1727_v53 = vsel %vm1477_vm13, %v6668_v59, 0.0  ;;  %v1799_v52 = vadd.f32 %v1798_v8, %v1720_v16  ;;  %v1862_v20 = vadd.f32 %v1861_v24, %v1721_v41 }
 0x239   : > { %v1925_v10 = vadd.f32 %v1924_v5, %v1722_v28  ;;  %v1988_v60 = vadd.f32 %v1987_v36, %v1723_v54  ;;  %v1728_v34 = vsel %vm1478_vm14, %v6669_v48, 0.0  ;;  %v1729_v49 = vsel %vm1478_vm14, %v6670_v15, 0.0 }
 0x23a   : > { %v1730_v44 = vsel %vm1478_vm14, %v6671_v27, 0.0  ;;  %v1731_v9 = vsel %vm1478_vm14, %v6672_v62, 0.0  ;;  %v1800_v42 = vadd.f32 %v1799_v52, %v1724_v18  ;;  %v1863_v22 = vadd.f32 %v1862_v20, %v1725_v57 }
 0x23b   : > { %v1926_v55 = vadd.f32 %v1925_v10, %v1726_v33  ;;  %v1989_v39 = vadd.f32 %v1988_v60, %v1727_v53  ;;  %v1732_v50 = vsel %vm1479_vm15, %v6673_v29, 0.0  ;;  %v1733_v19 = vsel %vm1479_vm15, %v6674_v25, 0.0 }
 0x23c   : > { %v1734_v1 = vsel %vm1479_vm15, %v6675_v63, 0.0  ;;  %v1735_v3 = vsel %vm1479_vm15, %v6676_v46, 0.0  ;;  %v1801_v56 = vadd.f32 %v1800_v42, %v1728_v34  ;;  %v1864_v51 = vadd.f32 %v1863_v22, %v1729_v49 }
 0x23d   : > { %v1927_v6 = vadd.f32 %v1926_v55, %v1730_v44  ;;  %v1990_v26 = vadd.f32 %v1989_v39, %v1731_v9  ;;  %2003 = sbr.rel (%p2144_p7) target bundleno = 797 (0x31d), region = 44 }
 0x23e   : > { %v1802_v37 = vadd.f32 %v1801_v56, %v1732_v50  ;;  %v1865_v0 = vadd.f32 %v1864_v51, %v1733_v19 }
 0x23f   : > { %v1928_v7 = vadd.f32 %v1927_v6, %v1734_v1  ;;  %v1991_v2 = vadd.f32 %v1990_v26, %v1735_v3 }
 0x240   : > { %v1992_v11 = vadd.f32 %v1802_v37, %v1736_v4  ;;  %v1993_v31 = vadd.f32 %v1865_v0, %v1737_v40 }
 0x241   : > { %v1994_v23 = vadd.f32 %v1928_v7, %v1738_v12  ;;  %v1995_v58 = vadd.f32 %v1991_v2, %v1739_v32 }
 0x242   : > { %1996 = vst [vmem:[#allocation2] sm:$0xff] %v1992_v11  ;;  %1997 = vst [vmem:[#allocation2 + $0x8] sm:$0xff] %v1993_v31 }
 0x243   : > { %1998 = vst [vmem:[#allocation2 + $0x10] sm:$0xff] %v1994_v23  ;;  %1999 = vst [vmem:[#allocation2 + $0x18] sm:$0xff] %v1995_v58 }
 0x249   : > { %v2004_v17 = vld [vmem:[#allocation2] sm:$0xff]  ;;  %v2005_v14 = vld [vmem:[#allocation2 + $0x8] sm:$0xff] }
 0x24a   : > { %v2006_v30 = vld [vmem:[#allocation2 + $0x10] sm:$0xff]  ;;  %v2008_v21 = vadd.f32 %v2005_v14, %v2004_v17  ;;  %v2007_v45 = vld [vmem:[#allocation2 + $0x18] sm:$0xff] }
 0x24c   : > { %v2009_v16 = vadd.f32 %v2008_v21, %v2006_v30 }
 0x24e   : > { %v2010_v61 = vadd.f32 %v2009_v16, %v2007_v45 }
 0x250   : > { %2011 = vadd.xlane.f32.xlu0 %v2010_v61 }
 0x2dd   : > { %v2012_v41 = vpop.xlane.xlu0 %2011 }
 0x2de   : > { %v2013_v35 = vrot.slane %v2012_v41, 4 }
 0x2e0   : > { %v2014_v28 = vadd.f32 %v2013_v35, %v2012_v41 }
 0x2e2   : > { %v2015_v13 = vrot.slane %v2014_v28, 2 }
 0x2e4   : > { %v2016_v54 = vadd.f32 %v2015_v13, %v2014_v28 }
 0x2e6   : > { %v2017_v8 = vrot.slane %v2016_v54, 1 }
 0x2e8   : > { %v2018_v24 = vadd.f32 %v2017_v8, %v2016_v54 }
 0x2ea   : > { %2155 = vpush %v2018_v24 }
 0x31b   : > { %s2156_s20 = spop %2155 }
 0x31c   : > { %2021 = sst [smem:[#allocation8]] %s2156_s20 }
 0x31d PF: > { %p2163_p12 = scmp.eq.s32.totalorder %s2118_s15, 2  ;;  %s2275_s24 = scalar_lea.hbm %s5695_s2, 16 }
 0x31e   : > { %p2276_p0 = scmp.ne.s32.totalorder %s5695_s2, %s2275_s24  ;;  %p2281_p13 = scmp.lt.u32.totalorder %s2275_s24, %s5695_s2 }
 0x320   : > { %p2277_p1 = pnand %p2276_p0, %p2163_p12 }
 0x322   : > { %p2278_p2 = pneg %p2277_p1 }
 0x324   : > { %p2283_p10 = pnand %p2281_p13, %p2278_p2 }
 0x326   : > { %2286 = shalt.err (!%p2283_p10)
}
 0x327   : > { %s2354_s3 = smov [#allocation8]  }
 0x328   : > { %2160 = dma.smem_to_hbm (%p2163_p12), %s2354_s3, 16, %s5695_s2, [#allocation5]  }
 0x329   : > { %2320 = dma.done.wait (%p2163_p12), [#allocation5], 16  }
 0x32a   : > { %2322 = vsyncadd (%p2163_p12), [#allocation5], 4294967280 }
 0x32b   : > { %2037 = sfence }
 0x32c PF: > { %s19_s14 = sadd.s32 1, %s2345_s14   ;;  %s6677_s9 = smov %s2329_s10 }
 0x32d   : > { %p16_p4 = scmp.ge.s32.totalorder %s19_s14, 5   ;;  %s6678_s10 = smov %s2333_s11 }
 0x32e   : > { %s6679_s11 = smov %s2420_s21  ;;  %s6680_s12 = smov %s2341_s13 }
 0x32f   : > { %s6681_s13 = smov %s6683_s16  ;;  %18 = sbr.rel (!%p16_p4) target bundleno = 7 (0x7), region = 88 }
 0x336   :  { %2043 = vsyncpa [#allocation4], 1 }
 0x337   :  { %2045 = vsyncpa [#allocation4 + $0x1], 1 }
 0x338   :  { %2046 = vsyncpa [#allocation7], 1 }
 0x339   :  { %2048 = vsyncpa [#allocation7 + $0x1], 1 }
 0x33a   :  { %2049 = vsyncpa [#allocation5], 1 }
 0x33b   :  { %2051 = vsyncpa [#allocation5 + $0x1], 1 }

</bundles_post_ra>
